<compile_context>
chip_gen: v7x
topology: tpu7x:2x2x1
jax: 0.10.0
libtpu: 0.0.40
codegen_flags: <defaults>
</compile_context>

<pallas_src>
import functools

import jax
import jax.numpy as jnp
import numpy as np
from jax import lax
from jax.experimental import pallas as pl
from jax.experimental.pallas import tpu as pltpu

ALPHA = 0.07
BETA = 0.03
LAM = 1.0
NUM_BINS = 64
REGIONS = 117
EPS = 1e-6

_KPAD = 128            # region rows (sublane extent of accumulator / region one-hot)
_TN_MAX = 16384        # elements per grid step (lane-dense), multiple of 128
_SUBLANE_BF16 = 16     # bf16 sublane packing granule


def _round_up(x, m):
    return ((x + m - 1) // m) * m


def _rfl_kernel(real_ref, fake_ref, rmap_ref, out_ref, acc_ref, rhs_ref, *,
                tn, n_elems, hw, regions, num_bins, alpha, beta, lam):
    step = pl.program_id(0)
    rhs_rows = rhs_ref.shape[0]
    hi_row = num_bins          # bf16 high part of |r - f|
    lo_row = num_bins + 1      # bf16 residual
    cnt_row = num_bins + 2     # all-ones counts row

    @pl.when(step == 0)
    def _():
        acc_ref[...] = jnp.zeros_like(acc_ref)
        # Constant tail of the rhs operand (aligned 16-row bf16 tile starting at
        # hi_row): ones at the counts row, zeros elsewhere.  Rows hi_row/lo_row
        # are overwritten every step below; this is written once and persists.
        tail = lax.broadcasted_iota(jnp.int32, (rhs_rows - hi_row, tn), 0)
        rhs_ref[hi_row:, :] = (tail == (cnt_row - hi_row)).astype(jnp.bfloat16)

    real = real_ref[...]          # (1, TN) f32, lane-dense
    fake = fake_ref[...]          # (1, TN) f32
    rmap = rmap_ref[...]          # (1, TN) i32

    # ---- cheap per-element prep on the narrow (1, TN) row (kept in f32) --------
    # The last grid step may read past the end of the input row; mask those lanes
    # so they select no region row (rmap -> 128) and cannot inject NaN/Inf into
    # the f32 accumulation (|r - f| -> 0).
    lane = lax.broadcasted_iota(jnp.int32, (1, tn), 1)
    valid = (step * tn + lane) < n_elems
    rmap = jnp.where(valid, rmap, _KPAD)
    ad = jnp.where(valid, jnp.abs(real - fake), 0.0)
    ad_hi = ad.astype(jnp.bfloat16)
    ad_lo = (ad - ad_hi.astype(jnp.float32)).astype(jnp.bfloat16)
    # torch.histc(real, bins, min=0, max=1): out-of-range ignored, x == max -> last bin.
    in_range = (real >= 0.0) & (real <= 1.0) & valid
    bin_f = jnp.clip(jnp.floor(real * float(num_bins)), 0.0, float(num_bins - 1))
    bin_idx = jnp.where(in_range, bin_f.astype(jnp.int32), -1)   # -1 never matches

    # ---- assemble the (rhs_rows, TN) bf16 operand by row writes ----------------
    sub_nb = lax.broadcasted_iota(jnp.int32, (num_bins, tn), 0)
    rhs_ref[:num_bins, :] = (sub_nb == bin_idx).astype(jnp.bfloat16)   # histogram one-hot
    rhs_ref[hi_row:hi_row + 1, :] = ad_hi                              # narrow row stores
    rhs_ref[lo_row:lo_row + 1, :] = ad_lo

    # ---- region one-hot + one MXU matmul contracting the lane (element) dim ----
    sub_r = lax.broadcasted_iota(jnp.int32, (_KPAD, tn), 0)
    ohr = (sub_r == rmap).astype(jnp.bfloat16)                         # (128, TN)
    acc_ref[...] += lax.dot_general(
        ohr, rhs_ref[...], (((1,), (1,)), ((), ())),
        preferred_element_type=jnp.float32)                            # (128, rhs_rows)

    # ---- epilogue: entropy / weights / weighted sum (runs once) ----------------
    @pl.when(step == pl.num_programs(0) - 1)
    def _():
        acc = acc_ref[...]                                             # (128, rhs_rows)
        hist = acc[:, :num_bins]                                       # (128, NB)
        sum_abs = acc[:, hi_row:hi_row + 1] + acc[:, lo_row:lo_row + 1]
        counts = acc[:, cnt_row:cnt_row + 1]

        # per-region mean L1 error (empty regions -> 0, like the torch loop)
        rec_err = jnp.where(counts > 0, sum_abs / jnp.maximum(counts, 1.0), 0.0)

        # per-region entropy of real values
        hist_sum = jnp.sum(hist, axis=1, keepdims=True)
        prob = hist / (hist_sum + EPS)
        ent_err = -jnp.sum(prob * jnp.log(prob + EPS), axis=1, keepdims=True)

        # normalized weights (torch.nan_to_num(weight, 0))
        valid_r = lax.broadcasted_iota(jnp.int32, (_KPAD, 1), 0) < regions
        neg_inf = jnp.float32(-jnp.inf)
        max_rec = jnp.max(jnp.where(valid_r, rec_err, neg_inf), keepdims=True)   # (1, 1)
        max_ent = jnp.max(jnp.where(valid_r, ent_err, neg_inf), keepdims=True)   # (1, 1)
        weight = alpha * (rec_err / max_rec) + beta * (ent_err / max_ent)
        finfo = jnp.finfo(jnp.float32)
        weight = jnp.where(jnp.isnan(weight), 0.0,
                           jnp.clip(weight, finfo.min, finfo.max))

        # regional focal loss
        region_loss = sum_abs / float(hw)
        per_region = (1.0 + lam * weight) * region_loss
        loss = jnp.sum(jnp.where(valid_r & (counts > 0), per_region, 0.0),
                       keepdims=True)                                   # (1, 1)
        out_ref[...] = loss.astype(jnp.float32)


@functools.partial(jax.jit, static_argnames=("regions", "num_bins", "alpha",
                                              "beta", "lam", "tile_max"))
def regional_focal_loss(real, fake, region_map, regions=REGIONS, num_bins=NUM_BINS,
                        alpha=ALPHA, beta=BETA, lam=LAM, tile_max=_TN_MAX):
    assert regions <= _KPAD, "region ids must fit the 128 accumulator rows"
    n, c, h, w = real.shape
    n_elems = n * c * h * w
    rhs_rows = _round_up(num_bins + 3, _SUBLANE_BF16)

    # Lane-dense (1, N) views (metadata-only reshape for contiguous inputs).
    real_row = real.reshape(1, n_elems).astype(jnp.float32)
    fake_row = fake.reshape(1, n_elems).astype(jnp.float32)
    rmap_row = region_map.reshape(1, n_elems).astype(jnp.int32)

    # Only pad (to the next multiple of 128) if the element count is not lane
    # aligned; padded / over-read lanes are masked inside the kernel anyway.
    n_row = _round_up(n_elems, 128)
    if n_row != n_elems:
        pad = n_row - n_elems
        real_row = jnp.pad(real_row, ((0, 0), (0, pad)))
        fake_row = jnp.pad(fake_row, ((0, 0), (0, pad)))
        rmap_row = jnp.pad(rmap_row, ((0, 0), (0, pad)), constant_values=_KPAD)

    tn = min(_round_up(tile_max, 128), n_row)
    steps = pl.cdiv(n_row, tn)

    kernel = functools.partial(
        _rfl_kernel, tn=tn, n_elems=n_elems, hw=h * w, regions=regions,
        num_bins=num_bins, alpha=alpha, beta=beta, lam=lam)

    out = pl.pallas_call(
        kernel,
        out_shape=jax.ShapeDtypeStruct((1, 1), jnp.float32),
        grid=(steps,),
        in_specs=[
            pl.BlockSpec((1, tn), lambda i: (0, i)),
            pl.BlockSpec((1, tn), lambda i: (0, i)),
            pl.BlockSpec((1, tn), lambda i: (0, i)),
        ],
        out_specs=pl.BlockSpec((1, 1), lambda i: (0, 0)),
        scratch_shapes=[pltpu.VMEM((_KPAD, rhs_rows), jnp.float32),
                        pltpu.VMEM((rhs_rows, tn), jnp.bfloat16)],
        compiler_params=pltpu.CompilerParams(
            dimension_semantics=("arbitrary",),
            vmem_limit_bytes=48 * 1024 * 1024),
    )(real_row, fake_row, rmap_row)
    return out[0, 0]


def _reference(real, fake, region_map, regions=REGIONS, num_bins=NUM_BINS,
               alpha=ALPHA, beta=BETA, lam=LAM, eps=EPS):
    """Pure-JAX re-implementation of the torch module (same math, no Pallas)."""
    r = real.reshape(-1).astype(jnp.float32)
    f = fake.reshape(-1).astype(jnp.float32)
    m = region_map.reshape(-1)
    ad = jnp.abs(r - f)
    ohr = (m[None, :] == jnp.arange(regions)[:, None]).astype(jnp.float32)
    counts = ohr.sum(axis=1)
    sum_abs = ohr @ ad
    rec = jnp.where(counts > 0, sum_abs / jnp.maximum(counts, 1.0), 0.0)
    in_range = (r >= 0) & (r <= 1)
    b = jnp.minimum(jnp.floor(r * num_bins), num_bins - 1)
    ohb = ((b[:, None] == jnp.arange(num_bins)[None, :]) & in_range[:, None]).astype(jnp.float32)
    hist = ohr @ ohb
    prob = hist / (hist.sum(axis=1, keepdims=True) + eps)
    ent = -(prob * jnp.log(prob + eps)).sum(axis=1)
    w = jnp.nan_to_num(alpha * rec / rec.max() + beta * ent / ent.max())
    H, W = real.shape[-2:]
    region_loss = sum_abs / (H * W)
    return jnp.sum(jnp.where(counts > 0, (1.0 + lam * w) * region_loss, 0.0))


if __name__ == "__main__":
    key = jax.random.PRNGKey(0)
    k1, k2, k3, k4, k5, k6, k7, k8, k9 = jax.random.split(key, 9)

    # Main shape (matches the module's NCHW inputs), single-tile path.
    shape = (2, 4, 16, 16)
    real = jax.random.uniform(k1, shape, dtype=jnp.float32)
    fake = jax.random.uniform(k2, shape, dtype=jnp.float32)
    region_map = jax.random.randint(k3, shape, 0, REGIONS, dtype=jnp.int32)

    loss = jax.block_until_ready(regional_focal_loss(real, fake, region_map))
    ref = _reference(real, fake, region_map)
    assert np.isfinite(float(loss))
    np.testing.assert_allclose(float(loss), float(ref), rtol=2e-3, atol=1e-4)

    # Multi-step accumulation + in-kernel tail masking (partial last block).
    shape2 = (2, 4, 40, 40)     # 12800 elems -> tiles of 4096, last block partial
    r2 = jax.random.uniform(k4, shape2, dtype=jnp.float32)
    f2 = jax.random.uniform(k5, shape2, dtype=jnp.float32)
    m2 = jax.random.randint(k6, shape2, 0, REGIONS, dtype=jnp.int32)
    loss2 = jax.block_until_ready(regional_focal_loss(r2, f2, m2, tile_max=4096))
    ref2 = _reference(r2, f2, m2)
    np.testing.assert_allclose(float(loss2), float(ref2), rtol=2e-3, atol=1e-4)

    # Non-128-aligned element count (exercises the small alignment-pad fallback).
    shape3 = (1, 3, 10, 10)     # 300 elems
    r3 = jax.random.uniform(k7, shape3, dtype=jnp.float32)
    f3 = jax.random.uniform(k8, shape3, dtype=jnp.float32)
    m3 = jax.random.randint(k9, shape3, 0, REGIONS, dtype=jnp.int32)
    loss3 = jax.block_until_ready(regional_focal_loss(r3, f3, m3))
    ref3 = _reference(r3, f3, m3)
    np.testing.assert_allclose(float(loss3), float(ref3), rtol=2e-3, atol=1e-4)

    print("KERNEL_OK")
</pallas_src>

<mosaic_0001>
module attributes {stable_mosaic.version = 11 : i64} {
  func.func @_rfl_kernel(%arg0: i32, %arg1: memref<1x2048xf32, #tpu.memory_space<vmem>>, %arg2: memref<1x2048xf32, #tpu.memory_space<vmem>>, %arg3: memref<1x2048xi32, #tpu.memory_space<vmem>>, %arg4: memref<1x1xf32, #tpu.memory_space<vmem>>, %arg5: memref<128x80xf32, #tpu.memory_space<vmem>>, %arg6: memref<80x2048xbf16, #tpu.memory_space<vmem>>) attributes {dimension_semantics = [#tpu.dimension_semantics<arbitrary>], iteration_bounds = array<i64: 1>, scalar_prefetch = 0 : i64, scratch_operands = 2 : i64, tpu.core_type = #tpu.core_type<tc>, window_params = [{transform_indices = @transform_0, window_bounds = array<i64: 1, 2048>}, {transform_indices = @transform_1, window_bounds = array<i64: 1, 2048>}, {transform_indices = @transform_2, window_bounds = array<i64: 1, 2048>}, {pipeline_mode = #tpu.pipeline_mode<synchronous>, transform_indices = @transform_3, window_bounds = array<i64: 1, 1>}]} {
    %c0_i32 = arith.constant 0 : i32
    %0 = arith.cmpi eq, %arg0, %c0_i32 : i32
    %1 = arith.extui %0 : i1 to i32
    %c0_i32_0 = arith.constant 0 : i32
    %2 = arith.cmpi ne, %1, %c0_i32_0 : i32
    scf.if %2 {
      %cst_25 = arith.constant 0.000000e+00 : f32
      %61 = vector.broadcast %cst_25 : f32 to vector<128x80xf32>
      %c0_26 = arith.constant 0 : index
      %c0_27 = arith.constant 0 : index
      %62 = vector.load %arg5[%c0_26, %c0_27] : memref<128x80xf32, #tpu.memory_space<vmem>>, vector<128x80xf32>
      tpu.vector_store %arg5[%c0_26, %c0_27], %61 {strides = array<i32>} : memref<128x80xf32, #tpu.memory_space<vmem>>, vector<128x80xf32>,
      %63 = tpu.iota {dimensions = array<i32: 0>} : vector<16x2048xi32>
      %c2_i32 = arith.constant 2 : i32
      %64 = vector.broadcast %c2_i32 : i32 to vector<16x2048xi32>
      %65 = arith.cmpi eq, %63, %64 : vector<16x2048xi32>
      %66 = arith.extui %65 : vector<16x2048xi1> to vector<16x2048xi32>
      %67 = arith.sitofp %66 : vector<16x2048xi32> to vector<16x2048xf32>
      %68 = arith.truncf %67 : vector<16x2048xf32> to vector<16x2048xbf16>
      %c64_28 = arith.constant 64 : index
      %c0_29 = arith.constant 0 : index
      %69 = vector.load %arg6[%c64_28, %c0_29] : memref<80x2048xbf16, #tpu.memory_space<vmem>>, vector<16x2048xbf16>
      tpu.vector_store %arg6[%c64_28, %c0_29], %68 {strides = array<i32>} : memref<80x2048xbf16, #tpu.memory_space<vmem>>, vector<16x2048xbf16>,
    } else {
    }
    %c0 = arith.constant 0 : index
    %c0_1 = arith.constant 0 : index
    %3 = vector.load %arg1[%c0, %c0_1] : memref<1x2048xf32, #tpu.memory_space<vmem>>, vector<1x2048xf32>
    %c0_2 = arith.constant 0 : index
    %c0_3 = arith.constant 0 : index
    %4 = vector.load %arg2[%c0_2, %c0_3] : memref<1x2048xf32, #tpu.memory_space<vmem>>, vector<1x2048xf32>
    %c0_4 = arith.constant 0 : index
    %c0_5 = arith.constant 0 : index
    %5 = vector.load %arg3[%c0_4, %c0_5] : memref<1x2048xi32, #tpu.memory_space<vmem>>, vector<1x2048xi32>
    %6 = tpu.iota {dimensions = array<i32: 1>} : vector<1x2048xi32>
    %c2048_i32 = arith.constant 2048 : i32
    %7 = arith.muli %arg0, %c2048_i32 : i32
    %8 = vector.broadcast %7 : i32 to vector<1x2048xi32>
    %9 = arith.addi %8, %6 : vector<1x2048xi32>
    %c2048_i32_6 = arith.constant 2048 : i32
    %10 = vector.broadcast %c2048_i32_6 : i32 to vector<1x2048xi32>
    %11 = arith.cmpi slt, %9, %10 : vector<1x2048xi32>
    %c128_i32 = arith.constant 128 : i32
    %12 = vector.broadcast %c128_i32 : i32 to vector<1x2048xi32>
    %13 = arith.select %11, %5, %12 : vector<1x2048xi1>, vector<1x2048xi32>
    %14 = arith.subf %3, %4 : vector<1x2048xf32>
    %15 = math.absf %14 : vector<1x2048xf32>
    %cst = arith.constant 0.000000e+00 : f32
    %16 = vector.broadcast %cst : f32 to vector<1x2048xf32>
    %17 = arith.select %11, %15, %16 : vector<1x2048xi1>, vector<1x2048xf32>
    %18 = arith.truncf %17 : vector<1x2048xf32> to vector<1x2048xbf16>
    %19 = arith.extf %18 : vector<1x2048xbf16> to vector<1x2048xf32>
    %20 = arith.subf %17, %19 : vector<1x2048xf32>
    %21 = arith.truncf %20 : vector<1x2048xf32> to vector<1x2048xbf16>
    %cst_7 = arith.constant 0.000000e+00 : f32
    %22 = vector.broadcast %cst_7 : f32 to vector<1x2048xf32>
    %23 = arith.cmpf oge, %3, %22 : vector<1x2048xf32>
    %cst_8 = arith.constant 1.000000e+00 : f32
    %24 = vector.broadcast %cst_8 : f32 to vector<1x2048xf32>
    %25 = arith.cmpf ole, %3, %24 : vector<1x2048xf32>
    %26 = arith.andi %23, %25 : vector<1x2048xi1>
    %27 = arith.andi %26, %11 : vector<1x2048xi1>
    %cst_9 = arith.constant 6.400000e+01 : f32
    %28 = vector.broadcast %cst_9 : f32 to vector<1x2048xf32>
    %29 = arith.mulf %3, %28 : vector<1x2048xf32>
    %30 = math.floor %29 : vector<1x2048xf32>
    %cst_10 = arith.constant 0.000000e+00 : f32
    %cst_11 = arith.constant 6.300000e+01 : f32
    %31 = vector.broadcast %cst_10 : f32 to vector<1x2048xf32>
    %32 = arith.maximumf %31, %30 : vector<1x2048xf32>
    %33 = vector.broadcast %cst_11 : f32 to vector<1x2048xf32>
    %34 = arith.minimumf %33, %32 : vector<1x2048xf32>
    %35 = arith.fptosi %34 : vector<1x2048xf32> to vector<1x2048xi32>
    %c-1_i32 = arith.constant -1 : i32
    %36 = vector.broadcast %c-1_i32 : i32 to vector<1x2048xi32>
    %37 = arith.select %27, %35, %36 : vector<1x2048xi1>, vector<1x2048xi32>
    %38 = tpu.iota {dimensions = array<i32: 0>} : vector<64x2048xi32>
    %39 = vector.broadcast %37 : vector<1x2048xi32> to vector<64x2048xi32>
    %40 = arith.cmpi eq, %38, %39 : vector<64x2048xi32>
    %41 = arith.extui %40 : vector<64x2048xi1> to vector<64x2048xi32>
    %42 = arith.sitofp %41 : vector<64x2048xi32> to vector<64x2048xf32>
    %43 = arith.truncf %42 : vector<64x2048xf32> to vector<64x2048xbf16>
    %c0_12 = arith.constant 0 : index
    %c0_13 = arith.constant 0 : index
    %44 = vector.load %arg6[%c0_12, %c0_13] : memref<80x2048xbf16, #tpu.memory_space<vmem>>, vector<64x2048xbf16>
    tpu.vector_store %arg6[%c0_12, %c0_13], %43 {strides = array<i32>} : memref<80x2048xbf16, #tpu.memory_space<vmem>>, vector<64x2048xbf16>,
    %c64 = arith.constant 64 : index
    %c0_14 = arith.constant 0 : index
    %45 = vector.load %arg6[%c64, %c0_14] : memref<80x2048xbf16, #tpu.memory_space<vmem>>, vector<1x2048xbf16>
    tpu.vector_store %arg6[%c64, %c0_14], %18 {strides = array<i32>} : memref<80x2048xbf16, #tpu.memory_space<vmem>>, vector<1x2048xbf16>,
    %c65 = arith.constant 65 : index
    %c0_15 = arith.constant 0 : index
    %46 = vector.load %arg6[%c65, %c0_15] : memref<80x2048xbf16, #tpu.memory_space<vmem>>, vector<1x2048xbf16>
    tpu.vector_store %arg6[%c65, %c0_15], %21 {strides = array<i32>} : memref<80x2048xbf16, #tpu.memory_space<vmem>>, vector<1x2048xbf16>,
    %47 = tpu.iota {dimensions = array<i32: 0>} : vector<128x2048xi32>
    %48 = vector.broadcast %13 : vector<1x2048xi32> to vector<128x2048xi32>
    %49 = arith.cmpi eq, %47, %48 : vector<128x2048xi32>
    %50 = arith.extui %49 : vector<128x2048xi1> to vector<128x2048xi32>
    %51 = arith.sitofp %50 : vector<128x2048xi32> to vector<128x2048xf32>
    %52 = arith.truncf %51 : vector<128x2048xf32> to vector<128x2048xbf16>
    %c0_16 = arith.constant 0 : index
    %c0_17 = arith.constant 0 : index
    %53 = vector.load %arg5[%c0_16, %c0_17] : memref<128x80xf32, #tpu.memory_space<vmem>>, vector<128x80xf32>
    %c0_18 = arith.constant 0 : index
    %c0_19 = arith.constant 0 : index
    %54 = vector.load %arg6[%c0_18, %c0_19] : memref<80x2048xbf16, #tpu.memory_space<vmem>>, vector<80x2048xbf16>
    %cst_20 = arith.constant dense<0.000000e+00> : vector<128x80xf32>
    %55 = tpu.matmul %52, %54, %cst_20 {dimension_numbers = #tpu.dot_dimension_numbers<[1], [1], [0], [0], [0, 0, 1, 0], [], []>} : vector<128x2048xbf16>, vector<80x2048xbf16>, vector<128x80xf32> -> vector<128x80xf32>
    %56 = arith.addf %53, %55 : vector<128x80xf32>
    %c0_21 = arith.constant 0 : index
    %c0_22 = arith.constant 0 : index
    %57 = vector.load %arg5[%c0_21, %c0_22] : memref<128x80xf32, #tpu.memory_space<vmem>>, vector<128x80xf32>
    tpu.vector_store %arg5[%c0_21, %c0_22], %56 {strides = array<i32>} : memref<128x80xf32, #tpu.memory_space<vmem>>, vector<128x80xf32>,
    %c0_i32_23 = arith.constant 0 : i32
    %58 = arith.cmpi eq, %arg0, %c0_i32_23 : i32
    %59 = arith.extui %58 : i1 to i32
    %c0_i32_24 = arith.constant 0 : i32
    %60 = arith.cmpi ne, %59, %c0_i32_24 : i32
    scf.if %60 {
      %c0_25 = arith.constant 0 : index
      %c0_26 = arith.constant 0 : index
      %61 = vector.load %arg5[%c0_25, %c0_26] : memref<128x80xf32, #tpu.memory_space<vmem>>, vector<128x80xf32>
      %62 = vector.extract_strided_slice %61 {offsets = [0, 0], sizes = [128, 64], strides = [1, 1]} : vector<128x80xf32> to vector<128x64xf32>
      %63 = vector.extract_strided_slice %61 {offsets = [0, 64], sizes = [128, 1], strides = [1, 1]} : vector<128x80xf32> to vector<128x1xf32>
      %64 = vector.extract_strided_slice %61 {offsets = [0, 65], sizes = [128, 1], strides = [1, 1]} : vector<128x80xf32> to vector<128x1xf32>
      %65 = arith.addf %63, %64 : vector<128x1xf32>
      %66 = vector.extract_strided_slice %61 {offsets = [0, 66], sizes = [128, 1], strides = [1, 1]} : vector<128x80xf32> to vector<128x1xf32>
      %cst_27 = arith.constant 0.000000e+00 : f32
      %67 = vector.broadcast %cst_27 : f32 to vector<128x1xf32>
      %68 = arith.cmpf ogt, %66, %67 : vector<128x1xf32>
      %cst_28 = arith.constant 1.000000e+00 : f32
      %69 = vector.broadcast %cst_28 : f32 to vector<128x1xf32>
      %70 = arith.maximumf %66, %69 : vector<128x1xf32>
      %71 = arith.divf %65, %70 : vector<128x1xf32>
      %cst_29 = arith.constant 0.000000e+00 : f32
      %72 = vector.broadcast %cst_29 : f32 to vector<128x1xf32>
      %73 = arith.select %68, %71, %72 : vector<128x1xi1>, vector<128x1xf32>
      %cst_30 = arith.constant dense<0.000000e+00> : vector<128xf32>
      %74 = vector.multi_reduction <add>, %62, %cst_30 [1] : vector<128x64xf32> to vector<128xf32>
      %75 = vector.shape_cast %74 : vector<128xf32> to vector<128x1xf32>
      %cst_31 = arith.constant 9.99999997E-7 : f32
      %76 = vector.broadcast %cst_31 : f32 to vector<128x1xf32>
      %77 = arith.addf %75, %76 : vector<128x1xf32>
      %78 = vector.broadcast %77 : vector<128x1xf32> to vector<128x64xf32>
      %79 = arith.divf %62, %78 : vector<128x64xf32>
      %cst_32 = arith.constant 9.99999997E-7 : f32
      %80 = vector.broadcast %cst_32 : f32 to vector<128x64xf32>
      %81 = arith.addf %79, %80 : vector<128x64xf32>
      %82 = math.log %81 : vector<128x64xf32>
      %83 = arith.mulf %79, %82 : vector<128x64xf32>
      %cst_33 = arith.constant dense<0.000000e+00> : vector<128xf32>
      %84 = vector.multi_reduction <add>, %83, %cst_33 [1] : vector<128x64xf32> to vector<128xf32>
      %85 = vector.shape_cast %84 : vector<128xf32> to vector<128x1xf32>
      %cst_34 = arith.constant 0.000000e+00 : f32
      %86 = vector.broadcast %cst_34 : f32 to vector<128x1xf32>
      %87 = arith.subf %86, %85 : vector<128x1xf32>
      %88 = tpu.iota {dimensions = array<i32: 0>} : vector<128x1xi32>
      %c117_i32 = arith.constant 117 : i32
      %89 = vector.broadcast %c117_i32 : i32 to vector<128x1xi32>
      %90 = arith.cmpi slt, %88, %89 : vector<128x1xi32>
      %cst_35 = arith.constant 0xFF800000 : f32
      %91 = vector.broadcast %cst_35 : f32 to vector<128x1xf32>
      %92 = arith.select %90, %73, %91 : vector<128x1xi1>, vector<128x1xf32>
      %93 = vector.shape_cast %92 : vector<128x1xf32> to vector<1x128x1xf32>
      %cst_36 = arith.constant dense<0xFF800000> : vector<1xf32>
      %94 = vector.multi_reduction <maximumf>, %93, %cst_36 [1, 2] : vector<1x128x1xf32> to vector<1xf32>
      %95 = vector.shape_cast %94 : vector<1xf32> to vector<1x1x1xf32>
      %96 = vector.extract %95[0, 0, 0] : f32 from vector<1x1x1xf32>
      %97 = vector.broadcast %96 : f32 to vector<1x1xf32>
      %cst_37 = arith.constant 0xFF800000 : f32
      %98 = vector.broadcast %cst_37 : f32 to vector<128x1xf32>
      %99 = arith.select %90, %87, %98 : vector<128x1xi1>, vector<128x1xf32>
      %100 = vector.shape_cast %99 : vector<128x1xf32> to vector<1x128x1xf32>
      %cst_38 = arith.constant dense<0xFF800000> : vector<1xf32>
      %101 = vector.multi_reduction <maximumf>, %100, %cst_38 [1, 2] : vector<1x128x1xf32> to vector<1xf32>
      %102 = vector.shape_cast %101 : vector<1xf32> to vector<1x1x1xf32>
      %103 = vector.extract %102[0, 0, 0] : f32 from vector<1x1x1xf32>
      %104 = vector.broadcast %103 : f32 to vector<1x1xf32>
      %105 = vector.broadcast %97 : vector<1x1xf32> to vector<128x1xf32>
      %106 = arith.divf %73, %105 : vector<128x1xf32>
      %cst_39 = arith.constant 7.000000e-02 : f32
      %107 = vector.broadcast %cst_39 : f32 to vector<128x1xf32>
      %108 = arith.mulf %107, %106 : vector<128x1xf32>
      %109 = vector.broadcast %104 : vector<1x1xf32> to vector<128x1xf32>
      %110 = arith.divf %87, %109 : vector<128x1xf32>
      %cst_40 = arith.constant 3.000000e-02 : f32
      %111 = vector.broadcast %cst_40 : f32 to vector<128x1xf32>
      %112 = arith.mulf %111, %110 : vector<128x1xf32>
      %113 = arith.addf %108, %112 : vector<128x1xf32>
      %114 = arith.cmpf one, %113, %113 : vector<128x1xf32>
      %cst_41 = arith.constant -3.40282347E+38 : f32
      %cst_42 = arith.constant 3.40282347E+38 : f32
      %115 = vector.broadcast %cst_41 : f32 to vector<128x1xf32>
      %116 = arith.maximumf %115, %113 : vector<128x1xf32>
      %117 = vector.broadcast %cst_42 : f32 to vector<128x1xf32>
      %118 = arith.minimumf %117, %116 : vector<128x1xf32>
      %cst_43 = arith.constant 0.000000e+00 : f32
      %119 = vector.broadcast %cst_43 : f32 to vector<128x1xf32>
      %120 = arith.select %114, %119, %118 : vector<128x1xi1>, vector<128x1xf32>
      %cst_44 = arith.constant 2.560000e+02 : f32
      %121 = vector.broadcast %cst_44 : f32 to vector<128x1xf32>
      %122 = arith.divf %65, %121 : vector<128x1xf32>
      %cst_45 = arith.constant 1.000000e+00 : f32
      %123 = vector.broadcast %cst_45 : f32 to vector<128x1xf32>
      %124 = arith.mulf %123, %120 : vector<128x1xf32>
      %cst_46 = arith.constant 1.000000e+00 : f32
      %125 = vector.broadcast %cst_46 : f32 to vector<128x1xf32>
      %126 = arith.addf %125, %124 : vector<128x1xf32>
      %127 = arith.mulf %126, %122 : vector<128x1xf32>
      %cst_47 = arith.constant 0.000000e+00 : f32
      %128 = vector.broadcast %cst_47 : f32 to vector<128x1xf32>
      %129 = arith.cmpf ogt, %66, %128 : vector<128x1xf32>
      %130 = arith.andi %90, %129 : vector<128x1xi1>
      %cst_48 = arith.constant 0.000000e+00 : f32
      %131 = vector.broadcast %cst_48 : f32 to vector<128x1xf32>
      %132 = arith.select %130, %127, %131 : vector<128x1xi1>, vector<128x1xf32>
      %133 = vector.shape_cast %132 : vector<128x1xf32> to vector<1x128x1xf32>
      %cst_49 = arith.constant dense<0.000000e+00> : vector<1xf32>
      %134 = vector.multi_reduction <add>, %133, %cst_49 [1, 2] : vector<1x128x1xf32> to vector<1xf32>
      %135 = vector.shape_cast %134 : vector<1xf32> to vector<1x1x1xf32>
      %136 = vector.extract %135[0, 0, 0] : f32 from vector<1x1x1xf32>
      %137 = vector.broadcast %136 : f32 to vector<1x1xf32>
      %c0_50 = arith.constant 0 : index
      %c0_51 = arith.constant 0 : index
      %138 = vector.load %arg4[%c0_50, %c0_51] : memref<1x1xf32, #tpu.memory_space<vmem>>, vector<1x1xf32>
      tpu.vector_store %arg4[%c0_50, %c0_51], %137 {strides = array<i32>} : memref<1x1xf32, #tpu.memory_space<vmem>>, vector<1x1xf32>,
    } else {
    }
    return
  }
  func.func @transform_0(%arg0: i32) -> (i32, i32) {
    %c0_i32 = arith.constant 0 : i32
    %c0_i32_0 = arith.constant 0 : i32
    return %c0_i32, %arg0 : i32, i32
  }
  func.func @transform_1(%arg0: i32) -> (i32, i32) {
    %c0_i32 = arith.constant 0 : i32
    %c0_i32_0 = arith.constant 0 : i32
    return %c0_i32, %arg0 : i32, i32
  }
  func.func @transform_2(%arg0: i32) -> (i32, i32) {
    %c0_i32 = arith.constant 0 : i32
    %c0_i32_0 = arith.constant 0 : i32
    return %c0_i32, %arg0 : i32, i32
  }
  func.func @transform_3(%arg0: i32) -> (i32, i32) {
    %c0_i32 = arith.constant 0 : i32
    %c0_i32_0 = arith.constant 0 : i32
    %c0_i32_1 = arith.constant 0 : i32
    return %c0_i32, %c0_i32_0 : i32, i32
  }
}

</mosaic_0001>

<bundles_post_ra>
// kernel: regional_focal_loss.1
= control target key start
LH: loop header
LB: loop body
LE: loop exit
PB: predicated region body
PF: predicated region fallthrough
CT: control target
= control target key end

     0   :  { %v37_v0 = vlaneseq  ;;  %v5107_v3 = vmov 1966171168   ;;  %v5108_v10 = vmov 1   ;;  %s8151_s0 = inlined_call_operand.vmem [shape: f32[1,2048], index: 0, kind: input, shape index: {}]   ;;  %s8152_s1 = inlined_call_operand.vmem [shape: f32[1,2048], index: 1, kind: input, shape index: {}]   ;;  %s8153_s2 = inlined_call_operand.vmem [shape: s32[1,2048], index: 2, kind: input, shape index: {}]   ;;  %s8154_s3 = inlined_call_operand.hbm [shape: f32[1,1], index: 3, kind: output, shape index: {}]  }
   0x1   :  { %v63_v1 = vld [vmem:[%s8151_s0] sm:$0xff]  ;;  %v393_v4 = vunpack.c.l.s4 %v5107_v3  ;;  %v388_v11 = vcombine.low %v5108_v10, %v5108_v10 }
   0x2   :  { %v5139_v2 = vshrl.u32 %v37_v0, 7  ;;  %v490_v5 = vmul.f32 64.0, %v63_v1  ;;  %v5144_v6 = vld [vmem:[%s8153_s2] sm:$0xff] }
   0x3   :  { %v394_v8 = vunpack.c.0.s8 %v393_v4  ;;  %v65_v13 = vld [vmem:[%s8152_s1] sm:$0xff] }
   0x4   :  { %v5147_v7 = vsub.s32 1, %v5139_v2  ;;  %v492_v9 = vfloor.f32 %v490_v5  ;;  %v5150_v12 = vsub.s32 3, %v5139_v2 }
   0x6   :  { %v127_v14 = vrot.slane %v5144_v6, %v5147_v7 }
   0x7   :  { %8 = vsyncpa [#allocation5], 0  ;;  %v5158_v15 = vsub.s32 0, %v5139_v2  ;;  %v397_v16 = vsub.s32 %v394_v8, %v5139_v2  ;;  %v494_v17 = vmax.f32 %v492_v9, 0.0  ;;  %v135_v18 = vrot.slane %v5144_v6, %v5150_v12  ;;  %s5112_s24 = smov 126   ;;  %s5113_s25 = smov 2  }
   0x8   :  { %v200_v19 = vsub.f32 %v63_v1, %v65_v13  ;;  %vm366_vm0 = vcmp.ge.f32.partialorder %v63_v1, 0.0  ;;  %vm368_vm1 = vcmp.le.f32.partialorder %v63_v1, 1.0  ;;  %v5167_v25 = vadd.s32 8, %v5139_v2  ;;  %s5114_s28 = smov 62   ;;  %s5115_s29 = smov [#allocation4]  }
   0x9   :  { %v398_v20 = vrot.slane %v388_v11, %v397_v16  ;;  %v496_v21 = vmin.f32 %v494_v17, 63.0  ;;  %v5164_v22 = vrot.slane %v127_v14, %v5158_v15  ;;  %v5170_v26 = vrot.slane %v135_v18, %v5158_v15  ;;  %vm5193_vm4 = vmand %vm366_vm0, %vm368_vm1  ;;  %s4175_s30 = sshll.u32 %s5115_s29, 4  ;;  %s4176_s30 = int_to_ptr.vmem [resolvable:$true] %s4175_s30 }
   0xa   :  { %v5173_v27 = vsub.s32 2, %v5139_v2  ;;  %v5176_v28 = vadd.s32 16, %v5139_v2  ;;  %vm40_vm2 = vcmp.eq.s32.totalorder %v5139_v2, 2  ;;  %v5179_v29 = vand.u32 2147483647, %v200_v19  ;;  %s5083_s5 = scalar_lea.vmem %s4176_s30, 16  ;;  %p5088_p1 = scmp.lt.s32.totalorder %s4176_s30, %s4176_s30 }
   0xb   :  { %v420_v23 = vcombine.low %v398_v20, %v398_v20  ;;  %v4840_v24 = vtrunc.f32 %v496_v21  ;;  %v8162_v32 = vmov 0.0   ;;  %vm1325_vm3 = vcmp.eq.s32.totalorder %v5139_v2, %v5164_v22  ;;  %p5084_p0 = scmp.ne.s32.totalorder %s4176_s30, %s5083_s5  ;;  %s5087_s6 = scalar_lea.vmem %s4176_s30, 32 }
   0xc   :  { %v4183_v33 = vsel %vm40_vm2, 1.0, %v8162_v32  ;;  %v213_v35 = vrot.slane %v5179_v29, %v5147_v7  ;;  %v221_v36 = vrot.slane %v5179_v29, %v5150_v12  ;;  %v209_v37 = vrot.slane %v5179_v29, %v5158_v15  ;;  %p5089_p2 = scmp.lt.s32.totalorder %s5087_s6, %s5083_s5 }
   0xd   :  { %v428_v30 = vrot.slane %v420_v23, %v397_v16  ;;  %v4841_v31 = vcvt.f32.s32 %v4840_v24  ;;  %v46_v34 = vpack.c.bf16 %v8162_v32, %v4183_v33  ;;  %v217_v40 = vrot.slane %v5179_v29, %v5173_v27 }
   0xe   :  { %vm1341_vm5 = vcmp.eq.s32.totalorder %v5167_v25, %v5164_v22  ;;  %vm1327_vm6 = vcmp.eq.s32.totalorder %v5139_v2, %v5170_v26  ;;  %v5203_v41 = vpack.c.bf16 %v213_v35, %v213_v35  ;;  %v5205_v42 = vpack.c.bf16 %v221_v36, %v221_v36  ;;  %p5090_p3 = por %p5089_p2, %p5088_p1 }
   0xf   :  { %v436_v39 = vcombine.low %v428_v30, %v428_v30  ;;  %48 = vst [vmem:[#allocation3 + $0x208] sm:$0xff] %v46_v34  ;;  %47 = vst [vmem:[#allocation3 + $0x200] sm:$0xff] %v46_v34  ;;  %v5207_v43 = vpack.c.bf16 %v209_v37, %v209_v37  ;;  %vm1343_vm8 = vcmp.eq.s32.totalorder %v5167_v25, %v5170_v26  ;;  %v8185_v44 = vmov 0 }
  0x10   :  { %49 = vst [vmem:[#allocation3 + $0x210] sm:$0xff] %v46_v34  ;;  %50 = vst [vmem:[#allocation3 + $0x218] sm:$0xff] %v46_v34  ;;  %v5222_v45 = vadd.s32 24, %v5139_v2  ;;  %v5225_v46 = vadd.s32 32, %v5139_v2  ;;  %v5227_v47 = vpack.c.bf16 %v217_v40, %v217_v40  ;;  %v5110_v48 = vmov 1.0|1.0   ;;  %p5091_p4 = pnand %p5090_p3, %p5084_p0 }
  0x11   :  { %51 = vst [vmem:[#allocation3 + $0x220] sm:$0xff] %v46_v34  ;;  %52 = vst [vmem:[#allocation3 + $0x228] sm:$0xff] %v46_v34  ;;  %vm5217_vm9 = vcmp.ne.s32.totalorder %v436_v39, 0  ;;  %v5238_v49 = vadd.s32 40, %v5139_v2  ;;  %v319_v50 = vunpack.c.l.bf16 %v5203_v41  ;;  %v321_v51 = vunpack.c.l.bf16 %v5205_v42 }
  0x12   :  { %53 = vst [vmem:[#allocation3 + $0x230] sm:$0xff] %v46_v34  ;;  %54 = vst [vmem:[#allocation3 + $0x238] sm:$0xff] %v46_v34  ;;  %v8186_v44 = vsel %vm5217_vm9, 4294967295, %v8185_v44  ;;  %v318_v52 = vunpack.c.l.bf16 %v5207_v43  ;;  %v5247_v54 = vadd.s32 48, %v5139_v2  ;;  %v5250_v55 = vadd.s32 56, %v5139_v2 }
  0x13   :  { %55 = vst [vmem:[#allocation3 + $0x240] sm:$0xff] %v46_v34  ;;  %56 = vst [vmem:[#allocation3 + $0x248] sm:$0xff] %v46_v34  ;;  %v320_v56 = vunpack.c.l.bf16 %v5227_v47  ;;  %v5269_v61 = vsub.f32 %v213_v35, %v319_v50  ;;  %v5271_v62 = vsub.f32 %v221_v36, %v321_v51  ;;  %v8187_v1 = vmov 0 }
  0x14   :  { %57 = vst [vmem:[#allocation3 + $0x250] sm:$0xff] %v46_v34  ;;  %58 = vst [vmem:[#allocation3 + $0x258] sm:$0xff] %v46_v34  ;;  %v5273_v63 = vsub.f32 %v209_v37, %v318_v52  ;;  %v5409_v19 = vsub.s32 5, %v5139_v2  ;;  %v5412_v20 = vsub.s32 4, %v5139_v2  ;;  %v5453_v35 = vsub.s32 7, %v5139_v2 }
  0x15   :  { %59 = vst [vmem:[#allocation3 + $0x260] sm:$0xff] %v46_v34  ;;  %60 = vst [vmem:[#allocation3 + $0x268] sm:$0xff] %v46_v34  ;;  %v5275_v0 = vsub.f32 %v217_v40, %v320_v56  ;;  %v351_v9 = vpack.c.bf16 %v5269_v61, %v5269_v61  ;;  %v353_v13 = vpack.c.bf16 %v5271_v62, %v5271_v62  ;;  %v5456_v36 = vsub.s32 6, %v5139_v2 }
  0x16   :  { %61 = vst [vmem:[#allocation3 + $0x270] sm:$0xff] %v46_v34  ;;  %62 = vst [vmem:[#allocation3 + $0x278] sm:$0xff] %v46_v34  ;;  %v1093_v3 = vld [vmem:[#allocation3 + $0x208] sm:$0x1]  ;;  %v1090_v5 = vld [vmem:[#allocation3 + $0x200] sm:$0x1]  ;;  %v350_v14 = vpack.c.bf16 %v5273_v63, %v5273_v63  ;;  %v131_v50 = vrot.slane %v5144_v6, %v5173_v27  ;;  %v123_v56 = vrot.slane %v5144_v6, %v5158_v15 }
  0x17   :  { %vm4568_vm7 = vmpackc.low %vm1341_vm5, %vm1325_vm3  ;;  %v1099_v4 = vld [vmem:[#allocation3 + $0x218] sm:$0x1]  ;;  %v1096_v8 = vld [vmem:[#allocation3 + $0x210] sm:$0x1]  ;;  %v352_v17 = vpack.c.bf16 %v5275_v0, %v5275_v0  ;;  %v1142_v21 = vshll.u32 %v351_v9, 16  ;;  %v1148_v24 = vshll.u32 %v353_v13, 16 }
  0x18   :  { %4569 = vmatprep.mubr.msk.bf16.mxu0 %vm4568_vm7, %v5110_v48  ;;  %vm4600_vm10 = vmpackc.low %vm1343_vm8, %vm1327_vm6  ;;  %v1139_v30 = vshll.u32 %v350_v14, 16  ;;  %v5651_v63 = vadd.s32 64, %v5139_v2  ;;  %v5733_v0 = vadd.s32 72, %v5139_v2 }
  0x19   :  { %vm488_vm11 = vmand %vm5193_vm4, %vm5217_vm9  ;;  %4601 = vmatprep.mubr.msk.bf16.mxu1 %vm4600_vm10, %v5110_v48  ;;  %vm1391_vm9 = vcmp.eq.s32.totalorder %v5225_v46, %v5170_v26 }
  0x1a   :  { %v5244_v53 = vsel %vm488_vm11, %v4841_v31, 4294967295  ;;  %v1145_v31 = vshll.u32 %v352_v17, 16 }
  0x1b   :  { %v5255_v57 = vrot.slane %v5244_v53, %v5147_v7  ;;  %v5259_v58 = vrot.slane %v5244_v53, %v5150_v12  ;;  %v5263_v59 = vrot.slane %v5244_v53, %v5158_v15  ;;  %v5267_v60 = vrot.slane %v5244_v53, %v5173_v27 }
  0x1c   :  { %v5437_v23 = vrot.slane %v5244_v53, %v5409_v19  ;;  %v5441_v33 = vrot.slane %v5244_v53, %v5412_v20  ;;  %v5492_v52 = vrot.slane %v5244_v53, %v5456_v36 }
  0x1d   :  { %vm576_vm12 = vcmp.eq.s32.totalorder %v5139_v2, %v5255_v57  ;;  %vm592_vm13 = vcmp.eq.s32.totalorder %v5167_v25, %v5255_v57  ;;  %vm578_vm14 = vcmp.eq.s32.totalorder %v5139_v2, %v5259_v58  ;;  %vm594_vm15 = vcmp.eq.s32.totalorder %v5167_v25, %v5259_v58 }
  0x1e   :  { %vm575_vm0 = vcmp.eq.s32.totalorder %v5139_v2, %v5263_v59  ;;  %vm591_vm1 = vcmp.eq.s32.totalorder %v5167_v25, %v5263_v59  ;;  %vm577_vm2 = vcmp.eq.s32.totalorder %v5139_v2, %v5267_v60  ;;  %vm593_vm3 = vcmp.eq.s32.totalorder %v5167_v25, %v5267_v60  ;;  %vm4955_vm4 = vmpackc.low %vm592_vm13, %vm576_vm12 }
  0x1f   :  { %4956 = vmatprep.subr.msk.bf16.mxu0 %vm4955_vm4, %v5110_v48  ;;  %vm4957_vm5 = vmpackc.low %vm594_vm15, %vm578_vm14  ;;  %vm608_vm6 = vcmp.eq.s32.totalorder %v5176_v28, %v5255_v57  ;;  %vm624_vm7 = vcmp.eq.s32.totalorder %v5222_v45, %v5255_v57  ;;  %vm610_vm8 = vcmp.eq.s32.totalorder %v5176_v28, %v5259_v58  ;;  %vm626_vm11 = vcmp.eq.s32.totalorder %v5222_v45, %v5259_v58 }
  0x20   :  { %4958 = vmatprep.subr.msk.bf16.mxu1 %vm4957_vm5, %v5110_v48  ;;  %vm4959_vm10 = vmpackc.low %vm591_vm1, %vm575_vm0  ;;  %vm607_vm12 = vcmp.eq.s32.totalorder %v5176_v28, %v5263_v59  ;;  %vm1087_vm13 = vcmask 1040384   ;;  %vm1088_vm14 = vsmask.f32 256  ;;  %vm623_vm4 = vcmp.eq.s32.totalorder %v5222_v45, %v5263_v59 }
  0x21   :  { %4960 = vmatpush1.bf16.xpose.msk.msra.mxu0 %vm4959_vm10, %v5110_v48  ;;  %vm4961_vm15 = vmpackc.low %vm593_vm3, %vm577_vm2  ;;  %vm609_vm0 = vcmp.eq.s32.totalorder %v5176_v28, %v5267_v60  ;;  %vm625_vm1 = vcmp.eq.s32.totalorder %v5222_v45, %v5267_v60  ;;  %vm640_vm10 = vcmp.eq.s32.totalorder %v5225_v46, %v5255_v57  ;;  %vm656_vm3 = vcmp.eq.s32.totalorder %v5238_v49, %v5255_v57 }
  0x22   :  { %4962 = vmatpush1.bf16.xpose.msk.msra.mxu1 %vm4961_vm15, %v5110_v48  ;;  %vm4963_vm5 = vmpackc.low %vm624_vm7, %vm608_vm6  ;;  %vm642_vm15 = vcmp.eq.s32.totalorder %v5225_v46, %v5259_v58  ;;  %vm658_vm6 = vcmp.eq.s32.totalorder %v5238_v49, %v5259_v58  ;;  %vm672_vm7 = vcmp.eq.s32.totalorder %v5247_v54, %v5255_v57 }
  0x23   :  { %4964 = vmatprep.subr.msk.bf16.mxu0 %vm4963_vm5, %v5110_v48  ;;  %vm4965_vm2 = vmpackc.low %vm626_vm11, %vm610_vm8  ;;  %vm655_vm5 = vcmp.eq.s32.totalorder %v5238_v49, %v5263_v59 }
  0x24   :  { %4966 = vmatprep.subr.msk.bf16.mxu1 %vm4965_vm2, %v5110_v48  ;;  %vm4967_vm2 = vmpackc.low %vm623_vm4, %vm607_vm12  ;;  %vm688_vm12 = vcmp.eq.s32.totalorder %v5250_v55, %v5255_v57  ;;  %vm674_vm4 = vcmp.eq.s32.totalorder %v5247_v54, %v5259_v58  ;;  %v5505_v57 = vrot.slane %v131_v50, %v5158_v15 }
  0x25   :  { %vm4969_vm8 = vmpackc.low %vm625_vm1, %vm609_vm0  ;;  %vm690_vm0 = vcmp.eq.s32.totalorder %v5250_v55, %v5259_v58  ;;  %vm671_vm1 = vcmp.eq.s32.totalorder %v5247_v54, %v5263_v59 }
  0x26   :  { %vm4971_vm11 = vmpackc.low %vm656_vm3, %vm640_vm10  ;;  %vm687_vm10 = vcmp.eq.s32.totalorder %v5250_v55, %v5263_v59 }
  0x27   :  { %vm5373_vm3 = vmand %vm1087_vm13, %vm1088_vm14  ;;  %vm8189_vm14 = vcmp.eq.s32.totalorder %v5225_v46, %v5263_v59 }
  0x28   :  { %v8188_v1 = vsel %vm5373_vm3, 4294967295, %v8187_v1  ;;  %v1094_v10 = vsel %vm5373_vm3, %v5203_v41, %v1093_v3  ;;  %v1100_v11 = vsel %vm5373_vm3, %v5205_v42, %v1099_v4  ;;  %v1091_v16 = vsel %vm5373_vm3, %v5207_v43, %v1090_v5  ;;  %v1105_v5 = vld [vmem:[#allocation3 + $0x228] sm:$0x1] }
  0x29   :  { %4968 = vmatpush1.bf16.xpose.msk.msra.mxu0 %vm4967_vm2, %v5110_v48  ;;  %vm4973_vm2 = vmpackc.low %vm658_vm6, %vm642_vm15  ;;  %vm673_vm15 = vcmp.eq.s32.totalorder %v5247_v54, %v5267_v60  ;;  %vm689_vm6 = vcmp.eq.s32.totalorder %v5250_v55, %v5267_v60  ;;  %1095 = vst [vmem:[#allocation3 + $0x208] sm:$0x1] %v1094_v10  ;;  %v1097_v18 = vsel %vm5373_vm3, %v5227_v47, %v1096_v8  ;;  %v1102_v8 = vld [vmem:[#allocation3 + $0x220] sm:$0x1] }
  0x2a   :  { %4970 = vmatpush1.bf16.xpose.msk.msra.mxu1 %vm4969_vm8, %v5110_v48  ;;  %4972 = vmatprep.subr.msk.bf16.mxu0 %vm4971_vm11, %v5110_v48  ;;  %1101 = vst [vmem:[#allocation3 + $0x218] sm:$0x1] %v1100_v11  ;;  %vm4975_vm8 = vmpackc.low %vm655_vm5, %vm8189_vm14  ;;  %vm8190_vm11 = vcmp.eq.s32.totalorder %v5225_v46, %v5267_v60  ;;  %v5477_v47 = vrot.slane %v5244_v53, %v5453_v35 }
  0x2b   :  { %4974 = vmatprep.subr.msk.bf16.mxu1 %vm4973_vm2, %v5110_v48  ;;  %1092 = vst [vmem:[#allocation3 + $0x200] sm:$0x1] %v1091_v16  ;;  %vm8191_vm2 = vcmp.eq.s32.totalorder %v5238_v49, %v5267_v60  ;;  %vm4979_vm14 = vmpackc.low %vm688_vm12, %vm672_vm7  ;;  %vm580_vm12 = vcmp.eq.s32.totalorder %v5139_v2, %v5437_v23  ;;  %v5508_v53 = vrot.slane %v123_v56, %v5158_v15 }
  0x2c   :  { %vm4977_vm5 = vmpackc.low %vm8191_vm2, %vm8190_vm11  ;;  %1098 = vst [vmem:[#allocation3 + $0x210] sm:$0x1] %v1097_v18  ;;  %v229_v3 = vrot.slane %v5179_v29, %v5409_v19  ;;  %v225_v4 = vrot.slane %v5179_v29, %v5412_v20  ;;  %v237_v11 = vrot.slane %v5179_v29, %v5453_v35 }
  0x2d   :  { %vm4981_vm11 = vmpackc.low %vm690_vm0, %vm674_vm4  ;;  %vm596_vm4 = vcmp.eq.s32.totalorder %v5167_v25, %v5437_v23 }
  0x2e   :  { %vm4983_vm2 = vmpackc.low %vm687_vm10, %vm671_vm1  ;;  %vm582_vm10 = vcmp.eq.s32.totalorder %v5139_v2, %v5477_v47  ;;  %v307_v9 = vpack.c.bf16 %v229_v3, %v229_v3  ;;  %v306_v10 = vpack.c.bf16 %v225_v4, %v225_v4 }
  0x2f   :  { %vm4985_vm1 = vmpackc.low %vm689_vm6, %vm673_vm15  ;;  %vm598_vm15 = vcmp.eq.s32.totalorder %v5167_v25, %v5477_v47 }
  0x30   :  { %v1207_v37 = vld [vmem:[#allocation3 + $0x208] sm:$0x1]  ;;  %vm4989_vm6 = vmpackc.low %vm598_vm15, %vm582_vm10  ;;  %vm1375_vm10 = vcmp.eq.s32.totalorder %v5222_v45, %v5170_v26  ;;  %vm1389_vm15 = vcmp.eq.s32.totalorder %v5225_v46, %v5164_v22  ;;  %v323_v14 = vunpack.c.l.bf16 %v307_v9  ;;  %v1106_v16 = vsel %vm5373_vm3, %v307_v9, %v1105_v5 }
  0x31   :  { %4976 = vmatpush1.bf16.xpose.msk.msra.mxu0 %vm4975_vm8, %v5110_v48  ;;  %vm1202_vm8 = vsmask.f32 7938  ;;  %v1213_v38 = vld [vmem:[#allocation3 + $0x218] sm:$0x1]  ;;  %v322_v17 = vunpack.c.l.bf16 %v306_v10  ;;  %v1103_v18 = vsel %vm5373_vm3, %v306_v10, %v1102_v8  ;;  %1107 = vst [vmem:[#allocation3 + $0x228] sm:$0x1] %v1106_v16  ;;  %v143_v16 = vrot.slane %v5144_v6, %v5409_v19 }
  0x32   :  { %4978 = vmatpush1.bf16.xpose.msk.msra.mxu1 %vm4977_vm5, %v5110_v48  ;;  %4980 = vmatprep.subr.msk.bf16.mxu0 %vm4979_vm14, %v5110_v48  ;;  %vm5444_vm7 = vmand %vm1087_vm13, %vm1202_vm8  ;;  %v1204_v41 = vld [vmem:[#allocation3 + $0x200] sm:$0x1]  ;;  %vm1324_vm14 = vcmp.eq.s32.totalorder %v5139_v2, %v5508_v53  ;;  %vm1340_vm8 = vcmp.eq.s32.totalorder %v5167_v25, %v5508_v53  ;;  %vm1342_vm5 = vcmp.eq.s32.totalorder %v5167_v25, %v5505_v57 }
  0x33   :  { %4982 = vmatprep.subr.msk.bf16.mxu1 %vm4981_vm11, %v5110_v48  ;;  %v1208_v39 = vsel %vm5444_vm7, %v1142_v21, %v1207_v37  ;;  %v1214_v40 = vsel %vm5444_vm7, %v1148_v24, %v1213_v38  ;;  %v1205_v42 = vsel %vm5444_vm7, %v1139_v30, %v1204_v41  ;;  %v1210_v43 = vld [vmem:[#allocation3 + $0x210] sm:$0x1]  ;;  %vm1359_vm11 = vcmp.eq.s32.totalorder %v5176_v28, %v5170_v26  ;;  %vm4570_vm0 = vmpackc.low %vm1340_vm8, %vm1324_vm14  ;;  %v1111_v21 = vld [vmem:[#allocation3 + $0x238] sm:$0x1] }
  0x34   :  { %1209 = vst [vmem:[#allocation3 + $0x208] sm:$0x1] %v1208_v39  ;;  %1215 = vst [vmem:[#allocation3 + $0x218] sm:$0x1] %v1214_v40  ;;  %v1211_v51 = vsel %vm5444_vm7, %v1145_v31, %v1210_v43  ;;  %vm1358_vm13 = vcmp.eq.s32.totalorder %v5176_v28, %v5505_v57  ;;  %vm8199_vm8 = vcmp.eq.s32.totalorder %v5167_v25, %v5492_v52  ;;  %v5826_v37 = vadd.s32 80, %v5139_v2 }
  0x35   :  { %1206 = vst [vmem:[#allocation3 + $0x200] sm:$0x1] %v1205_v42  ;;  %1212 = vst [vmem:[#allocation3 + $0x210] sm:$0x1] %v1211_v51  ;;  %v309_v24 = vpack.c.bf16 %v237_v11, %v237_v11  ;;  %v233_v30 = vrot.slane %v5179_v29, %v5456_v36  ;;  %v339_v38 = vsub.f32 %v229_v3, %v323_v14  ;;  %v1108_v40 = vld [vmem:[#allocation3 + $0x230] sm:$0x1] }
  0x36   :  { %1104 = vst [vmem:[#allocation3 + $0x220] sm:$0x1] %v1103_v18  ;;  %v338_v39 = vsub.f32 %v225_v4, %v322_v17  ;;  %v5839_v41 = vadd.s32 88, %v5139_v2  ;;  %v5930_v18 = vadd.s32 96, %v5139_v2 }
  0x37   :  { %v325_v42 = vunpack.c.l.bf16 %v309_v24  ;;  %v1112_v43 = vsel %vm5373_vm3, %v309_v24, %v1111_v21  ;;  %v355_v50 = vpack.c.bf16 %v339_v38, %v339_v38  ;;  %v5943_v24 = vadd.s32 104, %v5139_v2 }
  0x38   :  { %v354_v51 = vpack.c.bf16 %v338_v39, %v338_v39  ;;  %1113 = vst [vmem:[#allocation3 + $0x238] sm:$0x1] %v1112_v43  ;;  %v4953_v43 = vld [vmem:[%s8153_s2] sm:$0xff] }
  0x39   :  { %4984 = vmatpush1.bf16.xpose.msk.msra.mxu0 %vm4983_vm2, %v5110_v48  ;;  %vm4987_vm2 = vmpackc.low %vm596_vm4, %vm580_vm12  ;;  %vm1357_vm12 = vcmp.eq.s32.totalorder %v5176_v28, %v5164_v22  ;;  %vm1356_vm4 = vcmp.eq.s32.totalorder %v5176_v28, %v5508_v53  ;;  %v341_v56 = vsub.f32 %v237_v11, %v325_v42  ;;  %v151_v42 = vrot.slane %v5144_v6, %v5453_v35 }
  0x3a   :  { %4986 = vmatpush1.bf16.xpose.msk.msra.mxu1 %vm4985_vm1, %v5110_v48  ;;  %vm1326_vm1 = vcmp.eq.s32.totalorder %v5139_v2, %v5505_v57  ;;  %v1151_v62 = vshll.u32 %v354_v51, 16 }
  0x3b   :  { %v2301_v58 = vld [vmem:[#allocation3 + $0x208] sm:$0xff]  ;;  %v2303_v59 = vld [vmem:[#allocation3 + $0x218] sm:$0xff] }
  0x3c   :  { %2324 = vmatprep.subr.bf16.mxu0 %v2301_v58  ;;  %2421 = vmatprep.subr.bf16.mxu1 %v2303_v59  ;;  %v2300_v60 = vld [vmem:[#allocation3 + $0x200] sm:$0xff]  ;;  %v2302_v61 = vld [vmem:[#allocation3 + $0x210] sm:$0xff] }
  0x3d   :  { %v1216_v5 = vld [vmem:[#allocation3 + $0x220] sm:$0x1] }
  0x3e   :  { %v1217_v11 = vsel %vm5444_vm7, %v1151_v62, %v1216_v5  ;;  %v6032_v5 = vrot.slane %v151_v42, %v5158_v15  ;;  %v1117_v42 = vld [vmem:[#allocation3 + $0x248] sm:$0x1] }
  0x3f   :  { %1218 = vst [vmem:[#allocation3 + $0x220] sm:$0x1] %v1217_v11 }
  0x41   :  { %2325 = vmatpush1.bf16.xpose.msra.mxu0 %v2300_v60  ;;  %v5861_v60 = vld [vmem:[%s8151_s0 + $0x8] sm:$0xff] }
  0x42   :  { %2422 = vmatpush1.bf16.xpose.msra.mxu1 %v2302_v61  ;;  %4988 = vmatprep.subr.msk.bf16.mxu0 %vm4987_vm2, %v5110_v48  ;;  %vm1373_vm2 = vcmp.eq.s32.totalorder %v5222_v45, %v5164_v22  ;;  %v1154_v61 = vshll.u32 %v355_v50, 16  ;;  %v491_v8 = vmul.f32 64.0, %v5861_v60 }
  0x43   :  { %4990 = vmatprep.subr.msk.bf16.mxu1 %vm4989_vm6, %v5110_v48  ;;  %vm4602_vm6 = vmpackc.low %vm1342_vm5, %vm1326_vm1  ;;  %vm8196_vm5 = vcmp.eq.s32.totalorder %v5139_v2, %v5441_v33 }
  0x44   :  { %vm5565_vm14 = vmpackc.low %vm1373_vm2, %vm1357_vm12  ;;  %vm8198_vm2 = vcmp.eq.s32.totalorder %v5139_v2, %v5492_v52  ;;  %v493_v21 = vfloor.f32 %v491_v8 }
  0x45   :  { %vm4604_vm1 = vmpackc.low %vm1375_vm10, %vm1359_vm11  ;;  %vm8203_vm10 = vcmp.eq.s32.totalorder %v5176_v28, %v5477_v47 }
  0x46   :  { %vm4993_vm12 = vmpackc.low %vm8199_vm8, %vm8198_vm2  ;;  %vm8201_vm8 = vcmp.eq.s32.totalorder %v5222_v45, %v5437_v23  ;;  %v495_v39 = vmax.f32 %v493_v21, 0.0 }
  0x48   :  { %4571 = vmatmul.mubr.msk.bf16.vlgmr.msra.gmra.mrb[0].mxu0 %vm4570_vm0, %v5110_v48  ;;  %vm8197_vm0 = vcmp.eq.s32.totalorder %v5167_v25, %v5441_v33 }
  0x49   :  { %4603 = vmatmul.mubr.msk.bf16.vlgmr.msra.gmra.mrb[0].mxu1 %vm4602_vm6, %v5110_v48  ;;  %vm4991_vm11 = vmpackc.low %vm8197_vm0, %vm8196_vm5  ;;  %4573 = vmatprep.mubr.msk.bf16.mxu0 %vm5565_vm14, %v5110_v48  ;;  %vm646_vm6 = vcmp.eq.s32.totalorder %v5225_v46, %v5477_v47  ;;  %vm8200_vm0 = vcmp.eq.s32.totalorder %v5176_v28, %v5437_v23  ;;  %vm8206_vm14 = vcmp.eq.s32.totalorder %v5238_v49, %v5164_v22 }
  0x4a   :  { %4992 = vmatpush1.bf16.xpose.msk.msra.mxu0 %vm4991_vm11, %v5110_v48  ;;  %4994 = vmatpush1.bf16.xpose.msk.msra.mxu1 %vm4993_vm12, %v5110_v48  ;;  %vm4995_vm2 = vmpackc.low %vm8201_vm8, %vm8200_vm0  ;;  %vm8202_vm12 = vcmp.eq.s32.totalorder %v5222_v45, %v5508_v53  ;;  %vm8204_vm0 = vcmp.eq.s32.totalorder %v5222_v45, %v5477_v47 }
  0x4b   :  { %4605 = vmatprep.mubr.msk.bf16.mxu1 %vm4604_vm1, %v5110_v48  ;;  %4996 = vmatprep.subr.msk.bf16.mxu0 %vm4995_vm2, %v5110_v48  ;;  %vm4574_vm11 = vmpackc.low %vm8202_vm12, %vm1356_vm4  ;;  %vm1407_vm1 = vcmp.eq.s32.totalorder %v5238_v49, %v5170_v26  ;;  %vm8205_vm4 = vcmp.eq.s32.totalorder %v5222_v45, %v5505_v57  ;;  %vm8212_vm2 = vcmp.eq.s32.totalorder %v5238_v49, %v5437_v23 }
  0x4c   :  { %vm4997_vm8 = vmpackc.low %vm8204_vm0, %vm8203_vm10  ;;  %vm1388_vm0 = vcmp.eq.s32.totalorder %v5225_v46, %v5508_v53 }
  0x4d   :  { %4998 = vmatprep.subr.msk.bf16.mxu1 %vm4997_vm8, %v5110_v48  ;;  %vm4606_vm12 = vmpackc.low %vm8205_vm4, %vm1358_vm13  ;;  %vm1390_vm4 = vcmp.eq.s32.totalorder %v5225_v46, %v5505_v57  ;;  %vm8210_vm8 = vcmp.eq.s32.totalorder %v5222_v45, %v5492_v52  ;;  %vm8211_vm13 = vcmp.eq.s32.totalorder %v5225_v46, %v5437_v23 }
  0x4e   :  { %vm4576_vm5 = vmpackc.low %vm8206_vm14, %vm1389_vm15  ;;  %vm8208_vm14 = vcmp.eq.s32.totalorder %v5222_v45, %v5441_v33 }
  0x4f   :  { %vm4608_vm10 = vmpackc.low %vm1407_vm1, %vm1391_vm9  ;;  %vm8207_vm9 = vcmp.eq.s32.totalorder %v5176_v28, %v5441_v33  ;;  %vm1404_vm1 = vcmp.eq.s32.totalorder %v5238_v49, %v5508_v53 }
  0x50   :  { %4575 = vmatmul.mubr.msk.bf16.gmra.mrb[4].mxu0 %vm4574_vm11, %v5110_v48  ;;  %vm4999_vm11 = vmpackc.low %vm8208_vm14, %vm8207_vm9  ;;  %vm678_vm9 = vcmp.eq.s32.totalorder %v5247_v54, %v5477_v47 }
  0x51   :  { %4607 = vmatmul.mubr.msk.bf16.gmra.mrb[4].mxu1 %vm4606_vm12, %v5110_v48  ;;  %4577 = vmatprep.mubr.msk.bf16.mxu0 %vm4576_vm5, %v5110_v48  ;;  %vm1406_vm12 = vcmp.eq.s32.totalorder %v5238_v49, %v5505_v57  ;;  %vm1423_vm5 = vcmp.eq.s32.totalorder %v5247_v54, %v5170_v26  ;;  %vm5003_vm14 = vmpackc.low %vm8212_vm2, %vm8211_vm13  ;;  %vm694_vm2 = vcmp.eq.s32.totalorder %v5250_v55, %v5477_v47 }
  0x52   :  { %5000 = vmatpush1.bf16.xpose.msk.msra.mxu0 %vm4999_vm11, %v5110_v48  ;;  %4609 = vmatprep.mubr.msk.bf16.mxu1 %vm4608_vm10, %v5110_v48  ;;  %vm8209_vm11 = vcmp.eq.s32.totalorder %v5176_v28, %v5492_v52  ;;  %vm1439_vm10 = vcmp.eq.s32.totalorder %v5250_v55, %v5170_v26 }
  0x53   :  { %vm5001_vm15 = vmpackc.low %vm8210_vm8, %vm8209_vm11  ;;  %5004 = vmatprep.subr.msk.bf16.mxu0 %vm5003_vm14, %v5110_v48  ;;  %vm8215_vm14 = vcmp.eq.s32.totalorder %v5250_v55, %v5164_v22 }
  0x54   :  { %5002 = vmatpush1.bf16.xpose.msk.msra.mxu1 %vm5001_vm15, %v5110_v48  ;;  %vm4578_vm8 = vmpackc.low %vm1404_vm1, %vm1388_vm0  ;;  %vm8213_vm15 = vcmp.eq.s32.totalorder %v5238_v49, %v5477_v47  ;;  %vm8214_vm1 = vcmp.eq.s32.totalorder %v5247_v54, %v5164_v22  ;;  %v308_v47 = vpack.c.bf16 %v233_v30, %v233_v30 }
  0x55   :  { %vm5005_vm11 = vmpackc.low %vm8213_vm15, %vm646_vm6  ;;  %vm8218_vm6 = vcmp.eq.s32.totalorder %v5225_v46, %v5492_v52 }
  0x56   :  { %5006 = vmatprep.subr.msk.bf16.mxu1 %vm5005_vm11, %v5110_v48  ;;  %vm4610_vm0 = vmpackc.low %vm1406_vm12, %vm1390_vm4  ;;  %vm1420_vm4 = vcmp.eq.s32.totalorder %v5247_v54, %v5508_v53  ;;  %vm1436_vm12 = vcmp.eq.s32.totalorder %v5250_v55, %v5508_v53  ;;  %v324_v58 = vunpack.c.l.bf16 %v308_v47  ;;  %v1109_v59 = vsel %vm5373_vm3, %v308_v47, %v1108_v40 }
  0x57   :  { %vm4580_vm15 = vmpackc.low %vm8215_vm14, %vm8214_vm1  ;;  %vm1469_vm1 = vcmp.eq.s32.totalorder %v5733_v0, %v5164_v22  ;;  %1110 = vst [vmem:[#allocation3 + $0x230] sm:$0x1] %v1109_v59  ;;  %v139_v40 = vrot.slane %v5144_v6, %v5412_v20  ;;  %v147_v47 = vrot.slane %v4953_v43, %v5456_v36  ;;  %v497_v6 = vmin.f32 %v495_v39, 63.0  ;;  %v1114_v43 = vld [vmem:[#allocation3 + $0x240] sm:$0x1] }
  0x58   :  { %vm4612_vm11 = vmpackc.low %vm1439_vm10, %vm1423_vm5  ;;  %4579 = vmatmul.mubr.msk.bf16.gmra.mrb[8].mxu0 %vm4578_vm8, %v5110_v48  ;;  %vm1422_vm5 = vcmp.eq.s32.totalorder %v5247_v54, %v5505_v57  ;;  %vm1438_vm10 = vcmp.eq.s32.totalorder %v5250_v55, %v5505_v57  ;;  %vm8216_vm8 = vcmp.eq.s32.totalorder %v5225_v46, %v5441_v33  ;;  %v340_v3 = vsub.f32 %v233_v30, %v324_v58  ;;  %v1225_v30 = vld [vmem:[#allocation3 + $0x238] sm:$0x1]  ;;  %v1120_v59 = vld [vmem:[#allocation3 + $0x250] sm:$0x1] }
  0x59   :  { %4611 = vmatmul.mubr.msk.bf16.gmra.mrb[8].mxu1 %vm4610_vm0, %v5110_v48  ;;  %4581 = vmatprep.mubr.msk.bf16.mxu0 %vm4580_vm15, %v5110_v48  ;;  %vm8217_vm0 = vcmp.eq.s32.totalorder %v5238_v49, %v5441_v33  ;;  %v6002_v58 = vadd.s32 112, %v5139_v2  ;;  %v4842_v62 = vtrunc.f32 %v497_v6  ;;  %v6035_v8 = vrot.slane %v147_v47, %v5158_v15  ;;  %v1123_v6 = vld [vmem:[#allocation3 + $0x258] sm:$0x1] }
  0x5a   :  { %4613 = vmatprep.mubr.msk.bf16.mxu1 %vm4612_vm11, %v5110_v48  ;;  %vm5007_vm14 = vmpackc.low %vm8217_vm0, %vm8216_vm8  ;;  %vm8219_vm11 = vcmp.eq.s32.totalorder %v5238_v49, %v5492_v52  ;;  %vm1471_vm8 = vcmp.eq.s32.totalorder %v5733_v0, %v5170_v26  ;;  %vm8220_vm0 = vcmp.eq.s32.totalorder %v5247_v54, %v5437_v23  ;;  %v356_v14 = vpack.c.bf16 %v340_v3, %v340_v3 }
  0x5b   :  { %5008 = vmatpush1.bf16.xpose.msk.msra.mxu0 %vm5007_vm14, %v5110_v48  ;;  %vm5009_vm13 = vmpackc.low %vm8219_vm11, %vm8218_vm6  ;;  %vm8221_vm14 = vcmp.eq.s32.totalorder %v5250_v55, %v5437_v23  ;;  %vm1470_vm11 = vcmp.eq.s32.totalorder %v5733_v0, %v5505_v57  ;;  %8248 = vst [vmem:[#allocation7_spill] sm:$0xff] %v6002_v58  ;;  %v6025_v3 = vrot.slane %v139_v40, %v5158_v15 }
  0x5c   :  { %5010 = vmatpush1.bf16.xpose.msk.msra.mxu1 %vm5009_vm13, %v5110_v48  ;;  %vm5011_vm15 = vmpackc.low %vm8221_vm14, %vm8220_vm0  ;;  %vm8233_vm0 = vcmp.eq.s32.totalorder %v5250_v55, %v5441_v33  ;;  %v1157_v31 = vshll.u32 %v356_v14, 16 }
  0x5d   :  { %5012 = vmatprep.subr.msk.bf16.mxu0 %vm5011_vm15, %v5110_v48  ;;  %vm5788_vm13 = vmpackc.low %vm1436_vm12, %vm1420_vm4  ;;  %vm8229_vm12 = vcmp.eq.s32.totalorder %v5651_v63, %v5170_v26  ;;  %vm1454_vm15 = vcmp.eq.s32.totalorder %v5651_v63, %v5505_v57 }
  0x5e   :  { %vm5013_vm6 = vmpackc.low %vm694_vm2, %vm678_vm9  ;;  %vm8226_vm9 = vcmp.eq.s32.totalorder %v5651_v63, %v5164_v22  ;;  %v1222_v29 = vld [vmem:[#allocation3 + $0x230] sm:$0x1] }
  0x5f   :  { %5014 = vmatprep.subr.msk.bf16.mxu1 %vm5013_vm6, %v5110_v48  ;;  %vm5809_vm4 = vmpackc.low %vm1438_vm10, %vm1422_vm5  ;;  %vm1452_vm10 = vcmp.eq.s32.totalorder %v5651_v63, %v5508_v53  ;;  %vm1501_vm6 = vcmp.eq.s32.totalorder %v5839_v41, %v5164_v22  ;;  %v1223_v50 = vsel %vm5444_vm7, %v1157_v31, %v1222_v29 }
  0x60   :  { %vm5821_vm2 = vmpackc.low %vm1469_vm1, %vm8226_vm9  ;;  %4583 = vmatmul.mubr.msk.bf16.gmra.mrb[12].mxu0 %vm5788_vm13, %v5110_v48  ;;  %vm1468_vm1 = vcmp.eq.s32.totalorder %v5733_v0, %v5508_v53  ;;  %vm1485_vm13 = vcmp.eq.s32.totalorder %v5826_v37, %v5164_v22  ;;  %vm8235_vm9 = vcmp.eq.s32.totalorder %v5250_v55, %v5492_v52  ;;  %1224 = vst [vmem:[#allocation3 + $0x230] sm:$0x1] %v1223_v50 }
  0x61   :  { %vm5834_vm5 = vmpackc.low %vm1471_vm8, %vm8229_vm12  ;;  %4615 = vmatmul.mubr.msk.bf16.gmra.mrb[12].mxu1 %vm5809_vm4, %v5110_v48  ;;  %4585 = vmatprep.mubr.msk.bf16.mxu0 %vm5821_vm2, %v5110_v48  ;;  %vm8232_vm8 = vcmp.eq.s32.totalorder %v5247_v54, %v5441_v33  ;;  %vm8234_vm4 = vcmp.eq.s32.totalorder %v5247_v54, %v5492_v52  ;;  %v357_v33 = vpack.c.bf16 %v341_v56, %v341_v56  ;;  %v1219_v52 = vld [vmem:[#allocation3 + $0x228] sm:$0x1] }
  0x62   :  { %4617 = vmatprep.mubr.msk.bf16.mxu1 %vm5834_vm5, %v5110_v48  ;;  %vm5015_vm14 = vmpackc.low %vm8233_vm0, %vm8232_vm8  ;;  %vm1487_vm5 = vcmp.eq.s32.totalorder %v5826_v37, %v5170_v26  ;;  %vm1503_vm8 = vcmp.eq.s32.totalorder %v5839_v41, %v5170_v26  ;;  %v1220_v10 = vsel %vm5444_vm7, %v1154_v61, %v1219_v52  ;;  %vm369_vm0 = vcmp.le.f32.partialorder %v5861_v60, 1.0  ;;  %v2304_v52 = vld [vmem:[#allocation3 + $0x220] sm:$0xff] }
  0x63   :  { %5016 = vmatpush1.bf16.xpose.msk.msra.mxu0 %vm5015_vm14, %v5110_v48  ;;  %vm5017_vm2 = vmpackc.low %vm8235_vm9, %vm8234_vm4  ;;  %v1160_v13 = vshll.u32 %v357_v33, 16  ;;  %1221 = vst [vmem:[#allocation3 + $0x228] sm:$0x1] %v1220_v10  ;;  %vm1484_vm14 = vcmp.eq.s32.totalorder %v5826_v37, %v5508_v53  ;;  %vm1502_vm4 = vcmp.eq.s32.totalorder %v5839_v41, %v5505_v57  ;;  %v6019_v61 = vadd.s32 120, %v5139_v2 }
  0x64   :  { %5018 = vmatpush1.bf16.xpose.msk.msra.mxu1 %vm5017_vm2, %v5110_v48  ;;  %vm5894_vm12 = vmpackc.low %vm1468_vm1, %vm1452_vm10  ;;  %v6022_v33 = vrot.slane %v143_v16, %v5158_v15  ;;  %v4843_v10 = vcvt.f32.s32 %v4842_v62 }
  0x65   :  { %vm5909_vm10 = vmpackc.low %vm1470_vm11, %vm1454_vm15  ;;  %vm367_vm11 = vcmp.ge.f32.partialorder %v5861_v60, 0.0  ;;  %v1226_v38 = vsel %vm5444_vm7, %v1160_v13, %v1225_v30 }
  0x66   :  { %vm5925_vm1 = vmpackc.low %vm1501_vm6, %vm1485_vm13  ;;  %vm1500_vm13 = vcmp.eq.s32.totalorder %v5839_v41, %v5508_v53  ;;  %vm1486_vm6 = vcmp.eq.s32.totalorder %v5826_v37, %v5505_v57  ;;  %1227 = vst [vmem:[#allocation3 + $0x238] sm:$0x1] %v1226_v38 }
  0x67   :  { %vm5938_vm15 = vmpackc.low %vm1503_vm8, %vm1487_vm5  ;;  %vm1533_vm5 = vcmp.eq.s32.totalorder %v5943_v24, %v5164_v22  ;;  %v2306_v21 = vld [vmem:[#allocation3 + $0x230] sm:$0xff] }
  0x68   :  { %4587 = vmatmul.mubr.msk.bf16.gmra.mrb[16].mxu0 %vm5894_vm12, %v5110_v48  ;;  %vm5983_vm9 = vmand %vm367_vm11, %vm369_vm0  ;;  %vm1517_vm12 = vcmp.eq.s32.totalorder %v5930_v18, %v5164_v22 }
  0x69   :  { %4619 = vmatmul.mubr.msk.bf16.gmra.mrb[16].mxu1 %vm5909_vm10, %v5110_v48  ;;  %4589 = vmatprep.mubr.msk.bf16.mxu0 %vm5925_vm1, %v5110_v48  ;;  %vm5993_vm2 = vmpackc.low %vm1500_vm13, %vm1484_vm14  ;;  %vm1519_vm10 = vcmp.eq.s32.totalorder %v5930_v18, %v5170_v26  ;;  %vm1535_vm1 = vcmp.eq.s32.totalorder %v5943_v24, %v5170_v26  ;;  %vm1516_vm14 = vcmp.eq.s32.totalorder %v5930_v18, %v5508_v53 }
  0x6a   :  { %4621 = vmatprep.mubr.msk.bf16.mxu1 %vm5938_vm15, %v5110_v48  ;;  %vm6010_vm8 = vmpackc.low %vm1502_vm4, %vm1486_vm6  ;;  %v2305_v4 = vld [vmem:[#allocation3 + $0x228] sm:$0xff]  ;;  %vm8251_vm15 = vnez %v8186_v44  ;;  %vm1532_vm6 = vcmp.eq.s32.totalorder %v5943_v24, %v5508_v53 }
  0x6b   :  { %vm489_vm11 = vmand %vm5983_vm9, %vm8251_vm15  ;;  %2518 = vmatprep.subr.bf16.mxu0 %v2305_v4 }
  0x6c   :  { %vm6043_vm0 = vmpackc.low %vm1533_vm5, %vm1517_vm12  ;;  %vm1534_vm12 = vcmp.eq.s32.totalorder %v5943_v24, %v5505_v57  ;;  %2519 = vmatpush1.bf16.xpose.msra.mxu0 %v2304_v52  ;;  %vm1549_vm5 = vcmp.eq.s32.totalorder %v6002_v58, %v5164_v22  ;;  %v6078_v14 = vsel %vm489_vm11, %v4843_v10, 4294967295 }
  0x6d   :  { %vm6052_vm13 = vmpackc.low %vm1535_vm1, %vm1519_vm10  ;;  %v2307_v13 = vld [vmem:[#allocation3 + $0x238] sm:$0xff]  ;;  %vm1565_vm10 = vcmp.eq.s32.totalorder %v6019_v61, %v5164_v22  ;;  %v6092_v44 = vrot.slane %v6078_v14, %v5147_v7  ;;  %v6096_v16 = vrot.slane %v6078_v14, %v5158_v15  ;;  %v6100_v17 = vrot.slane %v6078_v14, %v5150_v12  ;;  %v66_v22 = vld [vmem:[%s8152_s1 + $0x8] sm:$0xff] }
  0x6e   :  { %2615 = vmatprep.subr.bf16.mxu1 %v2307_v13  ;;  %v6111_v23 = vrot.slane %v6078_v14, %v5173_v27  ;;  %vm4594_vm15 = vmpackc.low %vm1532_vm6, %vm1516_vm14  ;;  %vm8265_vm6 = vcmp.eq.s32.totalorder %v5139_v2, %v6022_v33  ;;  %v6393_v62 = vrot.slane %v6078_v14, %v5409_v19  ;;  %v6397_v4 = vrot.slane %v6078_v14, %v5412_v20 }
  0x6f   :  { %2616 = vmatpush1.bf16.xpose.msra.mxu1 %v2306_v21  ;;  %vm4596_vm14 = vmpackc.low %vm1565_vm10, %vm1549_vm5  ;;  %vm8263_vm5 = vcmp.eq.s32.totalorder %v6002_v58, %v5505_v57 }
  0x70   :  { %4591 = vmatmul.mubr.msk.bf16.gmra.mrb[20].mxu0 %vm5993_vm2, %v5110_v48  ;;  %vm8256_vm2 = vcmp.eq.s32.totalorder %v5930_v18, %v5505_v57 }
  0x71   :  { %4623 = vmatmul.mubr.msk.bf16.gmra.mrb[20].mxu1 %vm6010_vm8, %v5110_v48  ;;  %4593 = vmatprep.mubr.msk.bf16.mxu0 %vm6043_vm0, %v5110_v48  ;;  %vm584_vm0 = vcmp.eq.s32.totalorder %v5139_v2, %v6092_v44  ;;  %vm4626_vm9 = vmpackc.low %vm1534_vm12, %vm8256_vm2  ;;  %vm8257_vm12 = vcmp.eq.s32.totalorder %v6002_v58, %v5170_v26  ;;  %vm8258_vm2 = vcmp.eq.s32.totalorder %v6019_v61, %v5170_v26 }
  0x72   :  { %4625 = vmatprep.mubr.msk.bf16.mxu1 %vm6052_vm13, %v5110_v48  ;;  %vm600_vm13 = vcmp.eq.s32.totalorder %v5167_v25, %v6092_v44  ;;  %vm4628_vm11 = vmpackc.low %vm8258_vm2, %vm8257_vm12  ;;  %vm8259_vm12 = vcmp.eq.s32.totalorder %v5139_v2, %v6100_v17  ;;  %vm8264_vm8 = vcmp.eq.s32.totalorder %v6019_v61, %v5505_v57  ;;  %v201_v26 = vsub.f32 %v5861_v60, %v66_v22 }
  0x73   :  { %vm5019_vm1 = vmpackc.low %vm600_vm13, %vm584_vm0  ;;  %vm1344_vm13 = vcmp.eq.s32.totalorder %v5167_v25, %v6025_v3  ;;  %vm1408_vm2 = vcmp.eq.s32.totalorder %v5238_v49, %v6025_v3 }
  0x74   :  { %5020 = vmatprep.subr.msk.bf16.mxu0 %vm5019_vm1, %v5110_v48  ;;  %vm4630_vm10 = vmpackc.low %vm8264_vm8, %vm8263_vm5  ;;  %vm8267_vm8 = vcmp.eq.s32.totalorder %v5139_v2, %v6032_v5  ;;  %vm8268_vm5 = vcmp.eq.s32.totalorder %v5167_v25, %v6032_v5  ;;  %vm1411_vm1 = vcmp.eq.s32.totalorder %v5238_v49, %v6032_v5 }
  0x75   :  { %vm4664_vm4 = vmpackc.low %vm8268_vm5, %vm8267_vm8  ;;  %vm1361_vm8 = vcmp.eq.s32.totalorder %v5176_v28, %v6022_v33  ;;  %vm1377_vm5 = vcmp.eq.s32.totalorder %v5222_v45, %v6022_v33 }
  0x76   :  { %vm4636_vm0 = vmpackc.low %vm1377_vm5, %vm1361_vm8  ;;  %vm1360_vm8 = vcmp.eq.s32.totalorder %v5176_v28, %v6025_v3  ;;  %vm1376_vm5 = vcmp.eq.s32.totalorder %v5222_v45, %v6025_v3 }
  0x78   :  { %4595 = vmatmul.mubr.msk.bf16.gmra.mrb[24].mxu0 %vm4594_vm15, %v5110_v48  ;;  %vm1328_vm15 = vcmp.eq.s32.totalorder %v5139_v2, %v6025_v3 }
  0x79   :  { %4627 = vmatmul.mubr.msk.bf16.gmra.mrb[24].mxu1 %vm4626_vm9, %v5110_v48  ;;  %4597 = vmatprep.mubr.msk.bf16.mxu0 %vm4596_vm14, %v5110_v48  ;;  %vm8260_vm9 = vcmp.eq.s32.totalorder %v5167_v25, %v6100_v17 }
  0x7a   :  { %4629 = vmatprep.mubr.msk.bf16.mxu1 %vm4628_vm11, %v5110_v48  ;;  %vm5021_vm14 = vmpackc.low %vm8260_vm9, %vm8259_vm12  ;;  %vm1330_vm11 = vcmp.eq.s32.totalorder %v5139_v2, %v6035_v8  ;;  %vm8261_vm12 = vcmp.eq.s32.totalorder %v6002_v58, %v5508_v53  ;;  %vm8262_vm9 = vcmp.eq.s32.totalorder %v6019_v61, %v5508_v53  ;;  %v6333_v53 = vand.u32 2147483647, %v201_v26 }
  0x7b   :  { %5022 = vmatprep.subr.msk.bf16.mxu1 %vm5021_vm14, %v5110_v48  ;;  %vm4598_vm14 = vmpackc.low %vm8262_vm9, %vm8261_vm12  ;;  %vm8266_vm12 = vcmp.eq.s32.totalorder %v5167_v25, %v6022_v33 }
  0x7c   :  { %vm4632_vm9 = vmpackc.low %vm8266_vm12, %vm8265_vm6  ;;  %vm1363_vm12 = vcmp.eq.s32.totalorder %v5176_v28, %v6032_v5  ;;  %vm1394_vm6 = vcmp.eq.s32.totalorder %v5225_v46, %v6035_v8  ;;  %v245_v31 = vrot.slane %v6333_v53, %v5147_v7  ;;  %v241_v38 = vrot.slane %v6333_v53, %v5158_v15 }
  0x7d   :  { %v253_v39 = vrot.slane %v6333_v53, %v5150_v12  ;;  %v249_v40 = vrot.slane %v6333_v53, %v5173_v27 }
  0x7e   :  { %v311_v47 = vpack.c.bf16 %v245_v31, %v245_v31  ;;  %v310_v50 = vpack.c.bf16 %v241_v38, %v241_v38 }
  0x7f   :  { %v313_v51 = vpack.c.bf16 %v253_v39, %v253_v39  ;;  %v312_v56 = vpack.c.bf16 %v249_v40, %v249_v40 }
  0x80   :  { %4599 = vmatmul.mubr.msk.bf16.gmra.mrb[28].mxu0 %vm4598_vm14, %v5110_v48  ;;  %vm4634_vm14 = vmpackc.low %vm1344_vm13, %vm1328_vm15  ;;  %vm8270_vm13 = vcmp.eq.s32.totalorder %v5139_v2, %v6096_v16  ;;  %v327_v52 = vunpack.c.l.bf16 %v311_v47  ;;  %v1118_v9 = vsel %vm5373_vm3, %v311_v47, %v1117_v42  ;;  %v326_v10 = vunpack.c.l.bf16 %v310_v50 }
  0x81   :  { %4631 = vmatmul.mubr.msk.bf16.gmra.mrb[28].mxu1 %vm4630_vm10, %v5110_v48  ;;  %4633 = vmatprep.mubr.msk.bf16.mxu0 %vm4632_vm9, %v5110_v48  ;;  %vm1379_vm10 = vcmp.eq.s32.totalorder %v5222_v45, %v6032_v5  ;;  %vm8269_vm9 = vcmp.eq.s32.totalorder %v5167_v25, %v6035_v8  ;;  %v1115_v11 = vsel %vm5373_vm3, %v310_v50, %v1114_v43  ;;  %v329_v13 = vunpack.c.l.bf16 %v313_v51 }
  0x82   :  { %4665 = vmatprep.mubr.msk.bf16.mxu1 %vm4664_vm4, %v5110_v48  ;;  %vm4666_vm4 = vmpackc.low %vm8269_vm9, %vm1330_vm11  ;;  %vm8271_vm11 = vcmp.eq.s32.totalorder %v5167_v25, %v6096_v16  ;;  %1119 = vst [vmem:[#allocation3 + $0x248] sm:$0x1] %v1118_v9  ;;  %v1124_v21 = vsel %vm5373_vm3, %v313_v51, %v1123_v6  ;;  %v328_v22 = vunpack.c.l.bf16 %v312_v56  ;;  %v1121_v26 = vsel %vm5373_vm3, %v312_v56, %v1120_v59 }
  0x83   :  { %vm4668_vm15 = vmpackc.low %vm1379_vm10, %vm1363_vm12  ;;  %vm8272_vm12 = vcmp.eq.s32.totalorder %v5139_v2, %v6111_v23  ;;  %1116 = vst [vmem:[#allocation3 + $0x240] sm:$0x1] %v1115_v11  ;;  %v343_v60 = vsub.f32 %v245_v31, %v327_v52  ;;  %v342_v30 = vsub.f32 %v241_v38, %v326_v10  ;;  %v345_v29 = vsub.f32 %v253_v39, %v329_v13 }
  0x84   :  { %vm5023_vm9 = vmpackc.low %vm8271_vm11, %vm8270_vm13  ;;  %vm1378_vm13 = vcmp.eq.s32.totalorder %v5222_v45, %v6035_v8  ;;  %vm8274_vm11 = vcmp.eq.s32.totalorder %v5176_v28, %v6092_v44  ;;  %1125 = vst [vmem:[#allocation3 + $0x258] sm:$0x1] %v1124_v21  ;;  %v344_v42 = vsub.f32 %v249_v40, %v328_v22  ;;  %v6485_v50 = vrot.slane %v6078_v14, %v5453_v35 }
  0x85   :  { %1122 = vst [vmem:[#allocation3 + $0x250] sm:$0x1] %v1121_v26  ;;  %v359_v31 = vpack.c.bf16 %v343_v60, %v343_v60  ;;  %v358_v38 = vpack.c.bf16 %v342_v30, %v342_v30  ;;  %v361_v39 = vpack.c.bf16 %v345_v29, %v345_v29  ;;  %v6491_v56 = vrot.slane %v6078_v14, %v5456_v36  ;;  %v6689_v60 = vld [vmem:[%s8153_s2 + $0x8] sm:$0xff]  ;;  %s5111_s2 = smov 127  }
  0x86   :  { %v360_v40 = vpack.c.bf16 %v344_v42, %v344_v42  ;;  %v159_v30 = vrot.slane %v6689_v60, %v5147_v7  ;;  %v167_v29 = vrot.slane %v6689_v60, %v5150_v12  ;;  %v155_v12 = vrot.slane %v6689_v60, %v5158_v15 }
  0x87   :  { %v1166_v43 = vshll.u32 %v359_v31, 16  ;;  %v1163_v47 = vshll.u32 %v358_v38, 16  ;;  %v1172_v51 = vshll.u32 %v361_v39, 16  ;;  %v261_v42 = vrot.slane %v6333_v53, %v5409_v19 }
  0x88   :  { %4635 = vmatmul.mubr.msk.bf16.vlgmr.msra.gmra.mrb[32].mxu0 %vm4634_vm14, %v5110_v48  ;;  %vm8273_vm14 = vcmp.eq.s32.totalorder %v5167_v25, %v6111_v23  ;;  %v1169_v6 = vshll.u32 %v360_v40, 16  ;;  %v6770_v7 = vrot.slane %v159_v30, %v5158_v15  ;;  %v257_v31 = vrot.slane %v6333_v53, %v5412_v20  ;;  %v1126_v40 = vld [vmem:[#allocation3 + $0x260] sm:$0x1] }
  0x89   :  { %4667 = vmatmul.mubr.msk.bf16.vlgmr.msra.gmra.mrb[32].mxu1 %vm4666_vm4, %v5110_v48  ;;  %5024 = vmatpush1.bf16.xpose.msk.msra.mxu0 %vm5023_vm9, %v5110_v48  ;;  %vm5025_vm10 = vmpackc.low %vm8273_vm14, %vm8272_vm12  ;;  %vm1362_vm4 = vcmp.eq.s32.totalorder %v5176_v28, %v6035_v8  ;;  %vm8275_vm9 = vcmp.eq.s32.totalorder %v5222_v45, %v6092_v44  ;;  %vm1409_vm14 = vcmp.eq.s32.totalorder %v5238_v49, %v6022_v33  ;;  %v1231_v59 = vld [vmem:[#allocation3 + $0x248] sm:$0x1] }
  0x8a   :  { %5026 = vmatpush1.bf16.xpose.msk.msra.mxu1 %vm5025_vm10, %v5110_v48  ;;  %4637 = vmatprep.mubr.msk.bf16.mxu0 %vm4636_vm0, %v5110_v48  ;;  %vm5027_vm12 = vmpackc.low %vm8275_vm9, %vm8274_vm11  ;;  %vm1393_vm0 = vcmp.eq.s32.totalorder %v5225_v46, %v6022_v33  ;;  %vm8278_vm11 = vcmp.eq.s32.totalorder %v5176_v28, %v6100_v17  ;;  %vm8279_vm9 = vcmp.eq.s32.totalorder %v5222_v45, %v6100_v17  ;;  %v1228_v52 = vld [vmem:[#allocation3 + $0x240] sm:$0x1] }
  0x8b   :  { %4669 = vmatprep.mubr.msk.bf16.mxu1 %vm4668_vm15, %v5110_v48  ;;  %5028 = vmatprep.subr.msk.bf16.mxu0 %vm5027_vm12, %v5110_v48  ;;  %vm6318_vm10 = vmpackc.low %vm1376_vm5, %vm1360_vm8  ;;  %vm1395_vm15 = vcmp.eq.s32.totalorder %v5225_v46, %v6032_v5  ;;  %vm1392_vm5 = vcmp.eq.s32.totalorder %v5225_v46, %v6025_v3  ;;  %v1232_v14 = vsel %vm5444_vm7, %v1166_v43, %v1231_v59  ;;  %v1237_v10 = vld [vmem:[#allocation3 + $0x258] sm:$0x1] }
  0x8c   :  { %vm5029_vm12 = vmpackc.low %vm8279_vm9, %vm8278_vm11  ;;  %vm1410_vm11 = vcmp.eq.s32.totalorder %v5238_v49, %v6035_v8  ;;  %v1229_v9 = vsel %vm5444_vm7, %v1163_v47, %v1228_v52  ;;  %v1234_v11 = vld [vmem:[#allocation3 + $0x250] sm:$0x1]  ;;  %1233 = vst [vmem:[#allocation3 + $0x248] sm:$0x1] %v1232_v14  ;;  %v269_v38 = vrot.slane %v6333_v53, %v5453_v35  ;;  %v315_v39 = vpack.c.bf16 %v261_v42, %v261_v42  ;;  %v1135_v43 = vld [vmem:[#allocation3 + $0x278] sm:$0x1] }
  0x8d   :  { %5030 = vmatprep.subr.msk.bf16.mxu1 %vm5029_vm12, %v5110_v48  ;;  %vm6335_vm8 = vmpackc.low %vm1378_vm13, %vm1362_vm4  ;;  %vm1425_vm13 = vcmp.eq.s32.totalorder %v5247_v54, %v6022_v33  ;;  %1230 = vst [vmem:[#allocation3 + $0x240] sm:$0x1] %v1229_v9  ;;  %v1235_v21 = vsel %vm5444_vm7, %v1169_v6, %v1234_v11  ;;  %v265_v47 = vrot.slane %v6333_v53, %v5456_v36  ;;  %v1132_v52 = vld [vmem:[#allocation3 + $0x270] sm:$0x1] }
  0x8e   :  { %vm6347_vm9 = vmpackc.low %vm1409_vm14, %vm1393_vm0  ;;  %vm1441_vm0 = vcmp.eq.s32.totalorder %v5250_v55, %v6022_v33  ;;  %vm1457_vm14 = vcmp.eq.s32.totalorder %v5651_v63, %v6022_v33  ;;  %1236 = vst [vmem:[#allocation3 + $0x250] sm:$0x1] %v1235_v21  ;;  %v314_v6 = vpack.c.bf16 %v257_v31, %v257_v31  ;;  %v317_v59 = vpack.c.bf16 %v269_v38, %v269_v38 }
  0x8f   :  { %vm6362_vm4 = vmpackc.low %vm1411_vm1, %vm1395_vm15  ;;  %vm8286_vm1 = vcmp.eq.s32.totalorder %v5176_v28, %v6096_v16  ;;  %vm8287_vm15 = vcmp.eq.s32.totalorder %v5222_v45, %v6096_v16  ;;  %v6815_v14 = vrot.slane %v155_v12, %v5158_v15  ;;  %v331_v53 = vunpack.c.l.bf16 %v315_v39 }
  0x90   :  { %4639 = vmatmul.mubr.msk.bf16.gmra.mrb[36].mxu0 %vm6318_vm10, %v5110_v48  ;;  %vm5031_vm12 = vmpackc.low %vm8287_vm15, %vm8286_vm1  ;;  %vm8290_vm15 = vcmp.eq.s32.totalorder %v5225_v46, %v6092_v44  ;;  %vm1473_vm10 = vcmp.eq.s32.totalorder %v5733_v0, %v6022_v33 }
  0x91   :  { %4671 = vmatmul.mubr.msk.bf16.gmra.mrb[36].mxu1 %vm6335_vm8, %v5110_v48  ;;  %5032 = vmatpush1.bf16.xpose.msk.msra.mxu0 %vm5031_vm12, %v5110_v48  ;;  %vm8291_vm12 = vcmp.eq.s32.totalorder %v5238_v49, %v6092_v44 }
  0x92   :  { %4641 = vmatprep.mubr.msk.bf16.mxu0 %vm6347_vm9, %v5110_v48  ;;  %4673 = vmatprep.mubr.msk.bf16.mxu1 %vm6362_vm4, %v5110_v48  ;;  %vm8288_vm9 = vcmp.eq.s32.totalorder %v5176_v28, %v6111_v23  ;;  %vm8289_vm4 = vcmp.eq.s32.totalorder %v5222_v45, %v6111_v23  ;;  %vm5035_vm8 = vmpackc.low %vm8291_vm12, %vm8290_vm15  ;;  %vm8294_vm12 = vcmp.eq.s32.totalorder %v5225_v46, %v6100_v17 }
  0x93   :  { %vm5033_vm1 = vmpackc.low %vm8289_vm4, %vm8288_vm9  ;;  %5036 = vmatprep.subr.msk.bf16.mxu0 %vm5035_vm8, %v5110_v48  ;;  %vm8295_vm9 = vcmp.eq.s32.totalorder %v5238_v49, %v6100_v17 }
  0x94   :  { %5034 = vmatpush1.bf16.xpose.msk.msra.mxu1 %vm5033_vm1, %v5110_v48  ;;  %vm6441_vm8 = vmpackc.low %vm1408_vm2, %vm1392_vm5  ;;  %vm1459_vm1 = vcmp.eq.s32.totalorder %v5651_v63, %v6032_v5  ;;  %vm1521_vm2 = vcmp.eq.s32.totalorder %v5930_v18, %v6022_v33  ;;  %v2308_v26 = vld [vmem:[#allocation3 + $0x240] sm:$0xff] }
  0x95   :  { %vm5037_vm4 = vmpackc.low %vm8295_vm9, %vm8294_vm12  ;;  %vm8311_vm9 = vcmp.eq.s32.totalorder %v5250_v55, %v6035_v8  ;;  %v2310_v57 = vld [vmem:[#allocation3 + $0x250] sm:$0xff] }
  0x96   :  { %5038 = vmatprep.subr.msk.bf16.mxu1 %vm5037_vm4, %v5110_v48  ;;  %vm4674_vm15 = vmpackc.low %vm1410_vm11, %vm1394_vm6  ;;  %vm8296_vm4 = vcmp.eq.s32.totalorder %v5247_v54, %v6032_v5  ;;  %vm8297_vm6 = vcmp.eq.s32.totalorder %v5250_v55, %v6032_v5 }
  0x97   :  { %vm4644_vm12 = vmpackc.low %vm1441_vm0, %vm1425_vm13  ;;  %vm8298_vm13 = vcmp.eq.s32.totalorder %v5225_v46, %v6096_v16  ;;  %vm8299_vm0 = vcmp.eq.s32.totalorder %v5238_v49, %v6096_v16 }
  0x98   :  { %vm4676_vm11 = vmpackc.low %vm8297_vm6, %vm8296_vm4  ;;  %4643 = vmatmul.mubr.msk.bf16.gmra.mrb[40].mxu0 %vm6441_vm8, %v5110_v48  ;;  %vm8300_vm6 = vcmp.eq.s32.totalorder %v5225_v46, %v6111_v23 }
  0x99   :  { %4675 = vmatmul.mubr.msk.bf16.gmra.mrb[40].mxu1 %vm4674_vm15, %v5110_v48  ;;  %4645 = vmatprep.mubr.msk.bf16.mxu0 %vm4644_vm12, %v5110_v48  ;;  %vm5039_vm8 = vmpackc.low %vm8299_vm0, %vm8298_vm13  ;;  %vm1475_vm15 = vcmp.eq.s32.totalorder %v5733_v0, %v6032_v5  ;;  %vm8302_vm0 = vcmp.eq.s32.totalorder %v5247_v54, %v6092_v44  ;;  %vm1490_vm12 = vcmp.eq.s32.totalorder %v5826_v37, %v6035_v8 }
  0x9a   :  { %4677 = vmatprep.mubr.msk.bf16.mxu1 %vm4676_vm11, %v5110_v48  ;;  %5040 = vmatpush1.bf16.xpose.msk.msra.mxu0 %vm5039_vm8, %v5110_v48  ;;  %vm8301_vm11 = vcmp.eq.s32.totalorder %v5238_v49, %v6111_v23  ;;  %vm8303_vm8 = vcmp.eq.s32.totalorder %v5250_v55, %v6092_v44  ;;  %v1238_v44 = vsel %vm5444_vm7, %v1172_v51, %v1237_v10 }
  0x9b   :  { %vm5041_vm13 = vmpackc.low %vm8301_vm11, %vm8300_vm6  ;;  %vm8304_vm6 = vcmp.eq.s32.totalorder %v5247_v54, %v6025_v3  ;;  %vm8305_vm11 = vcmp.eq.s32.totalorder %v5250_v55, %v6025_v3  ;;  %1239 = vst [vmem:[#allocation3 + $0x258] sm:$0x1] %v1238_v44  ;;  %v316_v10 = vpack.c.bf16 %v265_v47, %v265_v47  ;;  %v333_v44 = vunpack.c.l.bf16 %v317_v59 }
  0x9c   :  { %5042 = vmatpush1.bf16.xpose.msk.msra.mxu1 %vm5041_vm13, %v5110_v48  ;;  %vm5043_vm5 = vmpackc.low %vm8303_vm8, %vm8302_vm0  ;;  %vm8309_vm0 = vcmp.eq.s32.totalorder %v5250_v55, %v6100_v17 }
  0x9d   :  { %5044 = vmatprep.subr.msk.bf16.mxu0 %vm5043_vm5, %v5110_v48  ;;  %vm6531_vm13 = vmpackc.low %vm8305_vm11, %vm8304_vm6  ;;  %vm8308_vm5 = vcmp.eq.s32.totalorder %v5247_v54, %v6100_v17  ;;  %vm8310_vm11 = vcmp.eq.s32.totalorder %v5247_v54, %v6035_v8  ;;  %v2309_v17 = vld [vmem:[#allocation3 + $0x248] sm:$0xff] }
  0x9e   :  { %vm5045_vm8 = vmpackc.low %vm8309_vm0, %vm8308_vm5 }
  0x9f   :  { %5046 = vmatprep.subr.msk.bf16.mxu1 %vm5045_vm8, %v5110_v48  ;;  %vm4678_vm5 = vmpackc.low %vm8311_vm9, %vm8310_vm11  ;;  %vm1456_vm9 = vcmp.eq.s32.totalorder %v5651_v63, %v6025_v3  ;;  %vm1472_vm11 = vcmp.eq.s32.totalorder %v5733_v0, %v6025_v3 }
  0xa0   :  { %vm4648_vm8 = vmpackc.low %vm1473_vm10, %vm1457_vm14  ;;  %4647 = vmatmul.mubr.msk.bf16.gmra.mrb[44].mxu0 %vm6531_vm13, %v5110_v48  ;;  %vm1474_vm13 = vcmp.eq.s32.totalorder %v5733_v0, %v6035_v8  ;;  %vm8312_vm14 = vcmp.eq.s32.totalorder %v5247_v54, %v6096_v16  ;;  %vm8313_vm10 = vcmp.eq.s32.totalorder %v5250_v55, %v6096_v16  ;;  %v347_v16 = vsub.f32 %v261_v42, %v331_v53 }
  0xa1   :  { %vm4680_vm6 = vmpackc.low %vm1475_vm15, %vm1459_vm1  ;;  %4679 = vmatmul.mubr.msk.bf16.gmra.mrb[44].mxu1 %vm4678_vm5, %v5110_v48  ;;  %4649 = vmatprep.mubr.msk.bf16.mxu0 %vm4648_vm8, %v5110_v48  ;;  %vm1458_vm15 = vcmp.eq.s32.totalorder %v5651_v63, %v6035_v8  ;;  %vm1489_vm5 = vcmp.eq.s32.totalorder %v5826_v37, %v6022_v33  ;;  %vm1505_vm8 = vcmp.eq.s32.totalorder %v5839_v41, %v6022_v33 }
  0xa2   :  { %4681 = vmatprep.mubr.msk.bf16.mxu1 %vm4680_vm6, %v5110_v48  ;;  %vm5047_vm0 = vmpackc.low %vm8313_vm10, %vm8312_vm14  ;;  %vm8314_vm6 = vcmp.eq.s32.totalorder %v5247_v54, %v6111_v23  ;;  %vm8315_vm1 = vcmp.eq.s32.totalorder %v5250_v55, %v6111_v23  ;;  %v2311_v23 = vld [vmem:[#allocation3 + $0x258] sm:$0xff]  ;;  %vm1504_vm14 = vcmp.eq.s32.totalorder %v5839_v41, %v6025_v3  ;;  %v363_v30 = vpack.c.bf16 %v347_v16, %v347_v16 }
  0xa3   :  { %5048 = vmatpush1.bf16.xpose.msk.msra.mxu0 %vm5047_vm0, %v5110_v48  ;;  %vm5049_vm4 = vmpackc.low %vm8315_vm1, %vm8314_vm6  ;;  %vm1507_vm1 = vcmp.eq.s32.totalorder %v5839_v41, %v6032_v5  ;;  %vm1488_vm0 = vcmp.eq.s32.totalorder %v5826_v37, %v6025_v3  ;;  %v183_v53 = vrot.slane %v6689_v60, %v5453_v35  ;;  %v171_v35 = vrot.slane %v6689_v60, %v5412_v20 }
  0xa4   :  { %5050 = vmatpush1.bf16.xpose.msk.msra.mxu1 %vm5049_vm4, %v5110_v48  ;;  %vm6618_vm10 = vmpackc.low %vm1472_vm11, %vm1456_vm9  ;;  %vm1491_vm4 = vcmp.eq.s32.totalorder %v5826_v37, %v6032_v5  ;;  %2712 = vmatprep.subr.bf16.mxu0 %v2309_v17  ;;  %vm1506_vm9 = vcmp.eq.s32.totalorder %v5839_v41, %v6035_v8 }
  0xa5   :  { %vm6632_vm6 = vmpackc.low %vm1474_vm13, %vm1458_vm15  ;;  %2809 = vmatprep.subr.bf16.mxu1 %v2311_v23  ;;  %v332_v23 = vunpack.c.l.bf16 %v316_v10  ;;  %v7150_v20 = vrot.slane %v171_v35, %v5158_v15 }
  0xa6   :  { %vm4652_vm11 = vmpackc.low %vm1505_vm8, %vm1489_vm5  ;;  %vm1537_vm5 = vcmp.eq.s32.totalorder %v5943_v24, %v6022_v33  ;;  %vm1523_vm8 = vcmp.eq.s32.totalorder %v5930_v18, %v6032_v5 }
  0xa7   :  { %vm4684_vm13 = vmpackc.low %vm1507_vm1, %vm1491_vm4 }
  0xa8   :  { %4651 = vmatmul.mubr.msk.bf16.gmra.mrb[48].mxu0 %vm6618_vm10, %v5110_v48 }
  0xa9   :  { %4683 = vmatmul.mubr.msk.bf16.gmra.mrb[48].mxu1 %vm6632_vm6, %v5110_v48  ;;  %4653 = vmatprep.mubr.msk.bf16.mxu0 %vm4652_vm11, %v5110_v48  ;;  %vm8320_vm6 = vcmp.eq.s32.totalorder %v5139_v2, %v6393_v62  ;;  %vm8321_vm11 = vcmp.eq.s32.totalorder %v5167_v25, %v6393_v62 }
  0xaa   :  { %4685 = vmatprep.mubr.msk.bf16.mxu1 %vm4684_vm13, %v5110_v48  ;;  %vm5051_vm1 = vmpackc.low %vm8321_vm11, %vm8320_vm6  ;;  %vm8323_vm11 = vcmp.eq.s32.totalorder %v5167_v25, %v6485_v50 }
  0xab   :  { %2713 = vmatpush1.bf16.xpose.msra.mxu0 %v2308_v26  ;;  %vm4654_vm6 = vmpackc.low %vm1504_vm14, %vm1488_vm0 }
  0xac   :  { %2810 = vmatpush1.bf16.xpose.msra.mxu1 %v2310_v57  ;;  %5052 = vmatprep.subr.msk.bf16.mxu0 %vm5051_vm1, %v5110_v48  ;;  %vm8322_vm1 = vcmp.eq.s32.totalorder %v5139_v2, %v6485_v50  ;;  %vm4686_vm13 = vmpackc.low %vm1506_vm9, %vm1490_vm12  ;;  %vm1520_vm9 = vcmp.eq.s32.totalorder %v5930_v18, %v6025_v3  ;;  %v349_v57 = vsub.f32 %v269_v38, %v333_v44 }
  0xad   :  { %vm5053_vm4 = vmpackc.low %vm8323_vm11, %vm8322_vm1  ;;  %vm1553_vm11 = vcmp.eq.s32.totalorder %v6002_v58, %v6022_v33 }
  0xae   :  { %5054 = vmatprep.subr.msk.bf16.mxu1 %vm5053_vm4, %v5110_v48  ;;  %vm4656_vm0 = vmpackc.low %vm1537_vm5, %vm1521_vm2  ;;  %vm8324_vm4 = vcmp.eq.s32.totalorder %v5943_v24, %v6032_v5  ;;  %vm1536_vm2 = vcmp.eq.s32.totalorder %v5943_v24, %v6025_v3  ;;  %vm1522_vm5 = vcmp.eq.s32.totalorder %v5930_v18, %v6035_v8  ;;  %v365_v12 = vpack.c.bf16 %v349_v57, %v349_v57 }
  0xaf   :  { %vm4688_vm12 = vmpackc.low %vm8324_vm4, %vm1523_vm8  ;;  %vm1538_vm8 = vcmp.eq.s32.totalorder %v5943_v24, %v6035_v8  ;;  %vm1569_vm4 = vcmp.eq.s32.totalorder %v6019_v61, %v6022_v33  ;;  %v6775_v33 = vrot.slane %v167_v29, %v5158_v15  ;;  %v348_v29 = vsub.f32 %v265_v47, %v332_v23 }
  0xb0   :  { %4655 = vmatmul.mubr.msk.bf16.gmra.mrb[52].mxu0 %vm4654_vm6, %v5110_v48  ;;  %vm4658_vm14 = vmpackc.low %vm1536_vm2, %vm1520_vm9  ;;  %vm8341_vm6 = vcmp.eq.s32.totalorder %v5176_v28, %v6485_v50 }
  0xb1   :  { %4687 = vmatmul.mubr.msk.bf16.gmra.mrb[52].mxu1 %vm4686_vm13, %v5110_v48  ;;  %4657 = vmatprep.mubr.msk.bf16.mxu0 %vm4656_vm0, %v5110_v48  ;;  %vm1555_vm13 = vcmp.eq.s32.totalorder %v6002_v58, %v6032_v5  ;;  %vm1571_vm0 = vcmp.eq.s32.totalorder %v6019_v61, %v6032_v5  ;;  %vm4690_vm10 = vmpackc.low %vm1538_vm8, %vm1522_vm5  ;;  %v163_v5 = vrot.slane %v6689_v60, %v5173_v27  ;;  %v1129_v27 = vld [vmem:[#allocation3 + $0x268] sm:$0x1] }
  0xb2   :  { %4689 = vmatprep.mubr.msk.bf16.mxu1 %vm4688_vm12, %v5110_v48  ;;  %vm4660_vm3 = vmpackc.low %vm1569_vm4, %vm1553_vm11  ;;  %vm1552_vm5 = vcmp.eq.s32.totalorder %v6002_v58, %v6025_v3  ;;  %vm1568_vm8 = vcmp.eq.s32.totalorder %v6019_v61, %v6025_v3  ;;  %vm1554_vm11 = vcmp.eq.s32.totalorder %v6002_v58, %v6035_v8  ;;  %v364_v42 = vpack.c.bf16 %v348_v29, %v348_v29 }
  0xb3   :  { %vm4692_vm2 = vmpackc.low %vm1571_vm0, %vm1555_vm13  ;;  %vm1335_vm13 = vcmp.eq.s32.totalorder %v5139_v2, %v6775_v33  ;;  %vm1351_vm0 = vcmp.eq.s32.totalorder %v5167_v25, %v6775_v33  ;;  %v6844_v17 = vrot.slane %v163_v5, %v5158_v15  ;;  %v1178_v5 = vshll.u32 %v363_v30, 16 }
  0xb4   :  { %vm6806_vm4 = vmpackc.low %vm1568_vm8, %vm1552_vm5  ;;  %vm8329_vm5 = vnez %v8188_v1 }
  0xb5   :  { %v1130_v9 = vsel %vm8329_vm5, %v315_v39, %v1129_v27  ;;  %v1127_v13 = vsel %vm8329_vm5, %v314_v6, %v1126_v40  ;;  %v1136_v21 = vsel %vm8329_vm5, %v317_v59, %v1135_v43  ;;  %v1133_v22 = vsel %vm8329_vm5, %v316_v10, %v1132_v52  ;;  %vm8332_vm9 = vmmov %vm5444_vm7 }
  0xb6   :  { %1131 = vst [vmem:[#allocation3 + $0x268] sm:$0x1] %v1130_v9  ;;  %1128 = vst [vmem:[#allocation3 + $0x260] sm:$0x1] %v1127_v13  ;;  %vm1367_vm5 = vcmp.eq.s32.totalorder %v5176_v28, %v6775_v33  ;;  %v1181_v39 = vshll.u32 %v364_v42, 16  ;;  %v7123_v9 = vrot.slane %v183_v53, %v5158_v15 }
  0xb7   :  { %1137 = vst [vmem:[#allocation3 + $0x278] sm:$0x1] %v1136_v21  ;;  %1134 = vst [vmem:[#allocation3 + $0x270] sm:$0x1] %v1133_v22 }
  0xb8   :  { %4659 = vmatmul.mubr.msk.bf16.gmra.mrb[56].mxu0 %vm4658_vm14, %v5110_v48  ;;  %vm1570_vm14 = vcmp.eq.s32.totalorder %v6019_v61, %v6035_v8  ;;  %v330_v8 = vunpack.c.l.bf16 %v314_v6 }
  0xb9   :  { %4691 = vmatmul.mubr.msk.bf16.gmra.mrb[56].mxu1 %vm4690_vm10, %v5110_v48  ;;  %4661 = vmatprep.mubr.msk.bf16.mxu0 %vm4660_vm3, %v5110_v48  ;;  %vm1333_vm3 = vcmp.eq.s32.totalorder %v5139_v2, %v6770_v7  ;;  %vm1349_vm10 = vcmp.eq.s32.totalorder %v5167_v25, %v6770_v7 }
  0xba   :  { %4693 = vmatprep.mubr.msk.bf16.mxu1 %vm4692_vm2, %v5110_v48  ;;  %vm6823_vm2 = vmpackc.low %vm1570_vm14, %vm1554_vm11  ;;  %v346_v26 = vsub.f32 %v257_v31, %v330_v8  ;;  %vm1332_vm14 = vcmp.eq.s32.totalorder %v5139_v2, %v6815_v14  ;;  %v1184_v31 = vshll.u32 %v365_v12, 16 }
  0xbb   :  { %vm6835_vm8 = vmpackc.low %vm1349_vm10, %vm1333_vm3  ;;  %vm1348_vm3 = vcmp.eq.s32.totalorder %v5167_v25, %v6815_v14  ;;  %vm1334_vm10 = vcmp.eq.s32.totalorder %v5139_v2, %v6844_v17 }
  0xbc   :  { %vm4728_vm11 = vmpackc.low %vm1351_vm0, %vm1335_vm13  ;;  %v362_v1 = vpack.c.bf16 %v346_v26, %v346_v26  ;;  %vm1365_vm13 = vcmp.eq.s32.totalorder %v5176_v28, %v6770_v7  ;;  %vm1381_vm0 = vcmp.eq.s32.totalorder %v5222_v45, %v6770_v7 }
  0xbd   :  { %v1243_v38 = vld [vmem:[#allocation3 + $0x268] sm:$0x1]  ;;  %v1240_v43 = vld [vmem:[#allocation3 + $0x260] sm:$0x1]  ;;  %vm6882_vm7 = vmpackc.low %vm1381_vm0, %vm1365_vm13  ;;  %vm1364_vm13 = vcmp.eq.s32.totalorder %v5176_v28, %v6815_v14  ;;  %vm1380_vm0 = vcmp.eq.s32.totalorder %v5222_v45, %v6815_v14 }
  0xbe   :  { %v1175_v27 = vshll.u32 %v362_v1, 16  ;;  %v1244_v40 = vsel %vm8332_vm9, %v1178_v5, %v1243_v38  ;;  %v1249_v47 = vld [vmem:[#allocation3 + $0x278] sm:$0x1]  ;;  %v1246_v52 = vld [vmem:[#allocation3 + $0x270] sm:$0x1] }
  0xbf   :  { %1245 = vst [vmem:[#allocation3 + $0x268] sm:$0x1] %v1244_v40  ;;  %v1250_v59 = vsel %vm8332_vm9, %v1184_v31, %v1249_v47  ;;  %v1247_v3 = vsel %vm8332_vm9, %v1181_v39, %v1246_v52 }
  0xc0   :  { %4663 = vmatmul.mubr.msk.bf16.gmra.mrb[60].mxu0 %vm6806_vm4, %v5110_v48  ;;  %vm1350_vm4 = vcmp.eq.s32.totalorder %v5167_v25, %v6844_v17  ;;  %v1241_v6 = vsel %vm8332_vm9, %v1175_v27, %v1240_v43  ;;  %1251 = vst [vmem:[#allocation3 + $0x278] sm:$0x1] %v1250_v59  ;;  %1248 = vst [vmem:[#allocation3 + $0x270] sm:$0x1] %v1247_v3  ;;  %vm8337_vm9 = vcmp.eq.s32.totalorder %v5139_v2, %v6491_v56 }
  0xc1   :  { %4695 = vmatmul.mubr.msk.bf16.gmra.mrb[60].mxu1 %vm6823_vm2, %v5110_v48  ;;  %4697 = vmatprep.mubr.msk.bf16.mxu0 %vm6835_vm8, %v5110_v48  ;;  %vm4698_vm2 = vmpackc.low %vm1348_vm3, %vm1332_vm14  ;;  %vm1383_vm8 = vcmp.eq.s32.totalorder %v5222_v45, %v6775_v33  ;;  %1242 = vst [vmem:[#allocation3 + $0x260] sm:$0x1] %v1241_v6  ;;  %vm8335_vm3 = vcmp.eq.s32.totalorder %v5139_v2, %v6397_v4 }
  0xc2   :  { %4729 = vmatprep.mubr.msk.bf16.mxu1 %vm4728_vm11, %v5110_v48  ;;  %vm4730_vm11 = vmpackc.low %vm1350_vm4, %vm1334_vm10  ;;  %vm8336_vm10 = vcmp.eq.s32.totalorder %v5167_v25, %v6397_v4 }
  0xc3   :  { %vm4732_vm14 = vmpackc.low %vm1383_vm8, %vm1367_vm5  ;;  %vm1366_vm8 = vcmp.eq.s32.totalorder %v5176_v28, %v6844_v17 }
  0xc4   :  { %vm5055_vm4 = vmpackc.low %vm8336_vm10, %vm8335_vm3  ;;  %vm8339_vm3 = vcmp.eq.s32.totalorder %v5176_v28, %v6393_v62  ;;  %vm8340_vm10 = vcmp.eq.s32.totalorder %v5222_v45, %v6393_v62 }
  0xc6   :  { %v2313_v34 = vld [vmem:[#allocation3 + $0x268] sm:$0xff] }
  0xc8   :  { %4699 = vmatmul.mubr.msk.bf16.vlgmr.msra.gmra.mrb[64].mxu0 %vm4698_vm2, %v5110_v48  ;;  %vm8338_vm2 = vcmp.eq.s32.totalorder %v5167_v25, %v6491_v56 }
  0xc9   :  { %4731 = vmatmul.mubr.msk.bf16.vlgmr.msra.gmra.mrb[64].mxu1 %vm4730_vm11, %v5110_v48  ;;  %5056 = vmatpush1.bf16.xpose.msk.msra.mxu0 %vm5055_vm4, %v5110_v48  ;;  %vm5057_vm5 = vmpackc.low %vm8338_vm2, %vm8337_vm9  ;;  %vm1382_vm11 = vcmp.eq.s32.totalorder %v5222_v45, %v6844_v17  ;;  %vm1413_vm9 = vcmp.eq.s32.totalorder %v5238_v49, %v6770_v7 }
  0xca   :  { %5058 = vmatpush1.bf16.xpose.msk.msra.mxu1 %vm5057_vm5, %v5110_v48  ;;  %4701 = vmatprep.mubr.msk.bf16.mxu0 %vm6882_vm7, %v5110_v48  ;;  %vm5059_vm4 = vmpackc.low %vm8340_vm10, %vm8339_vm3  ;;  %vm1397_vm7 = vcmp.eq.s32.totalorder %v5225_v46, %v6770_v7  ;;  %vm1399_vm5 = vcmp.eq.s32.totalorder %v5225_v46, %v6775_v33  ;;  %vm8342_vm3 = vcmp.eq.s32.totalorder %v5222_v45, %v6485_v50 }
  0xcb   :  { %4733 = vmatprep.mubr.msk.bf16.mxu1 %vm4732_vm14, %v5110_v48  ;;  %5060 = vmatprep.subr.msk.bf16.mxu0 %vm5059_vm4, %v5110_v48  ;;  %vm4702_vm2 = vmpackc.low %vm1380_vm0, %vm1364_vm13  ;;  %vm1415_vm14 = vcmp.eq.s32.totalorder %v5238_v49, %v6775_v33  ;;  %vm8343_vm13 = vcmp.eq.s32.totalorder %v5176_v28, %v6397_v4  ;;  %vm8344_vm0 = vcmp.eq.s32.totalorder %v5222_v45, %v6397_v4 }
  0xcc   :  { %vm5061_vm10 = vmpackc.low %vm8342_vm3, %vm8341_vm6  ;;  %vm1396_vm6 = vcmp.eq.s32.totalorder %v5225_v46, %v6815_v14 }
  0xcd   :  { %5062 = vmatprep.subr.msk.bf16.mxu1 %vm5061_vm10, %v5110_v48  ;;  %vm4734_vm4 = vmpackc.low %vm1382_vm11, %vm1366_vm8  ;;  %vm1412_vm8 = vcmp.eq.s32.totalorder %v5238_v49, %v6815_v14  ;;  %vm1398_vm11 = vcmp.eq.s32.totalorder %v5225_v46, %v6844_v17 }
  0xce   :  { %vm4704_vm1 = vmpackc.low %vm1413_vm9, %vm1397_vm7  ;;  %vm1414_vm7 = vcmp.eq.s32.totalorder %v5238_v49, %v6844_v17  ;;  %vm8345_vm9 = vcmp.eq.s32.totalorder %v5176_v28, %v6491_v56 }
  0xcf   :  { %vm4736_vm15 = vmpackc.low %vm1415_vm14, %vm1399_vm5  ;;  %vm8347_vm5 = vcmp.eq.s32.totalorder %v5225_v46, %v6393_v62  ;;  %vm8348_vm14 = vcmp.eq.s32.totalorder %v5238_v49, %v6393_v62 }
  0xd0   :  { %4703 = vmatmul.mubr.msk.bf16.gmra.mrb[68].mxu0 %vm4702_vm2, %v5110_v48  ;;  %vm5063_vm12 = vmpackc.low %vm8344_vm0, %vm8343_vm13  ;;  %vm1447_vm13 = vcmp.eq.s32.totalorder %v5250_v55, %v6775_v33  ;;  %vm8349_vm0 = vcmp.eq.s32.totalorder %v5225_v46, %v6485_v50 }
  0xd1   :  { %4735 = vmatmul.mubr.msk.bf16.gmra.mrb[68].mxu1 %vm4734_vm4, %v5110_v48  ;;  %5064 = vmatpush1.bf16.xpose.msk.msra.mxu0 %vm5063_vm12, %v5110_v48  ;;  %vm8346_vm12 = vcmp.eq.s32.totalorder %v5222_v45, %v6491_v56  ;;  %vm5067_vm3 = vmpackc.low %vm8348_vm14, %vm8347_vm5  ;;  %vm1431_vm4 = vcmp.eq.s32.totalorder %v5247_v54, %v6775_v33 }
  0xd2   :  { %4705 = vmatprep.mubr.msk.bf16.mxu0 %vm4704_vm1, %v5110_v48  ;;  %4737 = vmatprep.mubr.msk.bf16.mxu1 %vm4736_vm15, %v5110_v48  ;;  %vm5065_vm2 = vmpackc.low %vm8346_vm12, %vm8345_vm9  ;;  %vm1429_vm1 = vcmp.eq.s32.totalorder %v5247_v54, %v6770_v7  ;;  %vm1445_vm15 = vcmp.eq.s32.totalorder %v5250_v55, %v6770_v7  ;;  %vm8350_vm9 = vcmp.eq.s32.totalorder %v5238_v49, %v6485_v50 }
  0xd3   :  { %5066 = vmatpush1.bf16.xpose.msk.msra.mxu1 %vm5065_vm2, %v5110_v48  ;;  %5068 = vmatprep.subr.msk.bf16.mxu0 %vm5067_vm3, %v5110_v48  ;;  %vm4706_vm10 = vmpackc.low %vm1412_vm8, %vm1396_vm6  ;;  %vm1428_vm6 = vcmp.eq.s32.totalorder %v5247_v54, %v6815_v14  ;;  %vm1444_vm8 = vcmp.eq.s32.totalorder %v5250_v55, %v6815_v14  ;;  %vm1430_vm3 = vcmp.eq.s32.totalorder %v5247_v54, %v6844_v17 }
  0xd4   :  { %vm5069_vm12 = vmpackc.low %vm8350_vm9, %vm8349_vm0  ;;  %vm1461_vm0 = vcmp.eq.s32.totalorder %v5651_v63, %v6770_v7  ;;  %vm1477_vm9 = vcmp.eq.s32.totalorder %v5733_v0, %v6770_v7 }
  0xd5   :  { %5070 = vmatprep.subr.msk.bf16.mxu1 %vm5069_vm12, %v5110_v48  ;;  %vm4738_vm2 = vmpackc.low %vm1414_vm7, %vm1398_vm11  ;;  %vm1446_vm11 = vcmp.eq.s32.totalorder %v5250_v55, %v6844_v17  ;;  %vm8351_vm7 = vcmp.eq.s32.totalorder %v5225_v46, %v6397_v4  ;;  %vm8355_vm12 = vcmp.eq.s32.totalorder %v5247_v54, %v6393_v62 }
  0xd6   :  { %vm4708_vm5 = vmpackc.low %vm1445_vm15, %vm1429_vm1  ;;  %vm8352_vm1 = vcmp.eq.s32.totalorder %v5238_v49, %v6397_v4 }
  0xd7   :  { %vm4740_vm14 = vmpackc.low %vm1447_vm13, %vm1431_vm4  ;;  %vm8354_vm4 = vcmp.eq.s32.totalorder %v5238_v49, %v6491_v56 }
  0xd8   :  { %4707 = vmatmul.mubr.msk.bf16.gmra.mrb[72].mxu0 %vm4706_vm10, %v5110_v48  ;;  %vm5071_vm15 = vmpackc.low %vm8352_vm1, %vm8351_vm7  ;;  %vm8353_vm10 = vcmp.eq.s32.totalorder %v5225_v46, %v6491_v56  ;;  %vm1463_vm7 = vcmp.eq.s32.totalorder %v5651_v63, %v6775_v33  ;;  %vm1479_vm1 = vcmp.eq.s32.totalorder %v5733_v0, %v6775_v33 }
  0xd9   :  { %4739 = vmatmul.mubr.msk.bf16.gmra.mrb[72].mxu1 %vm4738_vm2, %v5110_v48  ;;  %4709 = vmatprep.mubr.msk.bf16.mxu0 %vm4708_vm5, %v5110_v48  ;;  %vm5073_vm13 = vmpackc.low %vm8354_vm4, %vm8353_vm10  ;;  %vm8356_vm2 = vcmp.eq.s32.totalorder %v5250_v55, %v6393_v62  ;;  %vm8358_vm10 = vcmp.eq.s32.totalorder %v5250_v55, %v6485_v50  ;;  %v2315_v62 = vld [vmem:[#allocation3 + $0x278] sm:$0xff] }
  0xda   :  { %4741 = vmatprep.mubr.msk.bf16.mxu1 %vm4740_vm14, %v5110_v48  ;;  %5072 = vmatpush1.bf16.xpose.msk.msra.mxu0 %vm5071_vm15, %v5110_v48  ;;  %vm5075_vm5 = vmpackc.low %vm8356_vm2, %vm8355_vm12  ;;  %vm8357_vm15 = vcmp.eq.s32.totalorder %v5247_v54, %v6485_v50  ;;  %vm1460_vm12 = vcmp.eq.s32.totalorder %v5651_v63, %v6815_v14  ;;  %vm1476_vm2 = vcmp.eq.s32.totalorder %v5733_v0, %v6815_v14  ;;  %v2314_v50 = vld [vmem:[#allocation3 + $0x270] sm:$0xff] }
  0xdb   :  { %5074 = vmatpush1.bf16.xpose.msk.msra.mxu1 %vm5073_vm13, %v5110_v48  ;;  %5076 = vmatprep.subr.msk.bf16.mxu0 %vm5075_vm5, %v5110_v48  ;;  %vm4710_vm14 = vmpackc.low %vm1444_vm8, %vm1428_vm6 }
  0xdc   :  { %vm5077_vm4 = vmpackc.low %vm8358_vm10, %vm8357_vm15  ;;  %vm8362_vm15 = vcmp.eq.s32.totalorder %v5250_v55, %v6491_v56 }
  0xdd   :  { %5078 = vmatprep.subr.msk.bf16.mxu1 %vm5077_vm4, %v5110_v48  ;;  %vm4742_vm13 = vmpackc.low %vm1446_vm11, %vm1430_vm3  ;;  %vm1462_vm3 = vcmp.eq.s32.totalorder %v5651_v63, %v6844_v17  ;;  %vm1478_vm11 = vcmp.eq.s32.totalorder %v5733_v0, %v6844_v17 }
  0xde   :  { %vm4712_vm6 = vmpackc.low %vm1477_vm9, %vm1461_vm0  ;;  %vm8359_vm0 = vcmp.eq.s32.totalorder %v5247_v54, %v6397_v4  ;;  %vm8360_vm9 = vcmp.eq.s32.totalorder %v5250_v55, %v6397_v4  ;;  %v2312_v4 = vld [vmem:[#allocation3 + $0x260] sm:$0xff] }
  0xdf   :  { %vm4744_vm8 = vmpackc.low %vm1479_vm1, %vm1463_vm7  ;;  %vm1509_vm7 = vcmp.eq.s32.totalorder %v5839_v41, %v6770_v7  ;;  %vm8361_vm1 = vcmp.eq.s32.totalorder %v5247_v54, %v6491_v56  ;;  %v175_v56 = vrot.slane %v6689_v60, %v5409_v19 }
  0xe0   :  { %4711 = vmatmul.mubr.msk.bf16.gmra.mrb[76].mxu0 %vm4710_vm14, %v5110_v48  ;;  %vm5079_vm5 = vmpackc.low %vm8360_vm9, %vm8359_vm0  ;;  %vm1493_vm14 = vcmp.eq.s32.totalorder %v5826_v37, %v6770_v7 }
  0xe1   :  { %4743 = vmatmul.mubr.msk.bf16.gmra.mrb[76].mxu1 %vm4742_vm13, %v5110_v48  ;;  %4713 = vmatprep.mubr.msk.bf16.mxu0 %vm4712_vm6, %v5110_v48  ;;  %vm5081_vm10 = vmpackc.low %vm8362_vm15, %vm8361_vm1  ;;  %vm1495_vm13 = vcmp.eq.s32.totalorder %v5826_v37, %v6775_v33  ;;  %vm1511_vm6 = vcmp.eq.s32.totalorder %v5839_v41, %v6775_v33  ;;  %vm1527_vm1 = vcmp.eq.s32.totalorder %v5930_v18, %v6775_v33 }
  0xe2   :  { %4745 = vmatprep.mubr.msk.bf16.mxu1 %vm4744_vm8, %v5110_v48  ;;  %5080 = vmatpush1.bf16.xpose.msk.msra.mxu0 %vm5079_vm5, %v5110_v48  ;;  %vm4714_vm4 = vmpackc.low %vm1476_vm2, %vm1460_vm12  ;;  %vm1492_vm12 = vcmp.eq.s32.totalorder %v5826_v37, %v6815_v14  ;;  %vm1508_vm2 = vcmp.eq.s32.totalorder %v5839_v41, %v6815_v14  ;;  %vm1525_vm5 = vcmp.eq.s32.totalorder %v5930_v18, %v6770_v7 }
  0xe3   :  { %5082 = vmatpush1.bf16.xpose.msk.msra.mxu1 %vm5081_vm10, %v5110_v48  ;;  %2906 = vmatprep.subr.bf16.mxu0 %v2313_v34  ;;  %vm4746_vm8 = vmpackc.low %vm1478_vm11, %vm1462_vm3  ;;  %vm1494_vm3 = vcmp.eq.s32.totalorder %v5826_v37, %v6844_v17  ;;  %vm1510_vm11 = vcmp.eq.s32.totalorder %v5839_v41, %v6844_v17  ;;  %vm1543_vm15 = vcmp.eq.s32.totalorder %v5943_v24, %v6775_v33 }
  0xe4   :  { %3003 = vmatprep.subr.bf16.mxu1 %v2315_v62  ;;  %vm4716_vm0 = vmpackc.low %vm1509_vm7, %vm1493_vm14  ;;  %vm1541_vm14 = vcmp.eq.s32.totalorder %v5943_v24, %v6770_v7  ;;  %v7120_v19 = vrot.slane %v175_v56, %v5158_v15 }
  0xe5   :  { %vm4748_vm9 = vmpackc.low %vm1511_vm6, %vm1495_vm13  ;;  %vm1524_vm6 = vcmp.eq.s32.totalorder %v5930_v18, %v6815_v14 }
  0xe6   :  { %vm4718_vm7 = vmpackc.low %vm1508_vm2, %vm1492_vm12  ;;  %vm1557_vm12 = vcmp.eq.s32.totalorder %v6002_v58, %v6770_v7  ;;  %vm1573_vm2 = vcmp.eq.s32.totalorder %v6019_v61, %v6770_v7  ;;  %v179_v7 = vrot.slane %v6689_v60, %v5456_v36 }
  0xe7   :  { %vm4750_vm10 = vmpackc.low %vm1510_vm11, %vm1494_vm3  ;;  %vm1559_vm11 = vcmp.eq.s32.totalorder %v6002_v58, %v6775_v33 }
  0xe8   :  { %4715 = vmatmul.mubr.msk.bf16.gmra.mrb[80].mxu0 %vm4714_vm4, %v5110_v48  ;;  %vm4720_vm4 = vmpackc.low %vm1541_vm14, %vm1525_vm5  ;;  %vm1575_vm5 = vcmp.eq.s32.totalorder %v6019_v61, %v6775_v33  ;;  %v7153_v36 = vrot.slane %v179_v7, %v5158_v15 }
  0xe9   :  { %4747 = vmatmul.mubr.msk.bf16.gmra.mrb[80].mxu1 %vm4746_vm8, %v5110_v48  ;;  %4717 = vmatprep.mubr.msk.bf16.mxu0 %vm4716_vm0, %v5110_v48  ;;  %vm4752_vm13 = vmpackc.low %vm1543_vm15, %vm1527_vm1  ;;  %vm1540_vm8 = vcmp.eq.s32.totalorder %v5943_v24, %v6815_v14  ;;  %vm1526_vm0 = vcmp.eq.s32.totalorder %v5930_v18, %v6844_v17  ;;  %vm1556_vm15 = vcmp.eq.s32.totalorder %v6002_v58, %v6815_v14 }
  0xea   :  { %4749 = vmatprep.mubr.msk.bf16.mxu1 %vm4748_vm9, %v5110_v48  ;;  %2907 = vmatpush1.bf16.xpose.msra.mxu0 %v2312_v4  ;;  %vm1542_vm9 = vcmp.eq.s32.totalorder %v5943_v24, %v6844_v17  ;;  %vm4722_vm3 = vmpackc.low %vm1540_vm8, %vm1524_vm6  ;;  %vm1337_vm6 = vcmp.eq.s32.totalorder %v5139_v2, %v7120_v19  ;;  %vm1353_vm8 = vcmp.eq.s32.totalorder %v5167_v25, %v7120_v19 }
  0xeb   :  { %3004 = vmatpush1.bf16.xpose.msra.mxu1 %v2314_v50  ;;  %vm4754_vm14 = vmpackc.low %vm1542_vm9, %vm1526_vm0  ;;  %vm1339_vm9 = vcmp.eq.s32.totalorder %v5139_v2, %v7123_v9 }
  0xec   :  { %vm4756_vm1 = vmpackc.low %vm1575_vm5, %vm1559_vm11  ;;  %vm1336_vm5 = vcmp.eq.s32.totalorder %v5139_v2, %v7150_v20 }
  0xf0   :  { %4719 = vmatmul.mubr.msk.bf16.gmra.mrb[84].mxu0 %vm4718_vm7, %v5110_v48  ;;  %vm4724_vm7 = vmpackc.low %vm1573_vm2, %vm1557_vm12  ;;  %vm1355_vm12 = vcmp.eq.s32.totalorder %v5167_v25, %v7123_v9 }
  0xf1   :  { %4751 = vmatmul.mubr.msk.bf16.gmra.mrb[84].mxu1 %vm4750_vm10, %v5110_v48  ;;  %4721 = vmatprep.mubr.msk.bf16.mxu0 %vm4720_vm4, %v5110_v48  ;;  %vm1572_vm10 = vcmp.eq.s32.totalorder %v6019_v61, %v6815_v14  ;;  %vm1558_vm4 = vcmp.eq.s32.totalorder %v6002_v58, %v6844_v17  ;;  %vm4792_vm11 = vmpackc.low %vm1355_vm12, %vm1339_vm9  ;;  %vm1368_vm12 = vcmp.eq.s32.totalorder %v5176_v28, %v7150_v20 }
  0xf2   :  { %4753 = vmatprep.mubr.msk.bf16.mxu1 %vm4752_vm13, %v5110_v48  ;;  %vm1574_vm13 = vcmp.eq.s32.totalorder %v6019_v61, %v6844_v17  ;;  %vm4726_vm0 = vmpackc.low %vm1572_vm10, %vm1556_vm15  ;;  %vm1369_vm15 = vcmp.eq.s32.totalorder %v5176_v28, %v7120_v19  ;;  %vm1385_vm10 = vcmp.eq.s32.totalorder %v5222_v45, %v7120_v19 }
  0xf3   :  { %vm4758_vm2 = vmpackc.low %vm1574_vm13, %vm1558_vm4  ;;  %vm1371_vm13 = vcmp.eq.s32.totalorder %v5176_v28, %v7123_v9 }
  0xf8   :  { %4723 = vmatmul.mubr.msk.bf16.gmra.mrb[88].mxu0 %vm4722_vm3, %v5110_v48  ;;  %vm4760_vm3 = vmpackc.low %vm1353_vm8, %vm1337_vm6  ;;  %vm1387_vm6 = vcmp.eq.s32.totalorder %v5222_v45, %v7123_v9 }
  0xf9   :  { %4755 = vmatmul.mubr.msk.bf16.gmra.mrb[88].mxu1 %vm4754_vm14, %v5110_v48  ;;  %4725 = vmatprep.mubr.msk.bf16.mxu0 %vm4724_vm7, %v5110_v48  ;;  %vm1352_vm14 = vcmp.eq.s32.totalorder %v5167_v25, %v7150_v20  ;;  %vm1338_vm7 = vcmp.eq.s32.totalorder %v5139_v2, %v7153_v36  ;;  %vm4796_vm9 = vmpackc.low %vm1387_vm6, %vm1371_vm13  ;;  %vm1400_vm6 = vcmp.eq.s32.totalorder %v5225_v46, %v7150_v20 }
  0xfa   :  { %4757 = vmatprep.mubr.msk.bf16.mxu1 %vm4756_vm1, %v5110_v48  ;;  %vm1354_vm1 = vcmp.eq.s32.totalorder %v5167_v25, %v7153_v36  ;;  %vm4762_vm4 = vmpackc.low %vm1352_vm14, %vm1336_vm5  ;;  %vm1401_vm5 = vcmp.eq.s32.totalorder %v5225_v46, %v7120_v19  ;;  %vm1417_vm14 = vcmp.eq.s32.totalorder %v5238_v49, %v7120_v19 }
  0xfb   :  { %vm4794_vm8 = vmpackc.low %vm1354_vm1, %vm1338_vm7  ;;  %vm1403_vm1 = vcmp.eq.s32.totalorder %v5225_v46, %v7123_v9 }
 0x100   :  { %4727 = vmatmul.mubr.msk.bf16.gmra.mrb[92].mxu0 %vm4726_vm0, %v5110_v48  ;;  %vm4764_vm0 = vmpackc.low %vm1385_vm10, %vm1369_vm15  ;;  %vm1419_vm15 = vcmp.eq.s32.totalorder %v5238_v49, %v7123_v9 }
 0x101   :  { %4759 = vmatmul.mubr.msk.bf16.gmra.mrb[92].mxu1 %vm4758_vm2, %v5110_v48  ;;  %4761 = vmatprep.mubr.msk.bf16.mxu0 %vm4760_vm3, %v5110_v48  ;;  %vm1384_vm2 = vcmp.eq.s32.totalorder %v5222_v45, %v7150_v20  ;;  %vm1370_vm3 = vcmp.eq.s32.totalorder %v5176_v28, %v7153_v36  ;;  %vm4800_vm13 = vmpackc.low %vm1419_vm15, %vm1403_vm1  ;;  %vm1432_vm15 = vcmp.eq.s32.totalorder %v5247_v54, %v7150_v20 }
 0x102   :  { %4793 = vmatprep.mubr.msk.bf16.mxu1 %vm4792_vm11, %v5110_v48  ;;  %vm1386_vm11 = vcmp.eq.s32.totalorder %v5222_v45, %v7153_v36  ;;  %vm4766_vm7 = vmpackc.low %vm1384_vm2, %vm1368_vm12  ;;  %vm1433_vm12 = vcmp.eq.s32.totalorder %v5247_v54, %v7120_v19  ;;  %vm1449_vm2 = vcmp.eq.s32.totalorder %v5250_v55, %v7120_v19 }
 0x103   :  { %vm4798_vm10 = vmpackc.low %vm1386_vm11, %vm1370_vm3  ;;  %vm1435_vm11 = vcmp.eq.s32.totalorder %v5247_v54, %v7123_v9 }
 0x108   :  { %4763 = vmatmul.mubr.msk.bf16.vlgmr.msra.gmra.mrb[96].mxu0 %vm4762_vm4, %v5110_v48  ;;  %vm4768_vm4 = vmpackc.low %vm1417_vm14, %vm1401_vm5  ;;  %vm1451_vm5 = vcmp.eq.s32.totalorder %v5250_v55, %v7123_v9 }
 0x109   :  { %4795 = vmatmul.mubr.msk.bf16.vlgmr.msra.gmra.mrb[96].mxu1 %vm4794_vm8, %v5110_v48  ;;  %4765 = vmatprep.mubr.msk.bf16.mxu0 %vm4764_vm0, %v5110_v48  ;;  %vm1416_vm8 = vcmp.eq.s32.totalorder %v5238_v49, %v7150_v20  ;;  %vm1402_vm0 = vcmp.eq.s32.totalorder %v5225_v46, %v7153_v36  ;;  %vm4804_vm1 = vmpackc.low %vm1451_vm5, %vm1435_vm11  ;;  %vm1464_vm5 = vcmp.eq.s32.totalorder %v5651_v63, %v7150_v20 }
 0x10a   :  { %4797 = vmatprep.mubr.msk.bf16.mxu1 %vm4796_vm9, %v5110_v48  ;;  %vm1418_vm9 = vcmp.eq.s32.totalorder %v5238_v49, %v7153_v36  ;;  %vm4770_vm3 = vmpackc.low %vm1416_vm8, %vm1400_vm6  ;;  %vm1465_vm6 = vcmp.eq.s32.totalorder %v5651_v63, %v7120_v19  ;;  %vm1481_vm8 = vcmp.eq.s32.totalorder %v5733_v0, %v7120_v19 }
 0x10b   :  { %vm4802_vm14 = vmpackc.low %vm1418_vm9, %vm1402_vm0  ;;  %vm1467_vm9 = vcmp.eq.s32.totalorder %v5651_v63, %v7123_v9 }
 0x110   :  { %4767 = vmatmul.mubr.msk.bf16.gmra.mrb[100].mxu0 %vm4766_vm7, %v5110_v48  ;;  %vm4772_vm7 = vmpackc.low %vm1449_vm2, %vm1433_vm12  ;;  %vm1483_vm12 = vcmp.eq.s32.totalorder %v5733_v0, %v7123_v9 }
 0x111   :  { %4799 = vmatmul.mubr.msk.bf16.gmra.mrb[100].mxu1 %vm4798_vm10, %v5110_v48  ;;  %4769 = vmatprep.mubr.msk.bf16.mxu0 %vm4768_vm4, %v5110_v48  ;;  %vm1448_vm10 = vcmp.eq.s32.totalorder %v5250_v55, %v7150_v20  ;;  %vm1434_vm4 = vcmp.eq.s32.totalorder %v5247_v54, %v7153_v36  ;;  %vm4808_vm11 = vmpackc.low %vm1483_vm12, %vm1467_vm9  ;;  %vm1496_vm12 = vcmp.eq.s32.totalorder %v5826_v37, %v7150_v20 }
 0x112   :  { %4801 = vmatprep.mubr.msk.bf16.mxu1 %vm4800_vm13, %v5110_v48  ;;  %vm1450_vm13 = vcmp.eq.s32.totalorder %v5250_v55, %v7153_v36  ;;  %vm4774_vm0 = vmpackc.low %vm1448_vm10, %vm1432_vm15  ;;  %vm1497_vm15 = vcmp.eq.s32.totalorder %v5826_v37, %v7120_v19  ;;  %vm1513_vm10 = vcmp.eq.s32.totalorder %v5839_v41, %v7120_v19 }
 0x113   :  { %vm4806_vm2 = vmpackc.low %vm1450_vm13, %vm1434_vm4  ;;  %vm1499_vm13 = vcmp.eq.s32.totalorder %v5826_v37, %v7123_v9 }
 0x118   :  { %4771 = vmatmul.mubr.msk.bf16.gmra.mrb[104].mxu0 %vm4770_vm3, %v5110_v48  ;;  %vm4776_vm3 = vmpackc.low %vm1481_vm8, %vm1465_vm6  ;;  %vm1515_vm6 = vcmp.eq.s32.totalorder %v5839_v41, %v7123_v9 }
 0x119   :  { %4803 = vmatmul.mubr.msk.bf16.gmra.mrb[104].mxu1 %vm4802_vm14, %v5110_v48  ;;  %4773 = vmatprep.mubr.msk.bf16.mxu0 %vm4772_vm7, %v5110_v48  ;;  %vm1480_vm14 = vcmp.eq.s32.totalorder %v5733_v0, %v7150_v20  ;;  %vm1466_vm7 = vcmp.eq.s32.totalorder %v5651_v63, %v7153_v36  ;;  %vm4812_vm9 = vmpackc.low %vm1515_vm6, %vm1499_vm13  ;;  %vm1528_vm6 = vcmp.eq.s32.totalorder %v5930_v18, %v7150_v20 }
 0x11a   :  { %4805 = vmatprep.mubr.msk.bf16.mxu1 %vm4804_vm1, %v5110_v48  ;;  %vm1482_vm1 = vcmp.eq.s32.totalorder %v5733_v0, %v7153_v36  ;;  %vm4778_vm4 = vmpackc.low %vm1480_vm14, %vm1464_vm5  ;;  %vm1529_vm5 = vcmp.eq.s32.totalorder %v5930_v18, %v7120_v19  ;;  %vm1545_vm14 = vcmp.eq.s32.totalorder %v5943_v24, %v7120_v19 }
 0x11b   :  { %v2350_v2 = vpop.f32.mrb[0].mxu0  ;;  %vm4810_vm8 = vmpackc.low %vm1482_vm1, %vm1466_vm7  ;;  %vm1531_vm1 = vcmp.eq.s32.totalorder %v5930_v18, %v7123_v9 }
 0x11c   :  { %v2447_v15 = vpop.f32.mrb[0].mxu1  ;;  %v2352_v25 = vpop.f32.mrb[1].mxu0 }
 0x11d   :  { %v7235_v28 = vadd.f32 %v2447_v15, %v2350_v2  ;;  %v2449_v45 = vpop.f32.mrb[1].mxu1  ;;  %v2353_v46 = vpop.f32.mrb[2].mxu0 }
 0x11e   :  { %v2450_v49 = vpop.f32.mrb[2].mxu1  ;;  %v2355_v54 = vpop.f32.mrb[3].mxu0 }
 0x11f   :  { %v7237_v55 = vadd.f32 %v2450_v49, %v2353_v46  ;;  %v2452_v60 = vpop.f32.mrb[3].mxu1 }
 0x120   :  { %4775 = vmatmul.mubr.msk.bf16.gmra.mrb[108].mxu0 %vm4774_vm0, %v5110_v48  ;;  %vm4780_vm0 = vmpackc.low %vm1513_vm10, %vm1497_vm15  ;;  %vm1547_vm15 = vcmp.eq.s32.totalorder %v5943_v24, %v7123_v9 }
 0x121   :  { %4807 = vmatmul.mubr.msk.bf16.gmra.mrb[108].mxu1 %vm4806_vm2, %v5110_v48  ;;  %4777 = vmatprep.mubr.msk.bf16.mxu0 %vm4776_vm3, %v5110_v48  ;;  %vm1512_vm2 = vcmp.eq.s32.totalorder %v5839_v41, %v7150_v20  ;;  %vm1498_vm3 = vcmp.eq.s32.totalorder %v5826_v37, %v7153_v36  ;;  %vm4816_vm13 = vmpackc.low %vm1547_vm15, %vm1531_vm1  ;;  %vm1560_vm15 = vcmp.eq.s32.totalorder %v6002_v58, %v7150_v20 }
 0x122   :  { %4809 = vmatprep.mubr.msk.bf16.mxu1 %vm4808_vm11, %v5110_v48  ;;  %vm1514_vm11 = vcmp.eq.s32.totalorder %v5839_v41, %v7153_v36  ;;  %vm4782_vm7 = vmpackc.low %vm1512_vm2, %vm1496_vm12  ;;  %vm1561_vm12 = vcmp.eq.s32.totalorder %v6002_v58, %v7120_v19  ;;  %vm1577_vm2 = vcmp.eq.s32.totalorder %v6019_v61, %v7120_v19 }
 0x123   :  { %v2358_v33 = vpop.f32.mrb[4].mxu0  ;;  %vm4814_vm10 = vmpackc.low %vm1514_vm11, %vm1498_vm3  ;;  %vm1563_vm11 = vcmp.eq.s32.totalorder %v6002_v58, %v7123_v9 }
 0x124   :  { %v2455_v14 = vpop.f32.mrb[4].mxu1  ;;  %v2360_v10 = vpop.f32.mrb[5].mxu0 }
 0x125   :  { %v7259_v63 = vadd.f32 %v2455_v14, %v2358_v33  ;;  %v2457_v11 = vpop.f32.mrb[5].mxu1  ;;  %v2361_v0 = vpop.f32.mrb[6].mxu0 }
 0x126   :  { %v2458_v8 = vpop.f32.mrb[6].mxu1  ;;  %v2363_v13 = vpop.f32.mrb[7].mxu0 }
 0x127   :  { %v7261_v44 = vadd.f32 %v2458_v8, %v2361_v0  ;;  %v2460_v21 = vpop.f32.mrb[7].mxu1 }
 0x128   :  { %4779 = vmatmul.mubr.msk.bf16.gmra.mrb[112].mxu0 %vm4778_vm4, %v5110_v48  ;;  %vm4784_vm4 = vmpackc.low %vm1545_vm14, %vm1529_vm5  ;;  %vm1579_vm5 = vcmp.eq.s32.totalorder %v6019_v61, %v7123_v9 }
 0x129   :  { %4811 = vmatmul.mubr.msk.bf16.gmra.mrb[112].mxu1 %vm4810_vm8, %v5110_v48  ;;  %4781 = vmatprep.mubr.msk.bf16.mxu0 %vm4780_vm0, %v5110_v48  ;;  %vm1544_vm8 = vcmp.eq.s32.totalorder %v5943_v24, %v7150_v20  ;;  %vm1530_vm0 = vcmp.eq.s32.totalorder %v5930_v18, %v7153_v36  ;;  %vm4820_vm1 = vmpackc.low %vm1579_vm5, %vm1563_vm11  ;;  %vm8179_vm5 = vcmp.lt.s32.totalorder %v6002_v58, 117 }
 0x12a   :  { %4813 = vmatprep.mubr.msk.bf16.mxu1 %vm4812_vm9, %v5110_v48  ;;  %vm1546_vm9 = vcmp.eq.s32.totalorder %v5943_v24, %v7153_v36  ;;  %vm4786_vm3 = vmpackc.low %vm1544_vm8, %vm1528_vm6 }
 0x12b   :  { %v2366_v17 = vpop.f32.mrb[8].mxu0  ;;  %vm4818_vm14 = vmpackc.low %vm1546_vm9, %vm1530_vm0  ;;  %vm20_vm0 = vcmask 654336   ;;  %vm3432_vm9 = vcmask 523264  }
 0x12c   :  { %v2463_v16 = vpop.f32.mrb[8].mxu1  ;;  %v2368_v23 = vpop.f32.mrb[9].mxu0  ;;  %21 = vst.msk [vmem:[#allocation2] sm:$0xff] %vm20_vm0, %v8162_v32  ;;  %22 = vst.msk [vmem:[#allocation2 + $0x8] sm:$0xff] %vm20_vm0, %v8162_v32 }
 0x12d   :  { %v7283_v37 = vadd.f32 %v2463_v16, %v2366_v17  ;;  %v2465_v22 = vpop.f32.mrb[9].mxu1  ;;  %v2369_v41 = vpop.f32.mrb[10].mxu0  ;;  %23 = vst.msk [vmem:[#allocation2 + $0x10] sm:$0xff] %vm20_vm0, %v8162_v32  ;;  %24 = vst.msk [vmem:[#allocation2 + $0x18] sm:$0xff] %vm20_vm0, %v8162_v32 }
 0x12e   :  { %v2466_v26 = vpop.f32.mrb[10].mxu1  ;;  %v2371_v57 = vpop.f32.mrb[11].mxu0  ;;  %25 = vst.msk [vmem:[#allocation2 + $0x20] sm:$0xff] %vm20_vm0, %v8162_v32  ;;  %26 = vst.msk [vmem:[#allocation2 + $0x28] sm:$0xff] %vm20_vm0, %v8162_v32 }
 0x12f   :  { %v7285_v30 = vadd.f32 %v2466_v26, %v2369_v41  ;;  %v2468_v29 = vpop.f32.mrb[11].mxu1  ;;  %27 = vst.msk [vmem:[#allocation2 + $0x30] sm:$0xff] %vm20_vm0, %v8162_v32  ;;  %28 = vst.msk [vmem:[#allocation2 + $0x38] sm:$0xff] %vm20_vm0, %v8162_v32 }
 0x130   :  { %4783 = vmatmul.mubr.msk.bf16.gmra.mrb[116].mxu0 %vm4782_vm7, %v5110_v48  ;;  %vm4788_vm7 = vmpackc.low %vm1577_vm2, %vm1561_vm12  ;;  %29 = vst.msk [vmem:[#allocation2 + $0x40] sm:$0xff] %vm20_vm0, %v8162_v32 }
 0x131   :  { %4815 = vmatmul.mubr.msk.bf16.gmra.mrb[116].mxu1 %vm4814_vm10, %v5110_v48  ;;  %4785 = vmatprep.mubr.msk.bf16.mxu0 %vm4784_vm4, %v5110_v48  ;;  %vm1576_vm10 = vcmp.eq.s32.totalorder %v6019_v61, %v7150_v20  ;;  %vm1562_vm4 = vcmp.eq.s32.totalorder %v6002_v58, %v7153_v36  ;;  %30 = vst.msk [vmem:[#allocation2 + $0x48] sm:$0xff] %vm20_vm0, %v8162_v32  ;;  %31 = vst.msk [vmem:[#allocation2 + $0x50] sm:$0xff] %vm20_vm0, %v8162_v32 }
 0x132   :  { %4817 = vmatprep.mubr.msk.bf16.mxu1 %vm4816_vm13, %v5110_v48  ;;  %vm1578_vm13 = vcmp.eq.s32.totalorder %v6019_v61, %v7153_v36  ;;  %vm4790_vm6 = vmpackc.low %vm1576_vm10, %vm1560_vm15  ;;  %32 = vst.msk [vmem:[#allocation2 + $0x58] sm:$0xff] %vm20_vm0, %v8162_v32 }
 0x133   :  { %v2374_v1 = vpop.f32.mrb[12].mxu0  ;;  %vm4822_vm8 = vmpackc.low %vm1578_vm13, %vm1562_vm4  ;;  %33 = vst.msk [vmem:[#allocation2 + $0x60] sm:$0xff] %vm20_vm0, %v8162_v32  ;;  %vm3689_vm4 = vcmask 548368  }
 0x134   :  { %v2471_v12 = vpop.f32.mrb[12].mxu1  ;;  %v2376_v5 = vpop.f32.mrb[13].mxu0  ;;  %34 = vst.msk [vmem:[#allocation2 + $0x68] sm:$0xff] %vm20_vm0, %v8162_v32  ;;  %35 = vst.msk [vmem:[#allocation2 + $0x70] sm:$0xff] %vm20_vm0, %v8162_v32 }
 0x135   :  { %v7307_v18 = vadd.f32 %v2471_v12, %v2374_v1  ;;  %v2473_v42 = vpop.f32.mrb[13].mxu1  ;;  %v2377_v24 = vpop.f32.mrb[14].mxu0  ;;  %36 = vst.msk [vmem:[#allocation2 + $0x78] sm:$0xff] %vm20_vm0, %v8162_v32 }
 0x136   :  { %v2474_v27 = vpop.f32.mrb[14].mxu1  ;;  %v2379_v31 = vpop.f32.mrb[15].mxu0 }
 0x137   :  { %v7309_v38 = vadd.f32 %v2474_v27, %v2377_v24  ;;  %v2476_v39 = vpop.f32.mrb[15].mxu1 }
 0x138   :  { %4787 = vmatmul.mubr.msk.bf16.gmra.mrb[120].mxu0 %vm4786_vm3, %v5110_v48 }
 0x139   :  { %4819 = vmatmul.mubr.msk.bf16.gmra.mrb[120].mxu1 %vm4818_vm14, %v5110_v48  ;;  %4789 = vmatprep.mubr.msk.bf16.mxu0 %vm4788_vm7, %v5110_v48 }
 0x13a   :  { %4821 = vmatprep.mubr.msk.bf16.mxu1 %vm4820_vm1, %v5110_v48 }
 0x13b   :  { %v2382_v40 = vpop.f32.mrb[16].mxu0 }
 0x13c   :  { %v2479_v43 = vpop.f32.mrb[16].mxu1  ;;  %v2384_v47 = vpop.f32.mrb[17].mxu0 }
 0x13d   :  { %v7323_v51 = vadd.f32 %v2479_v43, %v2382_v40  ;;  %v2481_v6 = vpop.f32.mrb[17].mxu1  ;;  %v2385_v59 = vpop.f32.mrb[18].mxu0 }
 0x13e   :  { %v2482_v52 = vpop.f32.mrb[18].mxu1  ;;  %v2387_v3 = vpop.f32.mrb[19].mxu0 }
 0x13f   :  { %v7325_v34 = vadd.f32 %v2482_v52, %v2385_v59  ;;  %v2484_v62 = vpop.f32.mrb[19].mxu1 }
 0x140   :  { %4791 = vmatmul.mubr.msk.bf16.gmra.mrb[124].mxu0 %vm4790_vm6, %v5110_v48 }
 0x141   :  { %4823 = vmatmul.mubr.msk.bf16.gmra.mrb[124].mxu1 %vm4822_vm8, %v5110_v48 }
 0x143   :  { %v2390_v4 = vpop.f32.mrb[20].mxu0 }
 0x144   :  { %v2487_v50 = vpop.f32.mrb[20].mxu1  ;;  %v2392_v61 = vpop.f32.mrb[21].mxu0 }
 0x145   :  { %v7329_v56 = vadd.f32 %v2487_v50, %v2390_v4  ;;  %v2489_v53 = vpop.f32.mrb[21].mxu1  ;;  %v2393_v19 = vpop.f32.mrb[22].mxu0 }
 0x146   :  { %v2490_v9 = vpop.f32.mrb[22].mxu1  ;;  %v2395_v35 = vpop.f32.mrb[23].mxu0 }
 0x147   :  { %v7331_v7 = vadd.f32 %v2490_v9, %v2393_v19  ;;  %v2492_v20 = vpop.f32.mrb[23].mxu1 }
 0x14b   :  { %v2398_v36 = vpop.f32.mrb[24].mxu0 }
 0x14c   :  { %v2495_v2 = vpop.f32.mrb[24].mxu1  ;;  %v2400_v15 = vpop.f32.mrb[25].mxu0 }
 0x14d   :  { %v7333_v25 = vadd.f32 %v2495_v2, %v2398_v36  ;;  %v2497_v45 = vpop.f32.mrb[25].mxu1  ;;  %v2401_v46 = vpop.f32.mrb[26].mxu0 }
 0x14e   :  { %v2498_v48 = vpop.f32.mrb[26].mxu1  ;;  %v2403_v49 = vpop.f32.mrb[27].mxu0 }
 0x14f   :  { %v7335_v54 = vadd.f32 %v2498_v48, %v2401_v46  ;;  %v2500_v60 = vpop.f32.mrb[27].mxu1 }
 0x153   :  { %v2406_v33 = vpop.f32.mrb[28].mxu0 }
 0x154   :  { %v2503_v14 = vpop.f32.mrb[28].mxu1  ;;  %v2408_v10 = vpop.f32.mrb[29].mxu0 }
 0x155   :  { %v7337_v11 = vadd.f32 %v2503_v14, %v2406_v33  ;;  %v2505_v0 = vpop.f32.mrb[29].mxu1  ;;  %v2409_v8 = vpop.f32.mrb[30].mxu0 }
 0x156   :  { %v2506_v13 = vpop.f32.mrb[30].mxu1  ;;  %v2411_v21 = vpop.f32.mrb[31].mxu0 }
 0x157   :  { %v7339_v17 = vadd.f32 %v2506_v13, %v2409_v8  ;;  %v2508_v16 = vpop.f32.mrb[31].mxu1 }
 0x15b   :  { %v2544_v23 = vpop.f32.mrb[32].mxu0 }
 0x15c   :  { %v2545_v22 = vadd.f32 %v2544_v23, %v7235_v28  ;;  %v2641_v41 = vpop.f32.mrb[32].mxu1  ;;  %v2546_v26 = vpop.f32.mrb[33].mxu0 }
 0x15d   :  { %v2643_v57 = vpop.f32.mrb[33].mxu1  ;;  %v2547_v29 = vpop.f32.mrb[34].mxu0 }
 0x15e   :  { %v7374_v1 = vadd.f32 %v2641_v41, %v2545_v22  ;;  %v2548_v12 = vadd.f32 %v2547_v29, %v7237_v55  ;;  %v2644_v5 = vpop.f32.mrb[34].mxu1  ;;  %v2549_v42 = vpop.f32.mrb[35].mxu0 }
 0x15f   :  { %v2646_v24 = vpop.f32.mrb[35].mxu1 }
 0x160   :  { %v7377_v27 = vadd.f32 %v2644_v5, %v2548_v12 }
 0x163   :  { %v2552_v31 = vpop.f32.mrb[36].mxu0 }
 0x164   :  { %v2553_v39 = vadd.f32 %v2552_v31, %v7259_v63  ;;  %v2649_v40 = vpop.f32.mrb[36].mxu1  ;;  %v2554_v43 = vpop.f32.mrb[37].mxu0 }
 0x165   :  { %v2651_v47 = vpop.f32.mrb[37].mxu1  ;;  %v2555_v28 = vpop.f32.mrb[38].mxu0 }
 0x166   :  { %v7380_v6 = vadd.f32 %v2649_v40, %v2553_v39  ;;  %v2556_v59 = vadd.f32 %v2555_v28, %v7261_v44  ;;  %v2652_v52 = vpop.f32.mrb[38].mxu1  ;;  %v2557_v3 = vpop.f32.mrb[39].mxu0 }
 0x167   :  { %v2654_v62 = vpop.f32.mrb[39].mxu1 }
 0x168   :  { %v7383_v55 = vadd.f32 %v2652_v52, %v2556_v59 }
 0x16b   :  { %v2560_v4 = vpop.f32.mrb[40].mxu0 }
 0x16c   :  { %v2561_v50 = vadd.f32 %v2560_v4, %v7283_v37  ;;  %v2657_v61 = vpop.f32.mrb[40].mxu1  ;;  %v2562_v53 = vpop.f32.mrb[41].mxu0 }
 0x16d   :  { %v2659_v19 = vpop.f32.mrb[41].mxu1  ;;  %v2563_v63 = vpop.f32.mrb[42].mxu0 }
 0x16e   :  { %v7386_v9 = vadd.f32 %v2657_v61, %v2561_v50  ;;  %v2564_v35 = vadd.f32 %v2563_v63, %v7285_v30  ;;  %v2660_v20 = vpop.f32.mrb[42].mxu1  ;;  %v2565_v36 = vpop.f32.mrb[43].mxu0 }
 0x16f   :  { %v2662_v2 = vpop.f32.mrb[43].mxu1 }
 0x170   :  { %v7389_v44 = vadd.f32 %v2660_v20, %v2564_v35 }
 0x173   :  { %v2568_v15 = vpop.f32.mrb[44].mxu0 }
 0x174   :  { %v2569_v45 = vadd.f32 %v2568_v15, %v7307_v18  ;;  %v2665_v46 = vpop.f32.mrb[44].mxu1  ;;  %v2570_v48 = vpop.f32.mrb[45].mxu0 }
 0x175   :  { %v2667_v49 = vpop.f32.mrb[45].mxu1  ;;  %v2571_v37 = vpop.f32.mrb[46].mxu0 }
 0x176   :  { %v7392_v60 = vadd.f32 %v2665_v46, %v2569_v45  ;;  %v2572_v33 = vadd.f32 %v2571_v37, %v7309_v38  ;;  %v2668_v14 = vpop.f32.mrb[46].mxu1  ;;  %v2573_v10 = vpop.f32.mrb[47].mxu0 }
 0x177   :  { %v2670_v0 = vpop.f32.mrb[47].mxu1 }
 0x178   :  { %v7395_v30 = vadd.f32 %v2668_v14, %v2572_v33 }
 0x17b   :  { %v2576_v8 = vpop.f32.mrb[48].mxu0 }
 0x17c   :  { %v2577_v13 = vadd.f32 %v2576_v8, %v7323_v51  ;;  %v2673_v21 = vpop.f32.mrb[48].mxu1  ;;  %v2578_v16 = vpop.f32.mrb[49].mxu0 }
 0x17d   :  { %v2675_v23 = vpop.f32.mrb[49].mxu1  ;;  %v2579_v18 = vpop.f32.mrb[50].mxu0 }
 0x17e   :  { %v7398_v22 = vadd.f32 %v2673_v21, %v2577_v13  ;;  %v2580_v41 = vadd.f32 %v2579_v18, %v7325_v34  ;;  %v2676_v26 = vpop.f32.mrb[50].mxu1  ;;  %v2581_v57 = vpop.f32.mrb[51].mxu0 }
 0x17f   :  { %v2678_v29 = vpop.f32.mrb[51].mxu1 }
 0x180   :  { %v7401_v38 = vadd.f32 %v2676_v26, %v2580_v41 }
 0x183   :  { %v2584_v12 = vpop.f32.mrb[52].mxu0 }
 0x184   :  { %v2585_v5 = vadd.f32 %v2584_v12, %v7329_v56  ;;  %v2681_v42 = vpop.f32.mrb[52].mxu1  ;;  %v2586_v24 = vpop.f32.mrb[53].mxu0 }
 0x185   :  { %v2683_v31 = vpop.f32.mrb[53].mxu1  ;;  %v2587_v51 = vpop.f32.mrb[54].mxu0 }
 0x186   :  { %v7404_v39 = vadd.f32 %v2681_v42, %v2585_v5  ;;  %v2588_v40 = vadd.f32 %v2587_v51, %v7331_v7  ;;  %v2684_v43 = vpop.f32.mrb[54].mxu1  ;;  %v2589_v47 = vpop.f32.mrb[55].mxu0 }
 0x187   :  { %v2686_v28 = vpop.f32.mrb[55].mxu1 }
 0x188   :  { %v7407_v34 = vadd.f32 %v2684_v43, %v2588_v40 }
 0x18b   :  { %v2592_v59 = vpop.f32.mrb[56].mxu0 }
 0x18c   :  { %v2593_v52 = vadd.f32 %v2592_v59, %v7333_v25  ;;  %v2689_v3 = vpop.f32.mrb[56].mxu1  ;;  %v2594_v62 = vpop.f32.mrb[57].mxu0 }
 0x18d   :  { %v2691_v4 = vpop.f32.mrb[57].mxu1  ;;  %v2595_v56 = vpop.f32.mrb[58].mxu0 }
 0x18e   :  { %v7410_v50 = vadd.f32 %v2689_v3, %v2593_v52  ;;  %v2596_v61 = vadd.f32 %v2595_v56, %v7335_v54  ;;  %v2692_v53 = vpop.f32.mrb[58].mxu1  ;;  %v2597_v19 = vpop.f32.mrb[59].mxu0 }
 0x18f   :  { %v2694_v63 = vpop.f32.mrb[59].mxu1 }
 0x190   :  { %v7413_v7 = vadd.f32 %v2692_v53, %v2596_v61 }
 0x193   :  { %v2600_v35 = vpop.f32.mrb[60].mxu0 }
 0x194   :  { %v2601_v20 = vadd.f32 %v2600_v35, %v7337_v11  ;;  %v2697_v36 = vpop.f32.mrb[60].mxu1  ;;  %v2602_v2 = vpop.f32.mrb[61].mxu0 }
 0x195   :  { %v2699_v15 = vpop.f32.mrb[61].mxu1  ;;  %v2603_v25 = vpop.f32.mrb[62].mxu0 }
 0x196   :  { %v7416_v45 = vadd.f32 %v2697_v36, %v2601_v20  ;;  %v2604_v46 = vadd.f32 %v2603_v25, %v7339_v17  ;;  %v2700_v48 = vpop.f32.mrb[62].mxu1  ;;  %v2605_v49 = vpop.f32.mrb[63].mxu0 }
 0x197   :  { %v2702_v37 = vpop.f32.mrb[63].mxu1 }
 0x198   :  { %v7419_v54 = vadd.f32 %v2700_v48, %v2604_v46 }
 0x19b   :  { %v2738_v33 = vpop.f32.mrb[64].mxu0 }
 0x19c   :  { %v2739_v14 = vadd.f32 %v2738_v33, %v7374_v1  ;;  %v2835_v10 = vpop.f32.mrb[64].mxu1  ;;  %v2740_v0 = vpop.f32.mrb[65].mxu0 }
 0x19d   :  { %v2837_v8 = vpop.f32.mrb[65].mxu1  ;;  %v2741_v11 = vpop.f32.mrb[66].mxu0 }
 0x19e   :  { %v7422_v13 = vadd.f32 %v2835_v10, %v2739_v14  ;;  %v2742_v21 = vadd.f32 %v2741_v11, %v7377_v27  ;;  %v2838_v16 = vpop.f32.mrb[66].mxu1  ;;  %v2743_v23 = vpop.f32.mrb[67].mxu0 }
 0x19f   :  { %v2840_v18 = vpop.f32.mrb[67].mxu1 }
 0x1a0   :  { %v7425_v17 = vadd.f32 %v2838_v16, %v2742_v21 }
 0x1a3   :  { %v2746_v41 = vpop.f32.mrb[68].mxu0 }
 0x1a4   :  { %v2747_v26 = vadd.f32 %v2746_v41, %v7380_v6  ;;  %v2843_v57 = vpop.f32.mrb[68].mxu1  ;;  %v2748_v29 = vpop.f32.mrb[69].mxu0 }
 0x1a5   :  { %v2845_v12 = vpop.f32.mrb[69].mxu1  ;;  %v2749_v1 = vpop.f32.mrb[70].mxu0 }
 0x1a6   :  { %v7428_v5 = vadd.f32 %v2843_v57, %v2747_v26  ;;  %v2750_v42 = vadd.f32 %v2749_v1, %v7383_v55  ;;  %v2846_v24 = vpop.f32.mrb[70].mxu1  ;;  %v2751_v31 = vpop.f32.mrb[71].mxu0 }
 0x1a7   :  { %v2848_v51 = vpop.f32.mrb[71].mxu1 }
 0x1a8   :  { %v7431_v27 = vadd.f32 %v2846_v24, %v2750_v42 }
 0x1ab   :  { %v2754_v40 = vpop.f32.mrb[72].mxu0 }
 0x1ac   :  { %v2755_v43 = vadd.f32 %v2754_v40, %v7386_v9  ;;  %v2851_v47 = vpop.f32.mrb[72].mxu1  ;;  %v2756_v28 = vpop.f32.mrb[73].mxu0 }
 0x1ad   :  { %v2853_v59 = vpop.f32.mrb[73].mxu1  ;;  %v2757_v6 = vpop.f32.mrb[74].mxu0 }
 0x1ae   :  { %v7434_v52 = vadd.f32 %v2851_v47, %v2755_v43  ;;  %v2758_v3 = vadd.f32 %v2757_v6, %v7389_v44  ;;  %v2854_v62 = vpop.f32.mrb[74].mxu1  ;;  %v2759_v4 = vpop.f32.mrb[75].mxu0 }
 0x1af   :  { %v2856_v56 = vpop.f32.mrb[75].mxu1 }
 0x1b0   :  { %v7437_v55 = vadd.f32 %v2854_v62, %v2758_v3 }
 0x1b3   :  { %v2762_v61 = vpop.f32.mrb[76].mxu0 }
 0x1b4   :  { %v2763_v53 = vadd.f32 %v2762_v61, %v7392_v60  ;;  %v2859_v19 = vpop.f32.mrb[76].mxu1  ;;  %v2764_v63 = vpop.f32.mrb[77].mxu0 }
 0x1b5   :  { %v2861_v35 = vpop.f32.mrb[77].mxu1  ;;  %v2765_v9 = vpop.f32.mrb[78].mxu0 }
 0x1b6   :  { %v7440_v20 = vadd.f32 %v2859_v19, %v2763_v53  ;;  %v2766_v36 = vadd.f32 %v2765_v9, %v7395_v30  ;;  %v2862_v2 = vpop.f32.mrb[78].mxu1  ;;  %v2767_v15 = vpop.f32.mrb[79].mxu0 }
 0x1b7   :  { %v2864_v25 = vpop.f32.mrb[79].mxu1 }
 0x1b8   :  { %v7443_v44 = vadd.f32 %v2862_v2, %v2766_v36 }
 0x1bb   :  { %v2770_v46 = vpop.f32.mrb[80].mxu0 }
 0x1bc   :  { %v2771_v48 = vadd.f32 %v2770_v46, %v7398_v22  ;;  %v2867_v49 = vpop.f32.mrb[80].mxu1  ;;  %v2772_v37 = vpop.f32.mrb[81].mxu0  ;;  %v2220_v46 = vld [vmem:[#allocation2] sm:$0xff] }
 0x1bd   :  { %v2869_v33 = vpop.f32.mrb[81].mxu1  ;;  %v2773_v60 = vpop.f32.mrb[82].mxu0 }
 0x1be   :  { %v7446_v14 = vadd.f32 %v2867_v49, %v2771_v48  ;;  %v2774_v10 = vadd.f32 %v2773_v60, %v7401_v38  ;;  %v2870_v0 = vpop.f32.mrb[82].mxu1  ;;  %v2775_v8 = vpop.f32.mrb[83].mxu0 }
 0x1bf   :  { %v2872_v11 = vpop.f32.mrb[83].mxu1 }
 0x1c0   :  { %v7449_v30 = vadd.f32 %v2870_v0, %v2774_v10  ;;  %v2221_v10 = vld [vmem:[#allocation2 + $0x8] sm:$0xff] }
 0x1c3   :  { %v2778_v21 = vpop.f32.mrb[84].mxu0 }
 0x1c4   :  { %v2779_v16 = vadd.f32 %v2778_v21, %v7404_v39  ;;  %v2875_v23 = vpop.f32.mrb[84].mxu1  ;;  %v2780_v18 = vpop.f32.mrb[85].mxu0 }
 0x1c5   :  { %v2877_v41 = vpop.f32.mrb[85].mxu1  ;;  %v2781_v22 = vpop.f32.mrb[86].mxu0 }
 0x1c6   :  { %v7452_v26 = vadd.f32 %v2875_v23, %v2779_v16  ;;  %v2782_v57 = vadd.f32 %v2781_v22, %v7407_v34  ;;  %v2878_v29 = vpop.f32.mrb[86].mxu1  ;;  %v2783_v12 = vpop.f32.mrb[87].mxu0  ;;  %v2222_v41 = vld [vmem:[#allocation2 + $0x10] sm:$0xff] }
 0x1c7   :  { %v2880_v1 = vpop.f32.mrb[87].mxu1 }
 0x1c8   :  { %v7455_v38 = vadd.f32 %v2878_v29, %v2782_v57  ;;  %v2223_v1 = vld [vmem:[#allocation2 + $0x18] sm:$0xff] }
 0x1cb   :  { %v2786_v42 = vpop.f32.mrb[88].mxu0 }
 0x1cc   :  { %v2787_v24 = vadd.f32 %v2786_v42, %v7410_v50  ;;  %v2883_v31 = vpop.f32.mrb[88].mxu1  ;;  %v2788_v51 = vpop.f32.mrb[89].mxu0 }
 0x1cd   :  { %v2885_v40 = vpop.f32.mrb[89].mxu1  ;;  %v2789_v39 = vpop.f32.mrb[90].mxu0 }
 0x1ce   :  { %v7458_v43 = vadd.f32 %v2883_v31, %v2787_v24  ;;  %v2790_v47 = vadd.f32 %v2789_v39, %v7413_v7  ;;  %v2886_v28 = vpop.f32.mrb[90].mxu1  ;;  %v2791_v59 = vpop.f32.mrb[91].mxu0 }
 0x1cf   :  { %v2888_v6 = vpop.f32.mrb[91].mxu1 }
 0x1d0   :  { %v7461_v34 = vadd.f32 %v2886_v28, %v2790_v47  ;;  %v2224_v6 = vld [vmem:[#allocation2 + $0x20] sm:$0xff] }
 0x1d3   :  { %v2794_v3 = vpop.f32.mrb[92].mxu0 }
 0x1d4   :  { %v2795_v62 = vadd.f32 %v2794_v3, %v7416_v45  ;;  %v2891_v4 = vpop.f32.mrb[92].mxu1  ;;  %v2796_v56 = vpop.f32.mrb[93].mxu0 }
 0x1d5   :  { %v2893_v61 = vpop.f32.mrb[93].mxu1  ;;  %v2797_v50 = vpop.f32.mrb[94].mxu0 }
 0x1d6   :  { %v7464_v53 = vadd.f32 %v2891_v4, %v2795_v62  ;;  %v2798_v19 = vadd.f32 %v2797_v50, %v7419_v54  ;;  %v2894_v63 = vpop.f32.mrb[94].mxu1  ;;  %v2799_v35 = vpop.f32.mrb[95].mxu0  ;;  %v2225_v50 = vld [vmem:[#allocation2 + $0x28] sm:$0xff] }
 0x1d7   :  { %v2896_v9 = vpop.f32.mrb[95].mxu1 }
 0x1d8   :  { %v7467_v7 = vadd.f32 %v2894_v63, %v2798_v19 }
 0x1db   :  { %v2932_v36 = vpop.f32.mrb[96].mxu0 }
 0x1dc   :  { %v2933_v2 = vadd.f32 %v2932_v36, %v7422_v13  ;;  %v3029_v15 = vpop.f32.mrb[96].mxu1  ;;  %v2934_v25 = vpop.f32.mrb[97].mxu0 }
 0x1dd   :  { %v3031_v45 = vpop.f32.mrb[97].mxu1  ;;  %v2935_v48 = vpop.f32.mrb[98].mxu0 }
 0x1de   :  { %v3030_v49 = vadd.f32 %v3029_v15, %v2933_v2  ;;  %v2936_v37 = vadd.f32 %v2935_v48, %v7425_v17  ;;  %v3032_v33 = vpop.f32.mrb[98].mxu1  ;;  %v2937_v60 = vpop.f32.mrb[99].mxu0 }
 0x1df   :  { %v3034_v54 = vpop.f32.mrb[99].mxu1 }
 0x1e0   :  { %v3092_v0 = vadd.f32 %v3030_v49, %v2220_v46  ;;  %v3033_v8 = vadd.f32 %v3032_v33, %v2936_v37  ;;  %v2226_v46 = vld [vmem:[#allocation2 + $0x30] sm:$0xff]  ;;  %v2227_v33 = vld [vmem:[#allocation2 + $0x38] sm:$0xff] }
 0x1e2   :  { %3109 = vst.msk [vmem:[#allocation2] sm:$0xff] %vm20_vm0, %v3092_v0  ;;  %v3093_v11 = vadd.f32 %v3033_v8, %v2221_v10 }
 0x1e3   :  { %v2940_v21 = vpop.f32.mrb[100].mxu0 }
 0x1e4   :  { %3110 = vst.msk [vmem:[#allocation2 + $0x8] sm:$0xff] %vm20_vm0, %v3093_v11  ;;  %v2941_v13 = vadd.f32 %v2940_v21, %v7428_v5  ;;  %v2942_v16 = vpop.f32.mrb[101].mxu0  ;;  %v3037_v23 = vpop.f32.mrb[100].mxu1 }
 0x1e5   :  { %v2943_v18 = vpop.f32.mrb[102].mxu0  ;;  %v3039_v22 = vpop.f32.mrb[101].mxu1  ;;  %v2228_v16 = vld [vmem:[#allocation2 + $0x40] sm:$0xff] }
 0x1e6   :  { %v2944_v17 = vadd.f32 %v2943_v18, %v7431_v27  ;;  %v3038_v57 = vadd.f32 %v3037_v23, %v2941_v13  ;;  %v3040_v29 = vpop.f32.mrb[102].mxu1  ;;  %v2945_v12 = vpop.f32.mrb[103].mxu0 }
 0x1e7   :  { %v3042_v42 = vpop.f32.mrb[103].mxu1 }
 0x1e8   :  { %v3094_v24 = vadd.f32 %v3038_v57, %v2222_v41  ;;  %v3041_v31 = vadd.f32 %v3040_v29, %v2944_v17  ;;  %v2229_v17 = vld [vmem:[#allocation2 + $0x48] sm:$0xff] }
 0x1e9   :  { %v7475_v51 = vld [vmem:[#allocation2] sm:$0xff] }
 0x1ea   :  { %3111 = vst.msk [vmem:[#allocation2 + $0x10] sm:$0xff] %vm20_vm0, %v3094_v24  ;;  %v3095_v5 = vadd.f32 %v3041_v31, %v2223_v1  ;;  %3160 = vrot.lane.b32.xlu1 %v7475_v51, %s5111_s2  ;;  %v3433_v27 = vsel %vm3432_vm9, %v7475_v51, 0.0  ;;  %v3240_v57 = vmax.f32 %v7475_v51, 1.0 }
 0x1eb   :  { %v2948_v40 = vpop.f32.mrb[104].mxu0  ;;  %3434 = vadd.xlane.f32.xlu0 %v3433_v27 }
 0x1ec   :  { %3112 = vst.msk [vmem:[#allocation2 + $0x18] sm:$0xff] %vm20_vm0, %v3095_v5  ;;  %v2949_v39 = vadd.f32 %v2948_v40, %v7434_v52  ;;  %v2950_v47 = vpop.f32.mrb[105].mxu0  ;;  %v3045_v28 = vpop.f32.mrb[104].mxu1  ;;  %v7498_v5 = vld [vmem:[#allocation2 + $0x8] sm:$0xff]  ;;  %v2230_v40 = vld [vmem:[#allocation2 + $0x50] sm:$0xff] }
 0x1ed   :  { %v2951_v59 = vpop.f32.mrb[106].mxu0  ;;  %v3047_v3 = vpop.f32.mrb[105].mxu1  ;;  %vm3225_vm12 = vcmp.gt.f32.partialorder %v7498_v5, 0.0 }
 0x1ee   :  { %v2952_v62 = vadd.f32 %v2951_v59, %v7437_v55  ;;  %v3046_v4 = vadd.f32 %v3045_v28, %v2949_v39  ;;  %v3048_v56 = vpop.f32.mrb[106].mxu1  ;;  %v2953_v61 = vpop.f32.mrb[107].mxu0  ;;  %v2231_v3 = vld [vmem:[#allocation2 + $0x58] sm:$0xff] }
 0x1ef   :  { %v3050_v19 = vpop.f32.mrb[107].mxu1 }
 0x1f0   :  { %v3096_v63 = vadd.f32 %v3046_v4, %v2224_v6  ;;  %v3049_v35 = vadd.f32 %v3048_v56, %v2952_v62  ;;  %v3241_v62 = vmax.f32 %v7498_v5, 1.0 }
 0x1f2   :  { %3113 = vst.msk [vmem:[#allocation2 + $0x20] sm:$0xff] %vm20_vm0, %v3096_v63  ;;  %v3097_v9 = vadd.f32 %v3049_v35, %v2225_v50 }
 0x1f3   :  { %v2956_v36 = vpop.f32.mrb[108].mxu0 }
 0x1f4   :  { %3114 = vst.msk [vmem:[#allocation2 + $0x28] sm:$0xff] %vm20_vm0, %v3097_v9  ;;  %v2957_v52 = vadd.f32 %v2956_v36, %v7440_v20  ;;  %v2958_v2 = vpop.f32.mrb[109].mxu0  ;;  %v3053_v15 = vpop.f32.mrb[108].mxu1  ;;  %v2232_v9 = vld [vmem:[#allocation2 + $0x60] sm:$0xff] }
 0x1f5   :  { %v2959_v25 = vpop.f32.mrb[110].mxu0  ;;  %v3055_v55 = vpop.f32.mrb[109].mxu1 }
 0x1f6   :  { %v2960_v45 = vadd.f32 %v2959_v25, %v7443_v44  ;;  %v3054_v48 = vadd.f32 %v3053_v15, %v2957_v52  ;;  %v3056_v49 = vpop.f32.mrb[110].mxu1  ;;  %v2961_v37 = vpop.f32.mrb[111].mxu0  ;;  %v3436_v52 = vsel %vm3432_vm9, %v7498_v5, 0.0  ;;  %v2233_v55 = vld [vmem:[#allocation2 + $0x68] sm:$0xff] }
 0x1f7   :  { %v3058_v60 = vpop.f32.mrb[111].mxu1 }
 0x1f8   :  { %v3098_v10 = vadd.f32 %v3054_v48, %v2226_v46  ;;  %v3057_v54 = vadd.f32 %v3056_v49, %v2960_v45 }
 0x1fa   :  { %3115 = vst.msk [vmem:[#allocation2 + $0x30] sm:$0xff] %vm20_vm0, %v3098_v10  ;;  %v3099_v0 = vadd.f32 %v3057_v54, %v2227_v33 }
 0x1fb   :  { %v2964_v8 = vpop.f32.mrb[112].mxu0 }
 0x1fc   :  { %3116 = vst.msk [vmem:[#allocation2 + $0x38] sm:$0xff] %vm20_vm0, %v3099_v0  ;;  %v2965_v20 = vadd.f32 %v2964_v8, %v7446_v14  ;;  %v2966_v11 = vpop.f32.mrb[113].mxu0  ;;  %v3061_v21 = vpop.f32.mrb[112].mxu1 }
 0x1fd   :  { %v2967_v13 = vpop.f32.mrb[114].mxu0  ;;  %v3063_v44 = vpop.f32.mrb[113].mxu1 }
 0x1fe   :  { %v2968_v23 = vadd.f32 %v2967_v13, %v7449_v30  ;;  %v3062_v18 = vadd.f32 %v3061_v21, %v2965_v20  ;;  %v3064_v41 = vpop.f32.mrb[114].mxu1  ;;  %v2969_v22 = vpop.f32.mrb[115].mxu0  ;;  %v2235_v13 = vld [vmem:[#allocation2 + $0x78] sm:$0xff] }
 0x1ff   :  { %v3066_v29 = vpop.f32.mrb[115].mxu1 }
 0x200   :  { %v3100_v12 = vadd.f32 %v3062_v18, %v2228_v16  ;;  %v3065_v1 = vadd.f32 %v3064_v41, %v2968_v23 }
 0x201   :  { %3272 = vrot.lane.b32.xlu0 %v3240_v57, %s5112_s24  ;;  %v7531_v57 = vld [vmem:[#allocation2 + $0x20] sm:$0xff] }
 0x202   :  { %3117 = vst.msk [vmem:[#allocation2 + $0x40] sm:$0xff] %vm20_vm0, %v3100_v12  ;;  %v3101_v14 = vadd.f32 %v3065_v1, %v2229_v17  ;;  %v3244_v12 = vmax.f32 %v7531_v57, 1.0  ;;  %v7539_v1 = vld [vmem:[#allocation2 + $0x28] sm:$0xff]  ;;  %vm3228_vm7 = vcmp.gt.f32.partialorder %v7531_v57, 0.0 }
 0x203   :  { %v2972_v42 = vpop.f32.mrb[116].mxu0  ;;  %vm3229_vm1 = vcmp.gt.f32.partialorder %v7539_v1, 0.0 }
 0x204   :  { %3118 = vst.msk [vmem:[#allocation2 + $0x48] sm:$0xff] %vm20_vm0, %v3101_v14  ;;  %v2973_v30 = vadd.f32 %v2972_v42, %v7452_v26  ;;  %v2974_v24 = vpop.f32.mrb[117].mxu0  ;;  %v3069_v31 = vpop.f32.mrb[116].mxu1  ;;  %v3445_v14 = vsel %vm3432_vm9, %v7531_v57, 0.0  ;;  %v3245_v42 = vmax.f32 %v7539_v1, 1.0 }
 0x205   :  { %v2975_v27 = vpop.f32.mrb[118].mxu0  ;;  %3162 = vrot.lane.b32.xlu0 %v7498_v5, %s5111_s2  ;;  %v3071_v39 = vpop.f32.mrb[117].mxu1  ;;  %v3448_v24 = vsel %vm3432_vm9, %v7539_v1, 0.0 }
 0x206   :  { %v2976_v47 = vadd.f32 %v2975_v27, %v7455_v38  ;;  %v3070_v28 = vadd.f32 %v3069_v31, %v2973_v30  ;;  %v3072_v59 = vpop.f32.mrb[118].mxu1  ;;  %v2977_v6 = vpop.f32.mrb[119].mxu0  ;;  %v7547_v30 = vld [vmem:[#allocation2 + $0x30] sm:$0xff]  ;;  %v7554_v27 = vld [vmem:[#allocation2 + $0x38] sm:$0xff] }
 0x207   :  { %v3074_v4 = vpop.f32.mrb[119].mxu1  ;;  %v3246_v31 = vmax.f32 %v7547_v30, 1.0  ;;  %v3451_v39 = vsel %vm3432_vm9, %v7547_v30, 0.0  ;;  %v3454_v6 = vsel %vm3432_vm9, %v7554_v27, 0.0  ;;  %vm3230_vm11 = vcmp.gt.f32.partialorder %v7547_v30, 0.0 }
 0x208   :  { %v3102_v26 = vadd.f32 %v3070_v28, %v2230_v40  ;;  %v3073_v56 = vadd.f32 %v3072_v59, %v2976_v47  ;;  %v3247_v40 = vmax.f32 %v7554_v27, 1.0  ;;  %vm3231_vm10 = vcmp.gt.f32.partialorder %v7554_v27, 0.0 }
 0x209   :  { %3274 = vrot.lane.b32.xlu0 %v3241_v62, %s5112_s24  ;;  %v7561_v47 = vld [vmem:[#allocation2 + $0x40] sm:$0xff] }
 0x20a   :  { %3119 = vst.msk [vmem:[#allocation2 + $0x50] sm:$0xff] %vm20_vm0, %v3102_v26  ;;  %v3103_v61 = vadd.f32 %v3073_v56, %v2231_v3  ;;  %8363 = vst [vmem:[#allocation8_spill] sm:$0xff] %v7561_v47  ;;  %v3457_v28 = vsel %vm3432_vm9, %v7561_v47, 0.0  ;;  %v3248_v4 = vmax.f32 %v7561_v47, 1.0  ;;  %vm3232_vm15 = vcmp.gt.f32.partialorder %v7561_v47, 0.0 }
 0x20b   :  { %v2980_v50 = vpop.f32.mrb[120].mxu0  ;;  %v7569_v59 = vld [vmem:[#allocation2 + $0x48] sm:$0xff] }
 0x20c   :  { %3120 = vst.msk [vmem:[#allocation2 + $0x58] sm:$0xff] %vm20_vm0, %v3103_v61  ;;  %v2981_v19 = vadd.f32 %v2980_v50, %v7458_v43  ;;  %v2982_v38 = vpop.f32.mrb[121].mxu0  ;;  %v3077_v63 = vpop.f32.mrb[120].mxu1  ;;  %v3249_v3 = vmax.f32 %v7569_v59, 1.0  ;;  %v3460_v56 = vsel %vm3432_vm9, %v7569_v59, 0.0  ;;  %vm3233_vm13 = vcmp.gt.f32.partialorder %v7569_v59, 0.0 }
 0x20d   :  { %v2983_v35 = vpop.f32.mrb[122].mxu0  ;;  %v3079_v36 = vpop.f32.mrb[121].mxu1 }
 0x20e   :  { %v2984_v2 = vadd.f32 %v2983_v35, %v7461_v34  ;;  %v3078_v15 = vadd.f32 %v3077_v63, %v2981_v19  ;;  %3437 = vadd.xlane.f32.xlu1 %v3436_v52  ;;  %v3080_v25 = vpop.f32.mrb[122].mxu1  ;;  %v2985_v46 = vpop.f32.mrb[123].mxu0  ;;  %v2234_v34 = vld [vmem:[#allocation2 + $0x70] sm:$0xff] }
 0x20f   :  { %v3082_v45 = vpop.f32.mrb[123].mxu1 }
 0x210   :  { %v3104_v48 = vadd.f32 %v3078_v15, %v2232_v9  ;;  %v3081_v49 = vadd.f32 %v3080_v25, %v2984_v2 }
 0x211   :  { %v7575_v62 = vld [vmem:[#allocation2 + $0x50] sm:$0xff] }
 0x212   :  { %3121 = vst.msk [vmem:[#allocation2 + $0x60] sm:$0xff] %vm20_vm0, %v3104_v48  ;;  %v3105_v43 = vadd.f32 %v3081_v49, %v2233_v55  ;;  %8364 = vst [vmem:[#allocation9_spill] sm:$0xff] %v7575_v62  ;;  %v3463_v26 = vsel %vm3432_vm9, %v7575_v62, 0.0  ;;  %v3250_v50 = vmax.f32 %v7575_v62, 1.0  ;;  %vm8182_vm6 = vcmp.gt.f32.partialorder %v7575_v62, 0.0 }
 0x213   :  { %v2988_v37 = vpop.f32.mrb[124].mxu0  ;;  %v7587_v61 = vld [vmem:[#allocation2 + $0x58] sm:$0xff] }
 0x214   :  { %3122 = vst.msk [vmem:[#allocation2 + $0x68] sm:$0xff] %vm20_vm0, %v3105_v43  ;;  %v2989_v33 = vadd.f32 %v2988_v37, %v7464_v53  ;;  %v2990_v60 = vpop.f32.mrb[125].mxu0  ;;  %v3085_v10 = vpop.f32.mrb[124].mxu1  ;;  %v7517_v53 = vld [vmem:[#allocation2 + $0x10] sm:$0xff]  ;;  %8365 = vst [vmem:[#allocation10_spill] sm:$0xff] %v7587_v61  ;;  %v3251_v19 = vmax.f32 %v7587_v61, 1.0 }
 0x215   :  { %v2991_v54 = vpop.f32.mrb[126].mxu0  ;;  %v3087_v0 = vpop.f32.mrb[125].mxu1  ;;  %v3242_v41 = vmax.f32 %v7517_v53, 1.0  ;;  %v3439_v22 = vsel %vm3432_vm9, %v7517_v53, 0.0  ;;  %v3466_v63 = vsel %vm3432_vm9, %v7587_v61, 0.0  ;;  %vm3226_vm2 = vcmp.gt.f32.partialorder %v7517_v53, 0.0 }
 0x216   :  { %v2992_v8 = vadd.f32 %v2991_v54, %v7467_v7  ;;  %v3086_v20 = vadd.f32 %v3085_v10, %v2989_v33  ;;  %v3088_v11 = vpop.f32.mrb[126].mxu1  ;;  %v2993_v21 = vpop.f32.mrb[127].mxu0  ;;  %v7523_v7 = vld [vmem:[#allocation2 + $0x18] sm:$0xff]  ;;  %vm3235_vm8 = vcmp.gt.f32.partialorder %v7587_v61, 0.0 }
 0x217   :  { %v3090_v16 = vpop.f32.mrb[127].mxu1  ;;  %v3243_v17 = vmax.f32 %v7523_v7, 1.0  ;;  %v3442_v29 = vsel %vm3432_vm9, %v7523_v7, 0.0  ;;  %vm3227_vm14 = vcmp.gt.f32.partialorder %v7523_v7, 0.0 }
 0x218   :  { %v3106_v44 = vadd.f32 %v3086_v20, %v2234_v34  ;;  %v3089_v23 = vadd.f32 %v3088_v11, %v2992_v8 }
 0x219   :  { %v7595_v38 = vld [vmem:[#allocation2 + $0x60] sm:$0xff] }
 0x21a   :  { %3123 = vst.msk [vmem:[#allocation2 + $0x70] sm:$0xff] %vm20_vm0, %v3106_v44  ;;  %v3107_v18 = vadd.f32 %v3089_v23, %v2235_v13  ;;  %8366 = vst [vmem:[#allocation11_spill] sm:$0xff] %v7595_v38  ;;  %v3252_v36 = vmax.f32 %v7595_v38, 1.0  ;;  %v3469_v25 = vsel %vm3432_vm9, %v7595_v38, 0.0 }
 0x21b   :  { %v7605_v2 = vld [vmem:[#allocation2 + $0x68] sm:$0xff] }
 0x21c   :  { %3124 = vst.msk [vmem:[#allocation2 + $0x78] sm:$0xff] %vm20_vm0, %v3107_v18  ;;  %8367 = vst [vmem:[#allocation12_spill] sm:$0xff] %v7605_v2  ;;  %v3253_v60 = vmax.f32 %v7605_v2, 1.0  ;;  %v3472_v13 = vsel %vm3432_vm9, %v7605_v2, 0.0 }
 0x21f   :  { %3164 = vrot.lane.b32.xlu1 %v7517_v53, %s5111_s2 }
 0x221   :  { %v7607_v15 = vld [vmem:[#allocation2 + $0x70] sm:$0xff] }
 0x222   :  { %8368 = vst [vmem:[#allocation13_spill] sm:$0xff] %v7607_v15  ;;  %v3254_v46 = vmax.f32 %v7607_v15, 1.0  ;;  %vm8161_vm0 = vcmp.gt.f32.partialorder %v7607_v15, 0.0 }
 0x223   :  { %3276 = vrot.lane.b32.xlu1 %v3242_v41, %s5112_s24 }
 0x227   :  { %3166 = vrot.lane.b32.xlu1 %v7523_v7, %s5111_s2 }
 0x228   :  { %3440 = vadd.xlane.f32.xlu0 %v3439_v22 }
 0x23e   :  { %3278 = vrot.lane.b32.xlu0 %v3243_v17, %s5112_s24 }
 0x242   :  { %3168 = vrot.lane.b32.xlu0 %v7531_v57, %s5111_s2 }
 0x24b   :  { %3443 = vadd.xlane.f32.xlu1 %v3442_v29 }
 0x25c   :  { %3280 = vrot.lane.b32.xlu1 %v3244_v12, %s5112_s24  ;;  %v3161_v45 = vpop.permute.xlu1 %3160 }
 0x260   :  { %3170 = vrot.lane.b32.xlu1 %v7539_v1, %s5111_s2 }
 0x261   :  { %3446 = vadd.xlane.f32.xlu0 %v3445_v14 }
 0x277   :  { %3282 = vrot.lane.b32.xlu0 %v3245_v42, %s5112_s24 }
 0x278   :  { %v7601_v35 = vpop.xlane.xlu0 %3434 }
 0x27b   :  { %3172 = vrot.lane.b32.xlu0 %v7547_v30, %s5111_s2 }
 0x27c   :  { %v3273_v9 = vpop.permute.xlu0 %3272 }
 0x280   :  { %v3163_v52 = vpop.permute.xlu0 %3162 }
 0x281   :  { %v7636_v22 = vadd.f32 %v3163_v52, %v7498_v5  ;;  %v7665_v52 = vadd.f32 %v3161_v45, %v7475_v51 }
 0x284   :  { %3449 = vadd.xlane.f32.xlu1 %v3448_v24  ;;  %v3275_v55 = vpop.permute.xlu0 %3274  ;;  %v3475_v24 = vsel %vm3432_vm9, %v7607_v15, 0.0 }
 0x285   :  { %4859 = vrcp.f32 %v3275_v55 }
 0x28f   :  { %v4860_v41 = vpop.eup %4859 }
 0x290   :  { %v3323_v12 = vmul.f32 %v4860_v41, %v7636_v22 }
 0x295   :  { %3284 = vrot.lane.b32.xlu1 %v3246_v31, %s5112_s24 }
 0x299   :  { %3286 = vrot.lane.b32.xlu1 %v3247_v40, %s5112_s24 }
 0x29a   :  { %3452 = vadd.xlane.f32.xlu0 %v3451_v39 }
 0x29b   :  { %v7617_v49 = vpop.xlane.xlu1 %3437 }
 0x29d   :  { %3176 = vrot.lane.b32.xlu1 %v7561_v47, %s5111_s2 }
 0x29f   :  { %v3165_v37 = vpop.permute.xlu1 %3164 }
 0x2a0   :  { %v7640_v42 = vadd.f32 %v3165_v37, %v7517_v53 }
 0x2a3   :  { %v3277_v10 = vpop.permute.xlu1 %3276 }
 0x2a4   :  { %4861 = vrcp.f32 %v3277_v10 }
 0x2a7   :  { %v3167_v34 = vpop.permute.xlu1 %3166 }
 0x2ae   :  { %v4862_v14 = vpop.eup %4861 }
 0x2af   :  { %v3325_v31 = vmul.f32 %v4862_v14, %v7640_v42 }
 0x2b0   :  { %3174 = vrot.lane.b32.xlu0 %v7554_v27, %s5111_s2 }
 0x2b5   :  { %v7615_v48 = vpop.xlane.xlu0 %3440 }
 0x2b9   :  { %v3279_v43 = vpop.permute.xlu0 %3278 }
 0x2ba   :  { %4863 = vrcp.f32 %v3279_v43 }
 0x2bd   :  { %v3169_v33 = vpop.permute.xlu0 %3168 }
 0x2be   :  { %v7669_v43 = vadd.f32 %v3169_v33, %v7531_v57 }
 0x2c1   :  { %3458 = vadd.xlane.f32.xlu1 %v3457_v28  ;;  %v7647_v28 = vadd.f32 %v3167_v34, %v7523_v7 }
 0x2c4   :  { %v4864_v40 = vpop.eup %4863 }
 0x2cf   :  { %3455 = vadd.xlane.f32.xlu0 %v3454_v6  ;;  %v3327_v6 = vmul.f32 %v4864_v40, %v7647_v28 }
 0x2d2   :  { %3290 = vrot.lane.b32.xlu1 %v3249_v3, %s5112_s24 }
 0x2d6   :  { %3180 = vrot.lane.b32.xlu1 %v7575_v62, %s5111_s2 }
 0x2d8   :  { %v7625_v8 = vpop.xlane.xlu1 %3443 }
 0x2dc   :  { %v3281_v11 = vpop.permute.xlu1 %3280 }
 0x2e0   :  { %v3171_v16 = vpop.permute.xlu1 %3170 }
 0x2e5   :  { %3288 = vrot.lane.b32.xlu0 %v3248_v4, %s5112_s24  ;;  %v7652_v4 = vadd.f32 %v3171_v16, %v7539_v1 }
 0x2e9   :  { %3178 = vrot.lane.b32.xlu0 %v7569_v59, %s5111_s2 }
 0x2ee   :  { %v7620_v54 = vpop.xlane.xlu0 %3446 }
 0x2f2   :  { %v3283_v0 = vpop.permute.xlu0 %3282 }
 0x2f3   :  { %4865 = vrcp.f32 %v3283_v0 }
 0x2f6   :  { %v3173_v20 = vpop.permute.xlu0 %3172 }
 0x2f7   :  { %v7676_v45 = vadd.f32 %v3173_v20, %v7547_v30 }
 0x2fa   :  { %3464 = vadd.xlane.f32.xlu1 %v3463_v26 }
 0x2fd   :  { %v4866_v3 = vpop.eup %4865 }
 0x308   :  { %3461 = vadd.xlane.f32.xlu0 %v3460_v56  ;;  %v3331_v56 = vmul.f32 %v4866_v3, %v7652_v4 }
 0x30b   :  { %3182 = vrot.lane.b32.xlu1 %v7587_v61, %s5111_s2 }
 0x311   :  { %v7631_v23 = vpop.xlane.xlu1 %3449 }
 0x315   :  { %v3285_v17 = vpop.permute.xlu1 %3284 }
 0x319   :  { %v3287_v39 = vpop.permute.xlu1 %3286 }
 0x31d   :  { %v3177_v26 = vpop.permute.xlu1 %3176 }
 0x31e   :  { %3292 = vrot.lane.b32.xlu0 %v3250_v50, %s5112_s24 }
 0x322   :  { %3294 = vrot.lane.b32.xlu0 %v3251_v19, %s5112_s24  ;;  %v7657_v19 = vadd.f32 %v3177_v26, %v7561_v47 }
 0x326   :  { %3184 = vrot.lane.b32.xlu0 %v7595_v38, %s5111_s2 }
 0x327   :  { %v7627_v21 = vpop.xlane.xlu0 %3452 }
 0x32b   :  { %v3175_v44 = vpop.permute.xlu0 %3174 }
 0x32f   :  { %3467 = vadd.xlane.f32.xlu1 %v3466_v63 }
 0x340   :  { %3296 = vrot.lane.b32.xlu1 %v3252_v36, %s5112_s24 }
 0x344   :  { %3186 = vrot.lane.b32.xlu1 %v7605_v2, %s5111_s2 }
 0x345   :  { %3470 = vadd.xlane.f32.xlu0 %v3469_v25 }
 0x348   :  { %3300 = vrot.lane.b32.xlu1 %v3254_v46, %s5112_s24 }
 0x35b   :  { %3298 = vrot.lane.b32.xlu0 %v3253_v60, %s5112_s24 }
 0x35c   :  { %v7633_v18 = vpop.xlane.xlu0 %3455 }
 0x35f   :  { %3188 = vrot.lane.b32.xlu0 %v7607_v15, %s5111_s2 }
 0x360   :  { %v3289_v29 = vpop.permute.xlu0 %3288 }
 0x361   :  { %4867 = vrcp.f32 %v3289_v29 }
 0x362   :  { %4869 = vrcp.f32 %v3273_v9  ;;  %v7662_v9 = vpop.xlane.xlu1 %3458 }
 0x363   :  { %4871 = vrcp.f32 %v3281_v11  ;;  %v7680_v11 = vadd.f32 %v3175_v44, %v7554_v27 }
 0x364   :  { %4873 = vrcp.f32 %v3285_v17  ;;  %v3179_v25 = vpop.permute.xlu0 %3178 }
 0x365   :  { %4875 = vrcp.f32 %v3287_v39  ;;  %v7686_v29 = vadd.f32 %v3179_v25, %v7569_v59  ;;  %v3481_v25 = vadd.f32 1e-06, %v7601_v35  ;;  %v3484_v35 = vadd.f32 1e-06, %v7625_v8 }
 0x366   :  { %v3291_v37 = vpop.permute.xlu1 %3290 }
 0x367   :  { %4877 = vrcp.f32 %v3291_v37 }
 0x36a   :  { %v3181_v33 = vpop.permute.xlu1 %3180 }
 0x36b   :  { %v4868_v50 = vpop.eup %4867  ;;  %v7693_v14 = vadd.f32 %v3181_v33, %v7575_v62 }
 0x36c   :  { %3473 = vadd.xlane.f32.xlu1 %v3472_v13  ;;  %v3337_v63 = vmul.f32 %v4868_v50, %v7657_v19  ;;  %v4870_v36 = vpop.eup %4869 }
 0x36d   :  { %v3321_v46 = vmul.f32 %v4870_v36, %v7665_v52  ;;  %v4872_v55 = vpop.eup %4871 }
 0x36e   :  { %v3329_v10 = vmul.f32 %v4872_v55, %v7669_v43  ;;  %v4874_v34 = vpop.eup %4873  ;;  %v3483_v55 = vadd.f32 1e-06, %v7615_v48  ;;  %v3487_v48 = vadd.f32 1e-06, %v7627_v21 }
 0x36f   :  { %v3333_v13 = vmul.f32 %v4874_v34, %v7676_v45  ;;  %v4876_v16 = vpop.eup %4875 }
 0x370   :  { %v3335_v17 = vmul.f32 %v4876_v16, %v7680_v11 }
 0x371   :  { %v4878_v44 = vpop.eup %4877 }
 0x37d   :  { %3370 = vrot.lane.b32.xlu1 %v3323_v12, %s5113_s25  ;;  %v3339_v12 = vmul.f32 %v4878_v44, %v7686_v29 }
 0x37e   :  { %3476 = vadd.xlane.f32.xlu0 %v3475_v24 }
 0x381   :  { %3372 = vrot.lane.b32.xlu1 %v3325_v31, %s5113_s25 }
 0x385   :  { %3374 = vrot.lane.b32.xlu1 %v3327_v6, %s5113_s25 }
 0x387   :  { %v7688_v20 = vpop.xlane.xlu1 %3464 }
 0x389   :  { %3378 = vrot.lane.b32.xlu1 %v3331_v56, %s5113_s25 }
 0x38b   :  { %v3183_v31 = vpop.permute.xlu1 %3182 }
 0x38c   :  { %v7698_v39 = vadd.f32 %v3183_v31, %v7587_v61 }
 0x38d   :  { %3384 = vrot.lane.b32.xlu1 %v3337_v63, %s5113_s25 }
 0x394   :  { %3368 = vrot.lane.b32.xlu0 %v3321_v46, %s5113_s25 }
 0x395   :  { %v7672_v60 = vpop.xlane.xlu0 %3461 }
 0x398   :  { %3376 = vrot.lane.b32.xlu0 %v3329_v10, %s5113_s25  ;;  %v3482_v10 = vadd.f32 1e-06, %v7617_v49 }
 0x399   :  { %v3293_v0 = vpop.permute.xlu0 %3292 }
 0x39a   :  { %4879 = vrcp.f32 %v3293_v0  ;;  %v3485_v0 = vadd.f32 1e-06, %v7620_v54 }
 0x39c   :  { %3380 = vrot.lane.b32.xlu0 %v3333_v13, %s5113_s25 }
 0x39d   :  { %v3295_v41 = vpop.permute.xlu0 %3294 }
 0x39e   :  { %4881 = vrcp.f32 %v3295_v41 }
 0x3a0   :  { %3382 = vrot.lane.b32.xlu0 %v3335_v17, %s5113_s25 }
 0x3a1   :  { %v3185_v63 = vpop.permute.xlu0 %3184 }
 0x3a2   :  { %v7716_v17 = vadd.f32 %v3185_v63, %v7595_v38  ;;  %v3491_v63 = vadd.f32 1e-06, %v7688_v20 }
 0x3a4   :  { %v4880_v24 = vpop.eup %4879  ;;  %3386 = vrot.lane.b32.xlu0 %v3339_v12, %s5113_s25  ;;  %v3486_v12 = vadd.f32 1e-06, %v7631_v23  ;;  %v3490_v23 = vadd.f32 1e-06, %v7672_v60 }
 0x3a5   :  { %v3341_v40 = vmul.f32 %v4880_v24, %v7693_v14  ;;  %v3488_v24 = vadd.f32 1e-06, %v7633_v18 }
 0x3a7   :  { %3388 = vrot.lane.b32.xlu1 %v3341_v40, %s5113_s25 }
 0x3a8   :  { %v4882_v6 = vpop.eup %4881 }
 0x3a9   :  { %v3343_v3 = vmul.f32 %v4882_v6, %v7698_v39  ;;  %v3489_v6 = vadd.f32 1e-06, %v7662_v9 }
 0x3ab   :  { %3390 = vrot.lane.b32.xlu1 %v3343_v3, %s5113_s25 }
 0x3bc   :  { %v3468_v26 = vpop.xlane.xlu1 %3467 }
 0x3c0   :  { %v3297_v56 = vpop.permute.xlu1 %3296 }
 0x3c4   :  { %v3187_v50 = vpop.permute.xlu1 %3186 }
 0x3c5   :  { %v7720_v54 = vadd.f32 %v3187_v50, %v7605_v2 }
 0x3c8   :  { %v3301_v36 = vpop.permute.xlu1 %3300 }
 0x3c9   :  { %4883 = vrcp.f32 %v3301_v36 }
 0x3ca   :  { %4885 = vrcp.f32 %v3297_v56 }
 0x3cb   :  { %4887 = vrcp.f32 %v3481_v25 }
 0x3d2   :  { %v7704_v46 = vpop.xlane.xlu0 %3470 }
 0x3d3   :  { %v4884_v13 = vpop.eup %4883 }
 0x3d4   :  { %v4886_v41 = vpop.eup %4885 }
 0x3d5   :  { %v4888_v49 = vpop.eup %4887  ;;  %v3345_v8 = vmul.f32 %v4886_v41, %v7716_v17 }
 0x3d6   :  { %v3299_v37 = vpop.permute.xlu0 %3298  ;;  %v3498_v40 = vmul.f32 %v4888_v49, %v7475_v51  ;;  %v3492_v51 = vadd.f32 1e-06, %v3468_v26 }
 0x3d7   :  { %4889 = vrcp.f32 %v3299_v37 }
 0x3d8   :  { %4891 = vrcp.f32 %v3483_v55  ;;  %v3529_v18 = vadd.f32 1e-06, %v3498_v40 }
 0x3d9   :  { %4893 = vrcp.f32 %v3482_v10 }
 0x3da   :  { %v3189_v34 = vpop.permute.xlu0 %3188  ;;  %4895 = vrcp.f32 %v3485_v0 }
 0x3db   :  { %v7710_v33 = vadd.f32 %v3189_v34, %v7607_v15  ;;  %4897 = vrcp.f32 %v3484_v35 }
 0x3dc   :  { %4899 = vrcp.f32 %v3487_v48 }
 0x3dd   :  { %v3349_v16 = vmul.f32 %v4884_v13, %v7710_v33  ;;  %4901 = vrcp.f32 %v3486_v12 }
 0x3de   :  { %4903 = vrcp.f32 %v3488_v24 }
 0x3df   :  { %3396 = vrot.lane.b32.xlu0 %v3349_v16, %s5113_s25  ;;  %4905 = vrcp.f32 %v3489_v6 }
 0x3e0   :  { %4907 = vrcp.f32 %v3490_v23 }
 0x3e1   :  { %v4890_v44 = vpop.eup %4889  ;;  %4909 = vlog2.f32 %v3529_v18 }
 0x3e2   :  { %v3347_v31 = vmul.f32 %v4890_v44, %v7720_v54  ;;  %v4892_v21 = vpop.eup %4891  ;;  %4911 = vrcp.f32 %v3491_v63 }
 0x3e3   :  { %3392 = vrot.lane.b32.xlu0 %v3345_v8, %s5113_s25  ;;  %v4894_v3 = vpop.eup %4893  ;;  %v3502_v56 = vmul.f32 %v4892_v21, %v7517_v53 }
 0x3e4   :  { %3394 = vrot.lane.b32.xlu1 %v3347_v31, %s5113_s25  ;;  %v4896_v50 = vpop.eup %4895  ;;  %v3500_v36 = vmul.f32 %v4894_v3, %v7498_v5 }
 0x3e5   :  { %v4898_v25 = vpop.eup %4897  ;;  %v3531_v55 = vadd.f32 1e-06, %v3502_v56  ;;  %v3506_v9 = vmul.f32 %v4896_v50, %v7531_v57 }
 0x3e6   :  { %v4900_v37 = vpop.eup %4899  ;;  %v3530_v10 = vadd.f32 1e-06, %v3500_v36  ;;  %v7736_v60 = vmul.f32 %v4898_v25, %v7523_v7 }
 0x3e7   :  { %v4902_v34 = vpop.eup %4901  ;;  %4913 = vlog2.f32 %v3531_v55  ;;  %v3533_v20 = vadd.f32 1e-06, %v3506_v9  ;;  %v7739_v13 = vmul.f32 %v4900_v37, %v7547_v30 }
 0x3e8   :  { %v4904_v0 = vpop.eup %4903  ;;  %4915 = vrcp.f32 %v3492_v51  ;;  %v3532_v26 = vadd.f32 1e-06, %v7736_v60  ;;  %v7743_v35 = vmul.f32 %v4902_v34, %v7539_v1 }
 0x3e9   :  { %4917 = vlog2.f32 %v3530_v10  ;;  %v4906_v16 = vpop.eup %4905  ;;  %v7746_v41 = vmul.f32 %v4904_v0, %v7554_v27  ;;  %v3535_v48 = vadd.f32 1e-06, %v7739_v13 }
 0x3ea   :  { %4919 = vlog2.f32 %v3533_v20  ;;  %v4908_v49 = vpop.eup %4907  ;;  %v3534_v12 = vadd.f32 1e-06, %v7743_v35  ;;  %v7751_v8 = vmul.f32 %v4906_v16, %v7561_v47 }
 0x3eb   :  { %v4910_v44 = vpop.eup %4909  ;;  %4921 = vlog2.f32 %v3532_v26  ;;  %v3536_v31 = vadd.f32 1e-06, %v7746_v41  ;;  %v7755_v21 = vmul.f32 %v4908_v49, %v7569_v59 }
 0x3ec   :  { %v4912_v24 = vpop.eup %4911  ;;  %4923 = vlog2.f32 %v3535_v48  ;;  %v3546_v23 = vmul.f32 0.6931472, %v4910_v44  ;;  %v3537_v63 = vadd.f32 1e-06, %v7751_v8 }
 0x3ed   :  { %4925 = vlog2.f32 %v3534_v12  ;;  %v7759_v25 = vmul.f32 %v4912_v24, %v7575_v62  ;;  %v3538_v51 = vadd.f32 1e-06, %v7755_v21 }
 0x3ee   :  { %4927 = vlog2.f32 %v3536_v31  ;;  %v3577_v37 = vmul.f32 %v3546_v23, %v3498_v40  ;;  %v3493_v40 = vadd.f32 1e-06, %v7704_v46 }
 0x3ef   :  { %v3539_v20 = vadd.f32 1e-06, %v7759_v25 }
 0x3f0   :  { %v3593_v48 = vsel %vm3432_vm9, %v3577_v37, 0.0 }
 0x3f1   :  { %v4914_v6 = vpop.eup %4913 }
 0x3f2   :  { %v4916_v18 = vpop.eup %4915  ;;  %v3550_v10 = vmul.f32 0.6931472, %v4914_v6 }
 0x3f3   :  { %v4918_v55 = vpop.eup %4917  ;;  %v7763_v34 = vmul.f32 %v4916_v18, %v7587_v61 }
 0x3f4   :  { %v4920_v0 = vpop.eup %4919  ;;  %v3548_v26 = vmul.f32 0.6931472, %v4918_v55  ;;  %v3579_v49 = vmul.f32 %v3550_v10, %v3502_v56 }
 0x3f5   :  { %v4922_v16 = vpop.eup %4921  ;;  %v3554_v44 = vmul.f32 0.6931472, %v4920_v0  ;;  %v3540_v12 = vadd.f32 1e-06, %v7763_v34 }
 0x3f6   :  { %v4924_v24 = vpop.eup %4923  ;;  %v3578_v31 = vmul.f32 %v3548_v26, %v3500_v36  ;;  %v3552_v6 = vmul.f32 0.6931472, %v4922_v16  ;;  %v3599_v18 = vsel %vm3432_vm9, %v3579_v49, 0.0 }
 0x3f8   :  { %v3596_v56 = vsel %vm3432_vm9, %v3578_v31, 0.0 }
 0x3f9   :  { %v3474_v3 = vpop.xlane.xlu1 %3473 }
 0x3fa   :  { %v3494_v50 = vadd.f32 1e-06, %v3474_v3  ;;  %v4926_v3 = vpop.eup %4925 }
 0x3fb   :  { %v4928_v23 = vpop.eup %4927  ;;  %v3556_v37 = vmul.f32 0.6931472, %v4926_v3 }
 0x3fc   :  { %4929 = vrcp.f32 %v3494_v50  ;;  %v3581_v50 = vmul.f32 %v3554_v44, %v3506_v9 }
 0x3fd   :  { %4931 = vlog2.f32 %v3537_v63  ;;  %v3558_v63 = vmul.f32 0.6931472, %v4924_v24  ;;  %v3582_v49 = vmul.f32 %v3556_v37, %v7743_v35 }
 0x3fe   :  { %4933 = vlog2.f32 %v3538_v51  ;;  %v3580_v51 = vmul.f32 %v3552_v6, %v7736_v60  ;;  %v3605_v36 = vsel %vm3432_vm9, %v3581_v50, 0.0 }
 0x3ff   :  { %4935 = vlog2.f32 %v3539_v20  ;;  %v3583_v0 = vmul.f32 %v3558_v63, %v7739_v13  ;;  %v3560_v20 = vmul.f32 0.6931472, %v4928_v23  ;;  %v3608_v6 = vsel %vm3432_vm9, %v3582_v49, 0.0 }
 0x400   :  { %4937 = vlog2.f32 %v3540_v12 }
 0x401   :  { %4939 = vrcp.f32 %v3493_v40  ;;  %v3611_v24 = vsel %vm3432_vm9, %v3583_v0, 0.0  ;;  %v3584_v40 = vmul.f32 %v3560_v20, %v7746_v41 }
 0x402   :  { %3594 = vadd.xlane.f32.xlu0 %v3593_v48  ;;  %v3602_v48 = vsel %vm3432_vm9, %v3580_v51, 0.0 }
 0x403   :  { %v3614_v35 = vsel %vm3432_vm9, %v3584_v40, 0.0  ;;  %v3371_v40 = vpop.permute.xlu1 %3370 }
 0x406   :  { %v4930_v55 = vpop.eup %4929  ;;  %3600 = vadd.xlane.f32.xlu0 %v3599_v18 }
 0x407   :  { %v3524_v46 = vmul.f32 %v4930_v55, %v7605_v2  ;;  %v4932_v10 = vpop.eup %4931 }
 0x408   :  { %3597 = vadd.xlane.f32.xlu1 %v3596_v56  ;;  %v4934_v26 = vpop.eup %4933  ;;  %v3562_v44 = vmul.f32 0.6931472, %v4932_v10 }
 0x409   :  { %v3542_v9 = vadd.f32 1e-06, %v3524_v46  ;;  %v4936_v60 = vpop.eup %4935  ;;  %v3564_v31 = vmul.f32 0.6931472, %v4934_v26 }
 0x40a   :  { %3606 = vadd.xlane.f32.xlu0 %v3605_v36  ;;  %v4938_v13 = vpop.eup %4937  ;;  %v3585_v3 = vmul.f32 %v3562_v44, %v7751_v8  ;;  %v3566_v23 = vmul.f32 0.6931472, %v4936_v60 }
 0x40b   :  { %v3477_v16 = vpop.xlane.xlu0 %3476  ;;  %4941 = vlog2.f32 %v3542_v9  ;;  %v4940_v18 = vpop.eup %4939  ;;  %v3586_v50 = vmul.f32 %v3564_v31, %v7755_v21  ;;  %v3568_v55 = vmul.f32 0.6931472, %v4938_v13  ;;  %v3917_v31 = vmul.f32 0.00390625, %v7665_v52 }
 0x40c   :  { %v3495_v12 = vadd.f32 1e-06, %v3477_v16  ;;  %3603 = vadd.xlane.f32.xlu1 %v3602_v48  ;;  %v3617_v63 = vsel %vm3432_vm9, %v3585_v3, 0.0  ;;  %v3587_v41 = vmul.f32 %v3566_v23, %v7759_v25  ;;  %v3522_v56 = vmul.f32 %v4940_v18, %v7595_v38 }
 0x40d   :  { %v3620_v37 = vsel %vm3432_vm9, %v3586_v50, 0.0  ;;  %v3588_v10 = vmul.f32 %v3568_v55, %v7763_v34  ;;  %v3919_v13 = vmul.f32 0.00390625, %v7640_v42  ;;  %v3920_v23 = vmul.f32 0.00390625, %v7647_v28 }
 0x40e   :  { %4943 = vrcp.f32 %v3495_v12  ;;  %3612 = vadd.xlane.f32.xlu0 %v3611_v24  ;;  %v3623_v8 = vsel %vm3432_vm9, %v3587_v41, 0.0  ;;  %v3541_v0 = vadd.f32 1e-06, %v3522_v56  ;;  %v3924_v52 = vmul.f32 0.00390625, %v7680_v11 }
 0x40f   :  { %v3626_v25 = vsel %vm3432_vm9, %v3588_v10, 0.0  ;;  %v3369_v3 = vpop.permute.xlu0 %3368  ;;  %v3926_v42 = vmul.f32 0.00390625, %v7686_v29  ;;  %v3928_v28 = vmul.f32 0.00390625, %v7698_v39  ;;  %v3930_v29 = vmul.f32 0.00390625, %v7720_v54 }
 0x410   :  { %3609 = vadd.xlane.f32.xlu1 %v3608_v6  ;;  %4945 = vlog2.f32 %v3541_v0  ;;  %v3373_v6 = vpop.permute.xlu1 %3372 }
 0x411   :  { %v7831_v54 = vsel %vm3226_vm2, %v3373_v6, 0.0 }
 0x412   :  { %3615 = vadd.xlane.f32.xlu0 %v3614_v35  ;;  %v3922_v35 = vmul.f32 0.00390625, %v7652_v4  ;;  %v7810_v4 = vld [vmem:[#allocation2] sm:$0xff] }
 0x413   :  { %v3377_v50 = vpop.permute.xlu0 %3376  ;;  %vm3224_vm3 = vcmp.gt.f32.partialorder %v7810_v4, 0.0 }
 0x414   :  { %3618 = vadd.xlane.f32.xlu1 %v3617_v63  ;;  %v3375_v18 = vpop.permute.xlu1 %3374  ;;  %v7841_v10 = vsel %vm3224_vm3, %v3369_v3, 0.0 }
 0x415   :  { %v4942_v51 = vpop.eup %4941 }
 0x416   :  { %3621 = vadd.xlane.f32.xlu0 %v3620_v37  ;;  %v3572_v36 = vmul.f32 0.6931472, %v4942_v51  ;;  %v7826_v51 = vsel %vm3228_vm7, %v3377_v50, 0.0 }
 0x417   :  { %v3381_v41 = vpop.permute.xlu0 %3380  ;;  %v3694_v0 = vsel %vm3689_vm4, %v7826_v51, -inf }
 0x418   :  { %v4944_v21 = vpop.eup %4943  ;;  %3624 = vadd.xlane.f32.xlu1 %v3623_v8  ;;  %v3590_v9 = vmul.f32 %v3572_v36, %v3524_v46  ;;  %v3379_v63 = vpop.permute.xlu1 %3378  ;;  %v7820_v39 = vsel %vm3230_vm11, %v3381_v41, 0.0 }
 0x419   :  { %v3526_v20 = vmul.f32 %v4944_v21, %v7607_v15  ;;  %v7835_v37 = vsel %vm3229_vm1, %v3379_v63, 0.0  ;;  %v3698_v36 = vsel %vm3689_vm4, %v7820_v39, -inf }
 0x41a   :  { %v3632_v16 = vsel %vm3432_vm9, %v3590_v9, 0.0  ;;  %v4946_v48 = vpop.eup %4945  ;;  %v3692_v9 = vsel %vm3689_vm4, %v7831_v54, -inf }
 0x41b   :  { %v3543_v26 = vadd.f32 1e-06, %v3526_v20  ;;  %v3570_v34 = vmul.f32 0.6931472, %v4946_v48 }
 0x41c   :  { %3627 = vadd.xlane.f32.xlu1 %v3626_v25  ;;  %v3385_v55 = vpop.permute.xlu1 %3384  ;;  %v7860_v25 = vsel %vm3225_vm12, %v3371_v40, 0.0 }
 0x41d   :  { %4947 = vlog2.f32 %v3543_v26  ;;  %v3589_v24 = vmul.f32 %v3570_v34, %v3522_v56  ;;  %v3383_v56 = vpop.permute.xlu0 %3382  ;;  %v7866_v26 = vsel %vm3227_vm14, %v3375_v18, 0.0  ;;  %v3699_v34 = vmax.f32 %v3692_v9, %v3698_v36 }
 0x41e   :  { %v3691_v3 = vsel %vm3689_vm4, %v7860_v25, -inf }
 0x41f   :  { %v3629_v46 = vsel %vm3432_vm9, %v3589_v24, 0.0 }
 0x420   :  { %3633 = vadd.xlane.f32.xlu1 %v3632_v16  ;;  %v3389_v11 = vpop.permute.xlu1 %3388  ;;  %v3696_v16 = vsel %vm3689_vm4, %v7835_v37, -inf }
 0x421   :  { %v3387_v8 = vpop.permute.xlu0 %3386  ;;  %v7851_v21 = vsel %vm8182_vm6, %v3389_v11, 0.0  ;;  %v3697_v50 = vmax.f32 %v3691_v3, %v3696_v16  ;;  %v3925_v3 = vmul.f32 0.00390625, %v7657_v19 }
 0x422   :  { %v3706_v40 = vsel %vm3689_vm4, %v7851_v21, -inf }
 0x423   :  { %v3707_v63 = vmax.f32 %v3699_v34, %v3706_v40  ;;  %v3918_v40 = vmul.f32 0.00390625, %v7636_v22  ;;  %v3929_v22 = vmul.f32 0.00390625, %v7716_v17 }
 0x424   :  { %v3391_v48 = vpop.permute.xlu1 %3390 }
 0x427   :  { %v4948_v49 = vpop.eup %4947 }
 0x428   :  { %v3574_v44 = vmul.f32 0.6931472, %v4948_v49  ;;  %v7872_v49 = vsel %vm3232_vm15, %v3385_v55, 0.0 }
 0x42a   :  { %v3591_v60 = vmul.f32 %v3574_v44, %v3526_v20  ;;  %v7855_v20 = vsel %vm3231_vm10, %v3383_v56, 0.0  ;;  %v3690_v44 = vsel %vm3689_vm4, %v7841_v10, -inf }
 0x42b   :  { %v3695_v24 = vmax.f32 %v3690_v44, %v3694_v0 }
 0x42c   :  { %v3635_v12 = vsel %vm3432_vm9, %v3591_v60, 0.0  ;;  %v7878_v60 = vsel %vm3233_vm13, %v3387_v8, 0.0  ;;  %vm8180_vm9 = vcmp.gt.f32.partialorder %v7595_v38, 0.0 }
 0x42d   :  { %3636 = vadd.xlane.f32.xlu0 %v3635_v12  ;;  %v3704_v18 = vsel %vm3689_vm4, %v7878_v60, -inf }
 0x431   :  { %3965 = vrot.lane.b32.xlu1 %v3917_v31, %s5113_s25  ;;  %3630 = vadd.xlane.f32.xlu0 %v3629_v46  ;;  %v3700_v31 = vsel %vm3689_vm4, %v7855_v20, -inf }
 0x435   :  { %3969 = vrot.lane.b32.xlu1 %v3919_v13, %s5113_s25  ;;  %v7890_v13 = vsel %vm3235_vm8, %v3391_v48, 0.0 }
 0x436   :  { %v3708_v55 = vsel %vm3689_vm4, %v7890_v13, -inf }
 0x439   :  { %3971 = vrot.lane.b32.xlu1 %v3920_v23, %s5113_s25  ;;  %v3693_v23 = vsel %vm3689_vm4, %v7866_v26, -inf }
 0x43a   :  { %v3701_v41 = vmax.f32 %v3693_v23, %v3700_v31  ;;  %v3921_v31 = vmul.f32 0.00390625, %v7669_v43  ;;  %v3927_v23 = vmul.f32 0.00390625, %v7693_v14  ;;  %v3931_v43 = vmul.f32 0.00390625, %v7710_v33 }
 0x43c   :  { %v3709_v48 = vmax.f32 %v3701_v41, %v3708_v55 }
 0x43d   :  { %3975 = vrot.lane.b32.xlu1 %v3922_v35, %s5113_s25 }
 0x441   :  { %3979 = vrot.lane.b32.xlu1 %v3924_v52, %s5113_s25  ;;  %v3702_v52 = vsel %vm3689_vm4, %v7872_v49, -inf }
 0x442   :  { %v3703_v56 = vmax.f32 %v3695_v24, %v3702_v52 }
 0x445   :  { %3983 = vrot.lane.b32.xlu1 %v3926_v42, %s5113_s25 }
 0x449   :  { %3987 = vrot.lane.b32.xlu1 %v3928_v28, %s5113_s25 }
 0x44d   :  { %3991 = vrot.lane.b32.xlu1 %v3930_v29, %s5113_s25  ;;  %v3705_v29 = vmax.f32 %v3697_v50, %v3704_v18 }
 0x451   :  { %v3397_v12 = vpop.permute.xlu0 %3396 }
 0x452   :  { %v7886_v46 = vsel %vm8161_vm0, %v3397_v12, 0.0  ;;  %vm8181_vm0 = vcmp.gt.f32.partialorder %v7605_v2, 0.0 }
 0x453   :  { %v3687_v6 = vsel %vm8179_vm5, %v7886_v46, -inf }
 0x454   :  { %v3714_v35 = vsel %vm3689_vm4, %v3687_v6, -inf  ;;  %v3923_v6 = vmul.f32 0.00390625, %v7676_v45 }
 0x455   :  { %v3393_v42 = vpop.permute.xlu0 %3392  ;;  %v3715_v8 = vmax.f32 %v3707_v63, %v3714_v35 }
 0x456   :  { %v7909_v28 = vsel %vm8180_vm9, %v3393_v42, 0.0  ;;  %v3395_v11 = vpop.permute.xlu1 %3394 }
 0x457   :  { %v3710_v36 = vsel %vm3689_vm4, %v7909_v28, -inf  ;;  %v7916_v0 = vsel %vm8181_vm0, %v3395_v11, 0.0  ;;  %v3719_v12 = vmax.f32 %v3715_v8, %v3709_v48 }
 0x458   :  { %v3711_v9 = vmax.f32 %v3703_v56, %v3710_v36  ;;  %v3712_v16 = vsel %vm3689_vm4, %v7916_v0, -inf }
 0x459   :  { %v3713_v44 = vmax.f32 %v3705_v29, %v3712_v16 }
 0x45b   :  { %v3718_v34 = vmax.f32 %v3711_v9, %v3713_v44 }
 0x45d   :  { %v3720_v24 = vmax.f32 %v3718_v34, %v3719_v12 }
 0x45f   :  { %3721 = vmax.xlane.f32.xlu0 %v3720_v24 }
 0x475   :  { %3967 = vrot.lane.b32.xlu0 %v3918_v40, %s5113_s25 }
 0x479   :  { %3973 = vrot.lane.b32.xlu0 %v3921_v31, %s5113_s25 }
 0x47d   :  { %3977 = vrot.lane.b32.xlu0 %v3923_v6, %s5113_s25 }
 0x481   :  { %3981 = vrot.lane.b32.xlu0 %v3925_v3, %s5113_s25 }
 0x485   :  { %3985 = vrot.lane.b32.xlu0 %v3927_v23, %s5113_s25 }
 0x489   :  { %3989 = vrot.lane.b32.xlu0 %v3929_v22, %s5113_s25 }
 0x48d   :  { %3993 = vrot.lane.b32.xlu0 %v3931_v43, %s5113_s25 }
 0x48f   :  { %v7934_v18 = vpop.xlane.xlu0 %3594 }
 0x490   :  { %v3641_v8 = vsub.f32 0.0, %v7934_v18 }
 0x493   :  { %v7936_v45 = vpop.xlane.xlu0 %3600 }
 0x494   :  { %v3643_v16 = vsub.f32 0.0, %v7936_v45 }
 0x495   :  { %v7938_v35 = vpop.xlane.xlu1 %3597 }
 0x496   :  { %v3642_v48 = vsub.f32 0.0, %v7938_v35 }
 0x497   :  { %v7940_v19 = vpop.xlane.xlu0 %3606 }
 0x498   :  { %v8165_v56 = vsub.f32 0.0, %v7940_v19 }
 0x499   :  { %v7942_v50 = vpop.xlane.xlu1 %3603 }
 0x49a   :  { %v3746_v12 = vmax.f32 %v3641_v8, %v8165_v56  ;;  %v3644_v18 = vsub.f32 0.0, %v7942_v50 }
 0x49b   :  { %v7944_v14 = vpop.xlane.xlu0 %3612 }
 0x49c   :  { %v8163_v11 = vsub.f32 0.0, %v7944_v14 }
 0x49d   :  { %v7946_v52 = vpop.xlane.xlu1 %3609 }
 0x49e   :  { %v8167_v36 = vsub.f32 0.0, %v7946_v52  ;;  %v3748_v6 = vmax.f32 %v3643_v16, %v8163_v11 }
 0x49f   :  { %v7948_v17 = vpop.xlane.xlu0 %3615 }
 0x4a0   :  { %v3747_v3 = vmax.f32 %v3642_v48, %v8167_v36  ;;  %v8176_v23 = vsub.f32 0.0, %v7948_v17 }
 0x4a1   :  { %v7950_v63 = vpop.xlane.xlu1 %3618 }
 0x4a2   :  { %v8164_v9 = vsub.f32 0.0, %v7950_v63 }
 0x4a3   :  { %v7952_v33 = vpop.xlane.xlu0 %3621 }
 0x4a4   :  { %v8168_v24 = vsub.f32 0.0, %v7952_v33  ;;  %v3750_v22 = vmax.f32 %v3746_v12, %v8164_v9  ;;  %v3749_v9 = vmax.f32 %v3644_v18, %v8176_v23  ;;  %v8373_v53 = vsub.f32 0.0, %v7952_v33 }
 0x4a5   :  { %v7954_v41 = vpop.xlane.xlu1 %3624 }
 0x4a6   :  { %v8170_v40 = vsub.f32 0.0, %v7954_v41  ;;  %v3751_v35 = vmax.f32 %v3747_v3, %v8168_v24 }
 0x4a8   :  { %v3752_v32 = vmax.f32 %v3748_v6, %v8170_v40 }
 0x4a9   :  { %v7958_v55 = vpop.xlane.xlu1 %3627 }
 0x4aa   :  { %v3652_v11 = vsub.f32 0.0, %v7958_v55 }
 0x4ad   :  { %v7969_v44 = vpop.xlane.xlu1 %3633 }
 0x4ae   :  { %v3654_v43 = vsub.f32 0.0, %v7969_v44 }
 0x4b0   :  { %v3755_v50 = vmax.f32 %v3751_v35, %v3654_v43 }
 0x4ba   :  { %v7956_v42 = vpop.xlane.xlu0 %3636 }
 0x4bb   :  { %v8166_v34 = vsub.f32 0.0, %v7956_v42 }
 0x4bd   :  { %v3744_v45 = vsel %vm8179_vm5, %v8166_v34, -inf  ;;  %v3753_v34 = vmax.f32 %v3749_v9, %v3652_v11 }
 0x4be   :  { %v7962_v29 = vpop.xlane.xlu0 %3630  ;;  %v3756_v56 = vmax.f32 %v3752_v32, %v3744_v45 }
 0x4bf   :  { %v8174_v31 = vsub.f32 0.0, %v7962_v29 }
 0x4c0   :  { %v3759_v3 = vmax.f32 %v3756_v56, %v3753_v34 }
 0x4c1   :  { %v3754_v12 = vmax.f32 %v3750_v22, %v8174_v31 }
 0x4c3   :  { %v3758_v36 = vmax.f32 %v3754_v12, %v3755_v50 }
 0x4c5   :  { %v3760_v24 = vmax.f32 %v3758_v36, %v3759_v3 }
 0x4c7   :  { %v3761_v58 = vrot.slane %v3760_v24, 4 }
 0x4c9   :  { %v3762_v6 = vmax.f32 %v3760_v24, %v3761_v58  ;;  %v3966_v58 = vpop.permute.xlu1 %3965 }
 0x4cb   :  { %v3763_v15 = vrot.slane %v3762_v6, 2 }
 0x4cd   :  { %v3764_v22 = vmax.f32 %v3762_v6, %v3763_v15 }
 0x4cf   :  { %v3765_v23 = vrot.slane %v3764_v22, 1 }
 0x4d1   :  { %v3766_v35 = vmax.f32 %v3764_v22, %v3765_v23 }
 0x4ec   :  { %v3722_v40 = vpop.xlane.xlu0 %3721 }
 0x4ed   :  { %v3723_v38 = vrot.slane %v3722_v40, 4 }
 0x4ef   :  { %v3724_v2 = vmax.f32 %v3722_v40, %v3723_v38  ;;  %v3970_v40 = vpop.permute.xlu1 %3969 }
 0x4f1   :  { %v3725_v31 = vrot.slane %v3724_v2, 2 }
 0x4f3   :  { %v3726_v62 = vmax.f32 %v3724_v2, %v3725_v31 }
 0x4f5   :  { %v3727_v61 = vrot.slane %v3726_v62, 1 }
 0x4f7   :  { %v3728_v47 = vmax.f32 %v3726_v62, %v3727_v61 }
 0x4f9   :  { %4844 = vpush %v3728_v47 }
 0x4fa   :  { %4846 = vpush %v3766_v35 }
 0x52a   :  { %s4845_s26 = spop %4844 }
 0x52b   :  { %v3768_v32 = vstv %s4845_s26  ;;  %s4847_s27 = spop %4846 }
 0x52c   :  { %4949 = vrcp.f32 %v3768_v32  ;;  %v3802_v56 = vstv %s4847_s27 }
 0x52d   :  { %4951 = vrcp.f32 %v3802_v56 }
 0x536   :  { %v8003_v36 = vpop.eup %4949 }
 0x537   :  { %v8005_v9 = vpop.eup %4951  ;;  %v3770_v38 = vmul.f32 %v8003_v36, %v7841_v10  ;;  %v3771_v62 = vmul.f32 %v8003_v36, %v7860_v25  ;;  %v3772_v47 = vmul.f32 %v8003_v36, %v7831_v54  ;;  %v3773_v61 = vmul.f32 %v8003_v36, %v7866_v26 }
 0x538   :  { %v3804_v2 = vmul.f32 %v8005_v9, %v3641_v8  ;;  %v3805_v15 = vmul.f32 %v8005_v9, %v3642_v48  ;;  %v3806_v34 = vmul.f32 %v8005_v9, %v3643_v16  ;;  %v3807_v24 = vmul.f32 %v8005_v9, %v3644_v18 }
 0x539   :  { %v3786_v31 = vmul.f32 0.07, %v3770_v38  ;;  %v3787_v10 = vmul.f32 0.07, %v3771_v62  ;;  %v3788_v23 = vmul.f32 0.07, %v3772_v47  ;;  %v3775_v25 = vmul.f32 %v8003_v36, %v7835_v37 }
 0x53a   :  { %v3820_v45 = vmul.f32 0.03, %v3804_v2  ;;  %v3821_v54 = vmul.f32 0.03, %v3805_v15  ;;  %v3822_v12 = vmul.f32 0.03, %v3806_v34  ;;  %v3774_v16 = vmul.f32 %v8003_v36, %v7826_v51  ;;  %v3968_v15 = vpop.permute.xlu0 %3967 }
 0x53b   :  { %v8369_v26 = vsub.f32 0.0, %v7946_v52  ;;  %v3789_v50 = vmul.f32 0.07, %v3773_v61  ;;  %v3823_v48 = vmul.f32 0.03, %v3807_v24  ;;  %v8370_v37 = vsub.f32 0.0, %v7940_v19  ;;  %v3972_v61 = vpop.permute.xlu1 %3971 }
 0x53c   :  { %v3791_v3 = vmul.f32 0.07, %v3775_v25  ;;  %v3836_v18 = vadd.f32 %v3820_v45, %v3786_v31  ;;  %v3837_v6 = vadd.f32 %v3821_v54, %v3787_v10  ;;  %v3838_v22 = vadd.f32 %v3822_v12, %v3788_v23 }
 0x53d   :  { %v3809_v8 = vmul.f32 %v8005_v9, %v8369_v26  ;;  %v3839_v32 = vadd.f32 %v3823_v48, %v3789_v50  ;;  %v3790_v56 = vmul.f32 0.07, %v3774_v16  ;;  %v3808_v38 = vmul.f32 %v8005_v9, %v8370_v37 }
 0x53e   :  { %v3777_v52 = vmul.f32 %v8003_v36, %v7855_v20  ;;  %vm3852_vm4 = vcmp.ne.f32.partialorder %v3836_v18, %v3836_v18  ;;  %v4824_v62 = vclamps-f32 %v3836_v18, 3.4028235e+38  ;;  %vm3853_vm5 = vcmp.ne.f32.partialorder %v3837_v6, %v3837_v6 }
 0x53f   :  { %v3825_v35 = vmul.f32 0.03, %v3809_v8  ;;  %v4825_v47 = vclamps-f32 %v3837_v6, 3.4028235e+38  ;;  %vm3854_vm9 = vcmp.ne.f32.partialorder %v3838_v22, %v3838_v22  ;;  %v4826_v51 = vclamps-f32 %v3838_v22, 3.4028235e+38 }
 0x540   :  { %vm3855_vm0 = vcmp.ne.f32.partialorder %v3839_v32, %v3839_v32  ;;  %v4827_v2 = vclamps-f32 %v3839_v32, 3.4028235e+38  ;;  %v3900_v34 = vsel %vm3852_vm4, 0.0, %v4824_v62  ;;  %v3824_v10 = vmul.f32 0.03, %v3808_v38 }
 0x541   :  { %v3901_v24 = vsel %vm3853_vm5, 0.0, %v4825_v47  ;;  %v3841_v31 = vadd.f32 %v3825_v35, %v3791_v3  ;;  %v3933_v19 = vadd.f32 1.0, %v3900_v34  ;;  %v3902_v25 = vsel %vm3854_vm9, 0.0, %v4826_v51  ;;  %v3976_v35 = vpop.permute.xlu1 %3975 }
 0x542   :  { %v3934_v23 = vadd.f32 1.0, %v3901_v24  ;;  %v3903_v45 = vsel %vm3855_vm0, 0.0, %v4827_v2  ;;  %v3935_v54 = vadd.f32 1.0, %v3902_v25  ;;  %v3840_v50 = vadd.f32 %v3824_v10, %v3790_v56 }
 0x543   :  { %v3936_v20 = vadd.f32 1.0, %v3903_v45  ;;  %vm3857_vm6 = vcmp.ne.f32.partialorder %v3841_v31, %v3841_v31  ;;  %v4829_v12 = vclamps-f32 %v3841_v31, 3.4028235e+38  ;;  %v4013_v26 = vmul.f32 %v3966_v58, %v3933_v19  ;;  %v3974_v58 = vpop.permute.xlu0 %3973 }
 0x544   :  { %v4014_v8 = vmul.f32 %v3968_v15, %v3934_v23  ;;  %v3793_v48 = vmul.f32 0.07, %v3777_v52  ;;  %v4015_v16 = vmul.f32 %v3970_v40, %v3935_v54  ;;  %v8371_v22 = vsub.f32 0.0, %v7948_v17 }
 0x545   :  { %v4016_v18 = vmul.f32 %v3972_v61, %v3936_v20  ;;  %v3905_v6 = vsel %vm3857_vm6, 0.0, %v4829_v12  ;;  %v4045_v32 = vsel %vm3224_vm3, %v4013_v26, 0.0  ;;  %vm3856_vm5 = vcmp.ne.f32.partialorder %v3840_v50, %v3840_v50  ;;  %v3980_v33 = vpop.permute.xlu1 %3979 }
 0x546   :  { %v3811_v3 = vmul.f32 %v8005_v9, %v8371_v22  ;;  %v4046_v37 = vsel %vm3225_vm12, %v4014_v8, 0.0  ;;  %v3938_v38 = vadd.f32 1.0, %v3905_v6  ;;  %4077 = vrot.lane.b32.xlu1 %v4045_v32, %s5114_s28  ;;  %v4047_v17 = vsel %vm3226_vm2, %v4015_v16, 0.0 }
 0x547   :  { %4079 = vrot.lane.b32.xlu0 %v4046_v37, %s5114_s28  ;;  %v4048_v40 = vsel %vm3227_vm14, %v4016_v18, 0.0  ;;  %v4828_v56 = vclamps-f32 %v3840_v50, 3.4028235e+38  ;;  %v3776_v5 = vmul.f32 %v8003_v36, %v7820_v39  ;;  %v8372_v62 = vsub.f32 0.0, %v7944_v14  ;;  %v3978_v45 = vpop.permute.xlu0 %3977 }
 0x548   :  { %v3827_v4 = vmul.f32 0.03, %v3811_v3  ;;  %v4018_v52 = vmul.f32 %v3976_v35, %v3938_v38  ;;  %v3779_v61 = vmul.f32 %v8003_v36, %v7878_v60  ;;  %v3813_v7 = vmul.f32 %v8005_v9, %v8373_v53 }
 0x549   :  { %v3810_v47 = vmul.f32 %v8005_v9, %v8372_v62  ;;  %v3904_v51 = vsel %vm3856_vm5, 0.0, %v4828_v56  ;;  %v3778_v15 = vmul.f32 %v8003_v36, %v7872_v49  ;;  %v3792_v24 = vmul.f32 0.07, %v3776_v5  ;;  %v3984_v37 = vpop.permute.xlu1 %3983 }
 0x54a   :  { %v3843_v2 = vadd.f32 %v3827_v4, %v3793_v48  ;;  %v4050_v34 = vsel %vm3229_vm1, %v4018_v52, 0.0  ;;  %v3937_v39 = vadd.f32 1.0, %v3904_v51  ;;  %4081 = vrot.lane.b32.xlu1 %v4047_v17, %s5114_s28  ;;  %v3795_v31 = vmul.f32 0.07, %v3779_v61 }
 0x54b   :  { %v3826_v14 = vmul.f32 0.03, %v3810_v47  ;;  %4083 = vrot.lane.b32.xlu0 %v4048_v40, %s5114_s28  ;;  %v3829_v10 = vmul.f32 0.03, %v3813_v7  ;;  %v3794_v25 = vmul.f32 0.07, %v3778_v15  ;;  %v3781_v12 = vmul.f32 %v8003_v36, %v7890_v13  ;;  %v3982_v56 = vpop.permute.xlu0 %3981 }
 0x54c   :  { %vm3859_vm12 = vcmp.ne.f32.partialorder %v3843_v2, %v3843_v2  ;;  %v4831_v60 = vclamps-f32 %v3843_v2, 3.4028235e+38  ;;  %v4017_v19 = vmul.f32 %v3974_v58, %v3937_v39  ;;  %v8374_v49 = vsub.f32 0.0, %v7950_v63 }
 0x54d   :  { %v3842_v23 = vadd.f32 %v3826_v14, %v3792_v24  ;;  %v3845_v20 = vadd.f32 %v3829_v10, %v3795_v31  ;;  %v3815_v26 = vmul.f32 %v8005_v9, %v3652_v11  ;;  %v3797_v18 = vmul.f32 0.07, %v3781_v12  ;;  %v3988_v39 = vpop.permute.xlu1 %3987 }
 0x54e   :  { %v3812_v1 = vmul.f32 %v8005_v9, %v8374_v49  ;;  %v3907_v54 = vsel %vm3859_vm12, 0.0, %v4831_v60  ;;  %v4049_v8 = vsel %vm3228_vm7, %v4017_v19, 0.0  ;;  %v3780_v55 = vmul.f32 %v8003_v36, %v7851_v21 }
 0x54f   :  { %v3940_v50 = vadd.f32 1.0, %v3907_v54  ;;  %vm3858_vm2 = vcmp.ne.f32.partialorder %v3842_v23, %v3842_v23  ;;  %v4830_v48 = vclamps-f32 %v3842_v23, 3.4028235e+38  ;;  %4087 = vrot.lane.b32.xlu0 %v4050_v34, %s5114_s28  ;;  %4085 = vrot.lane.b32.xlu1 %v4049_v8, %s5114_s28  ;;  %vm3861_vm3 = vcmp.ne.f32.partialorder %v3845_v20, %v3845_v20  ;;  %v3986_v60 = vpop.permute.xlu0 %3985 }
 0x550   :  { %v4833_v63 = vclamps-f32 %v3845_v20, 3.4028235e+38  ;;  %v3828_v16 = vmul.f32 0.03, %v3812_v1  ;;  %v3831_v22 = vmul.f32 0.03, %v3815_v26  ;;  %v3817_v51 = vmul.f32 %v8005_v9, %v3654_v43 }
 0x551   :  { %v4020_v6 = vmul.f32 %v3980_v33, %v3940_v50  ;;  %v3906_v13 = vsel %vm3858_vm2, 0.0, %v4830_v48  ;;  %v8375_v35 = vsub.f32 0.0, %v7954_v41  ;;  %v3796_v40 = vmul.f32 0.07, %v3780_v55  ;;  %v8380_v26 = vld [vmem:[#allocation9_spill] sm:$0xff] }
 0x552   :  { %v3939_v11 = vadd.f32 1.0, %v3906_v13  ;;  %v3909_v57 = vsel %vm3861_vm3, 0.0, %v4833_v63  ;;  %v3844_v3 = vadd.f32 %v3828_v16, %v3794_v25  ;;  %v3847_v17 = vadd.f32 %v3831_v22, %v3797_v18  ;;  %v3992_v63 = vpop.permute.xlu1 %3991 }
 0x553   :  { %v3814_v32 = vmul.f32 %v8005_v9, %v8375_v35  ;;  %v4052_v38 = vsel %vm3231_vm10, %v4020_v6, 0.0  ;;  %v3942_v58 = vadd.f32 1.0, %v3909_v57  ;;  %v3783_v41 = vmul.f32 %v8003_v36, %v7916_v0  ;;  %v3990_v16 = vpop.permute.xlu0 %3989 }
 0x554   :  { %4091 = vrot.lane.b32.xlu0 %v4052_v38, %s5114_s28  ;;  %v4019_v4 = vmul.f32 %v3978_v45, %v3939_v11  ;;  %vm3860_vm14 = vcmp.ne.f32.partialorder %v3844_v3, %v3844_v3  ;;  %v4832_v21 = vclamps-f32 %v3844_v3, 3.4028235e+38  ;;  %vm3863_vm7 = vcmp.ne.f32.partialorder %v3847_v17, %v3847_v17  ;;  %v8382_v11 = vld [vmem:[#allocation12_spill] sm:$0xff]  ;;  %v8384_v38 = vld [vmem:[#allocation11_spill] sm:$0xff] }
 0x555   :  { %v3830_v52 = vmul.f32 0.03, %v3814_v32  ;;  %v4022_v5 = vmul.f32 %v3984_v37, %v3942_v58  ;;  %v4835_v62 = vclamps-f32 %v3847_v17, 3.4028235e+38  ;;  %v3799_v15 = vmul.f32 0.07, %v3783_v41 }
 0x556   :  { %v4051_v27 = vsel %vm3230_vm11, %v4019_v4, 0.0  ;;  %v3908_v47 = vsel %vm3860_vm14, 0.0, %v4832_v21  ;;  %v3833_v34 = vmul.f32 0.03, %v3817_v51  ;;  %v3782_v44 = vmul.f32 %v8003_v36, %v7909_v28  ;;  %v8389_v4 = vld [vmem:[#allocation7_spill] sm:$0xff] }
 0x557   :  { %v3846_v61 = vadd.f32 %v3830_v52, %v3796_v40  ;;  %4089 = vrot.lane.b32.xlu1 %v4051_v27, %s5114_s28  ;;  %v4054_v2 = vsel %vm3233_vm13, %v4022_v5, 0.0  ;;  %v3941_v53 = vadd.f32 1.0, %v3908_v47  ;;  %v3911_v7 = vsel %vm3863_vm7, 0.0, %v4835_v62  ;;  %v3994_v37 = vpop.permute.xlu0 %3993 }
 0x558   :  { %4095 = vrot.lane.b32.xlu0 %v4054_v2, %s5114_s28  ;;  %v3944_v0 = vadd.f32 1.0, %v3911_v7  ;;  %v8376_v43 = vsub.f32 0.0, %v7962_v29  ;;  %v3784_v59 = vmul.f32 %v8003_v36, %v7886_v46  ;;  %v3849_v33 = vadd.f32 %v3833_v34, %v3799_v15 }
 0x559   :  { %vm3862_vm1 = vcmp.ne.f32.partialorder %v3846_v61, %v3846_v61  ;;  %v4834_v30 = vclamps-f32 %v3846_v61, 3.4028235e+38  ;;  %v4021_v24 = vmul.f32 %v3982_v56, %v3941_v53  ;;  %v8377_v19 = vsub.f32 0.0, %v7956_v42  ;;  %v8387_v56 = vld [vmem:[#allocation13_spill] sm:$0xff] }
 0x55a   :  { %v3816_v14 = vmul.f32 %v8005_v9, %v8376_v43  ;;  %v4024_v31 = vmul.f32 %v3988_v39, %v3944_v0  ;;  %v3798_v28 = vmul.f32 0.07, %v3782_v44  ;;  %vm3865_vm11 = vcmp.ne.f32.partialorder %v3849_v33, %v3849_v33 }
 0x55b   :  { %v3910_v10 = vsel %vm3862_vm1, 0.0, %v4834_v30  ;;  %v3818_v23 = vmul.f32 %v8005_v9, %v8377_v19  ;;  %v4053_v49 = vsel %vm3232_vm15, %v4021_v24, 0.0  ;;  %v4837_v46 = vclamps-f32 %v3849_v33, 3.4028235e+38 }
 0x55c   :  { %v3943_v1 = vadd.f32 1.0, %v3910_v10  ;;  %v3832_v45 = vmul.f32 0.03, %v3816_v14  ;;  %4093 = vrot.lane.b32.xlu1 %v4053_v49, %s5114_s28  ;;  %v4056_v54 = vsel %vm3235_vm8, %v4024_v31, 0.0  ;;  %v3800_v36 = vmul.f32 0.07, %v3784_v59 }
 0x55d   :  { %4099 = vrot.lane.b32.xlu0 %v4056_v54, %s5114_s28  ;;  %v3834_v12 = vmul.f32 0.03, %v3818_v23  ;;  %v3913_v9 = vsel %vm3865_vm11, 0.0, %v4837_v46  ;;  %vm8381_vm10 = vcmp.gt.f32.partialorder %v8380_v26, 0.0  ;;  %vm8383_vm6 = vcmp.gt.f32.partialorder %v8382_v11, 0.0 }
 0x55e   :  { %v4023_v20 = vmul.f32 %v3986_v60, %v3943_v1  ;;  %v3848_v42 = vadd.f32 %v3832_v45, %v3798_v28  ;;  %v3946_v50 = vadd.f32 1.0, %v3913_v9  ;;  %vm8385_vm8 = vcmp.gt.f32.partialorder %v8384_v38, 0.0 }
 0x55f   :  { %v3850_v18 = vadd.f32 %v3834_v12, %v3800_v36  ;;  %v8386_v40 = vmov 0.0   ;;  %vm8388_vm0 = vcmp.gt.f32.partialorder %v8387_v56, 0.0  ;;  %vm8390_vm9 = vcmp.lt.s32.totalorder %v8389_v4, 117 }
 0x560   :  { %v4055_v8 = vsel %vm8381_vm10, %v4023_v20, 0.0  ;;  %vm3864_vm15 = vcmp.ne.f32.partialorder %v3848_v42, %v3848_v42  ;;  %v4836_v48 = vclamps-f32 %v3848_v42, 3.4028235e+38  ;;  %v4026_v6 = vmul.f32 %v3992_v63, %v3946_v50  ;;  %vm4043_vm4 = vmand %vm8390_vm9, %vm8388_vm0 }
 0x561   :  { %4097 = vrot.lane.b32.xlu1 %v4055_v8, %s5114_s28  ;;  %vm3866_vm13 = vcmp.ne.f32.partialorder %v3850_v18, %v3850_v18  ;;  %v4838_v55 = vclamps-f32 %v3850_v18, 3.4028235e+38  ;;  %vm4125_vm5 = vcmask 7168   ;;  %vm4167_vm12 = vcmask 0  }
 0x562   :  { %v3912_v13 = vsel %vm3864_vm15, 0.0, %v4836_v48  ;;  %v4058_v57 = vsel %vm8383_vm6, %v4026_v6, 0.0 }
 0x563   :  { %v3945_v22 = vadd.f32 1.0, %v3912_v13  ;;  %4103 = vrot.lane.b32.xlu0 %v4058_v57, %s5114_s28  ;;  %v3914_v35 = vsel %vm3866_vm13, 0.0, %v4838_v55 }
 0x564   :  { %v3947_v32 = vadd.f32 1.0, %v3914_v35 }
 0x565   :  { %v4025_v3 = vmul.f32 %v3990_v16, %v3945_v22 }
 0x566   :  { %v4027_v17 = vmul.f32 %v3994_v37, %v3947_v32 }
 0x567   :  { %v4057_v58 = vsel %vm8385_vm8, %v4025_v3, 0.0  ;;  %4107 = vrot.lane.b32.xlu0 %v8386_v40, %s5114_s28 }
 0x568   :  { %4101 = vrot.lane.b32.xlu1 %v4057_v58, %s5114_s28  ;;  %v4059_v21 = vsel %vm4043_vm4, %v4027_v17, 0.0 }
 0x56c   :  { %4105 = vrot.lane.b32.xlu1 %v4059_v21, %s5114_s28 }
 0x5b8   :  { %v4078_v52 = vpop.permute.xlu1 %4077 }
 0x5b9   :  { %v4080_v5 = vpop.permute.xlu0 %4079  ;;  %v4126_v62 = vsel %vm4125_vm5, %v4078_v52, 0.0 }
 0x5ba   :  { %v4127_v41 = vsel %vm4125_vm5, %v4080_v5, 0.0 }
 0x5bb   :  { %v4128_v27 = vadd.f32 %v4127_v41, %v4126_v62 }
 0x5bc   :  { %v4082_v47 = vpop.permute.xlu1 %4081 }
 0x5bd   :  { %v4084_v61 = vpop.permute.xlu0 %4083  ;;  %v4129_v51 = vsel %vm4125_vm5, %v4082_v47, 0.0 }
 0x5be   :  { %v4130_v2 = vadd.f32 %v4129_v51, %v4128_v27  ;;  %v4131_v53 = vsel %vm4125_vm5, %v4084_v61, 0.0 }
 0x5c0   :  { %v4132_v7 = vadd.f32 %v4131_v53, %v4130_v2 }
 0x5c1   :  { %v4086_v15 = vpop.permute.xlu1 %4085  ;;  %v4088_v0 = vpop.permute.xlu0 %4087 }
 0x5c2   :  { %v4133_v30 = vsel %vm4125_vm5, %v4086_v15, 0.0  ;;  %v4135_v39 = vsel %vm4125_vm5, %v4088_v0, 0.0 }
 0x5c3   :  { %v4134_v34 = vadd.f32 %v4133_v30, %v4132_v7 }
 0x5c5   :  { %v4136_v44 = vadd.f32 %v4135_v39, %v4134_v34 }
 0x5c6   :  { %v4092_v24 = vpop.permute.xlu0 %4091 }
 0x5c7   :  { %v4139_v31 = vsel %vm4125_vm5, %v4092_v24, 0.0 }
 0x5c9   :  { %v4090_v43 = vpop.permute.xlu1 %4089 }
 0x5ca   :  { %v4137_v14 = vsel %vm4125_vm5, %v4090_v43, 0.0  ;;  %v4096_v60 = vpop.permute.xlu0 %4095 }
 0x5cb   :  { %v4138_v59 = vadd.f32 %v4137_v14, %v4136_v44  ;;  %v4143_v25 = vsel %vm4125_vm5, %v4096_v60, 0.0 }
 0x5cd   :  { %v4140_v10 = vadd.f32 %v4139_v31, %v4138_v59 }
 0x5ce   :  { %v4094_v33 = vpop.permute.xlu1 %4093 }
 0x5cf   :  { %v4141_v19 = vsel %vm4125_vm5, %v4094_v33, 0.0  ;;  %v4100_v49 = vpop.permute.xlu0 %4099 }
 0x5d0   :  { %v4142_v23 = vadd.f32 %v4141_v19, %v4140_v10  ;;  %v4147_v54 = vsel %vm4125_vm5, %v4100_v49, 0.0 }
 0x5d2   :  { %v4144_v1 = vadd.f32 %v4143_v25, %v4142_v23 }
 0x5d3   :  { %v4098_v28 = vpop.permute.xlu1 %4097 }
 0x5d4   :  { %v4145_v45 = vsel %vm4125_vm5, %v4098_v28, 0.0 }
 0x5d5   :  { %v4146_v29 = vadd.f32 %v4145_v45, %v4144_v1  ;;  %v4104_v36 = vpop.permute.xlu0 %4103 }
 0x5d6   :  { %v4151_v26 = vsel %vm4125_vm5, %v4104_v36, 0.0 }
 0x5d7   :  { %v4148_v46 = vadd.f32 %v4147_v54, %v4146_v29 }
 0x5d9   :  { %v4108_v9 = vpop.permute.xlu0 %4107 }
 0x5da   :  { %v4102_v20 = vpop.permute.xlu1 %4101  ;;  %v4155_v63 = vsel %vm4125_vm5, %v4108_v9, 0.0 }
 0x5db   :  { %v4149_v42 = vsel %vm4125_vm5, %v4102_v20, 0.0 }
 0x5dc   :  { %v4150_v12 = vadd.f32 %v4149_v42, %v4148_v46 }
 0x5de   :  { %v4152_v8 = vadd.f32 %v4151_v26, %v4150_v12  ;;  %v4106_v50 = vpop.permute.xlu1 %4105 }
 0x5df   :  { %v4153_v48 = vsel %vm4125_vm5, %v4106_v50, 0.0 }
 0x5e0   :  { %v4154_v16 = vadd.f32 %v4153_v48, %v4152_v8 }
 0x5e2   :  { %v4156_v18 = vadd.f32 %v4155_v63, %v4154_v16 }
 0x5e4   :  { %4157 = vadd.xlane.f32.xlu1 %v4156_v18 }
 0x671   :  { %v4158_v6 = vpop.xlane.xlu1 %4157 }
 0x672   :  { %v4159_v13 = vrot.slane %v4158_v6, 4 }
 0x674   :  { %v4160_v22 = vadd.f32 %v4159_v13, %v4158_v6 }
 0x676   :  { %v4161_v55 = vrot.slane %v4160_v22, 2 }
 0x678   :  { %v4162_v11 = vadd.f32 %v4161_v55, %v4160_v22 }
 0x67a   :  { %v4163_v57 = vrot.slane %v4162_v11, 1 }
 0x67c   :  { %v4164_v3 = vadd.f32 %v4163_v57, %v4162_v11 }
 0x67e   :  { %4848 = vpush %v4164_v3 }
 0x6af   :  { %s4849_s4 = spop %4848 }
 0x6b0   :  { %v4166_v35 = vstv %s4849_s4 }
 0x6b1   :  { %4168 = vst.msk [vmem:[#allocation4] sm:$0x1] %vm4167_vm12, %v4166_v35 }
 0x6b2   :  { %5094 = shalt.err (!%p5091_p4)
}
 0x6b3   :  { %s5095_s9 = scalar_lea.hbm %s8154_s3, 16 }
 0x6b4   :  { %p5096_p5 = scmp.ne.s32.totalorder %s8154_s3, %s5095_s9  ;;  %p5099_p6 = scmp.lt.u32.totalorder %s5095_s9, %s8154_s3 }
 0x6b6   :  { %p5101_p7 = pnand %p5099_p6, %p5096_p5 }
 0x6b8   :  { %5104 = shalt.err (!%p5101_p7)
}
 0x6b9   :  { %4178 = dma.vmem_to_hbm [thread:$0]  %s4176_s30, 16, %s8154_s3, [#allocation5]  }
 0x6ba   :  { %5105 = dma.done.wait [#allocation5], 16  }
 0x6bb   :  { %5106 = vsyncadd [#allocation5], 4294967280 }
 0x6bc   :  { %4182 = vsyncpa [#allocation5], 1 }

</bundles_post_ra>
